<compile_context>
chip_gen: v7x
topology: tpu7x:2x2x1
jax: 0.10.0
libtpu: 0.0.40
codegen_flags: <defaults>
</compile_context>

<pallas_src>
import jax
import jax.numpy as jnp
from jax import lax
from jax.experimental import pallas as pl
from jax.experimental.pallas import tpu as pltpu


def _make_conv_stage_kernel(D, H, W, C, has_residual, emit_stats):
    """Fused BN(scale/bias)+ReLU -> 3x3x3 conv (pad=1) [+residual] for one batch elem."""
    S = D * H * W
    HW = H * W
    NTAP = 27
    NTAP_PAD = 28  # even tap count -> 16-row-aligned bf16 im2col stores

    def kernel(*refs):
        it = iter(refs)
        x_ref = next(it)
        res_ref = next(it) if has_residual else None
        scale_ref = next(it)
        bias_ref = next(it)
        w_ref = next(it)
        cb_ref = next(it)
        coords_ref = next(it)
        o_ref = next(it)
        stats_ref = next(it) if emit_stats else None
        col_ref = next(it)

        # 1) folded BatchNorm + ReLU (f32, VPU).  scale/bias are (C, 1).
        a = jnp.maximum(x_ref[...] * scale_ref[...] + bias_ref[...], 0.0)

        # Per-lane spatial coordinates (precomputed in the wrapper, no in-kernel
        # integer div/mod) and the six boundary predicates.
        d_idx = coords_ref[0:1, :]
        h_idx = coords_ref[1:2, :]
        w_idx = coords_ref[2:3, :]
        lo = (d_idx >= 1, h_idx >= 1, w_idx >= 1)
        hi = (d_idx < D - 1, h_idx < H - 1, w_idx < W - 1)

        def tap_mask(kd, kh, kw):
            m = None
            for ax, kk in enumerate((kd, kh, kw)):
                if kk == 0:
                    c = lo[ax]
                elif kk == 2:
                    c = hi[ax]
                else:
                    continue
                m = c if m is None else (m & c)
            return m  # None => tap never crosses a boundary

        # 2) lane-dense im2col: col[t*C + cin, s] = a[cin, s_shifted] (0 outside),
        #    written two taps at a time so each bf16 store is 16-row aligned.
        for t0 in range(0, NTAP_PAD, 2):
            parts = []
            for t in (t0, t0 + 1):
                if t >= NTAP:  # dummy 28th tap (matching zero weight columns)
                    parts.append(jnp.zeros((C, S), jnp.float32))
                    continue
                kd, kh, kw = t // 9, (t // 3) % 3, t % 3
                delta = (kd - 1) * HW + (kh - 1) * W + (kw - 1)
                shifted = a if delta == 0 else pltpu.roll(a, (-delta) % S, axis=1)
                m = tap_mask(kd, kh, kw)
                parts.append(shifted if m is None else jnp.where(m, shifted, 0.0))
            col_ref[t0 * C:(t0 + 2) * C, :] = (
                jnp.concatenate(parts, axis=0).astype(jnp.bfloat16))

        # 3) single MXU contraction: (C, 28C) @ (28C, S) -> (C, S), f32 accum.
        out = jnp.dot(w_ref[...], col_ref[...],
                      preferred_element_type=jnp.float32)
        out = out + cb_ref[...]

        # Per-channel sum / sum-of-squares of the conv output (for the next BN) --
        # avoids an extra HBM pass over the intermediate tensor.
        if emit_stats:
            stats_ref[...] = jnp.concatenate(
                [jnp.sum(out, axis=1, keepdims=True),
                 jnp.sum(out * out, axis=1, keepdims=True)], axis=1)

        if has_residual:
            out = out + res_ref[...]
        o_ref[...] = out.astype(o_ref.dtype)

    return kernel


def _conv_stage(x3, scale, bias, w2d, cb, spatial, residual=None, emit_stats=False):
    """x3: (N, C, S) f32.  w2d: (C, 28*C) bf16.  Returns (N, C, S)[, (N, C, 2)]."""
    N, C, S = x3.shape
    D, H, W = spatial
    assert S == D * H * W
    KP = w2d.shape[1]  # 28 * C
    has_res = residual is not None

    # TODO(synk): for large D*H*W / C, add a depth-slab grid axis (halo handled
    # by the same boundary masks) so per-step VMEM stays within v7x's 64 MiB.

    # Spatial coordinate planes for the boundary masks (tiny, constant-folded).
    dd, hh, ww = jnp.meshgrid(jnp.arange(D, dtype=jnp.int32),
                              jnp.arange(H, dtype=jnp.int32),
                              jnp.arange(W, dtype=jnp.int32), indexing="ij")
    coords = jnp.stack([dd.reshape(S), hh.reshape(S), ww.reshape(S)], axis=0)

    kernel = _make_conv_stage_kernel(D, H, W, C, has_res, emit_stats)

    batch_spec = pl.BlockSpec((None, C, S), lambda n: (n, 0, 0))
    chan_spec = pl.BlockSpec((C, 1), lambda n: (0, 0))

    in_specs = [batch_spec]
    inputs = [x3]
    if has_res:
        in_specs.append(batch_spec)
        inputs.append(residual)
    in_specs += [chan_spec, chan_spec,
                 pl.BlockSpec((C, KP), lambda n: (0, 0)),
                 chan_spec,
                 pl.BlockSpec((3, S), lambda n: (0, 0))]
    inputs += [scale.reshape(C, 1).astype(jnp.float32),
               bias.reshape(C, 1).astype(jnp.float32),
               w2d,
               cb.reshape(C, 1).astype(jnp.float32),
               coords]

    if emit_stats:
        out_shape = (jax.ShapeDtypeStruct((N, C, S), jnp.float32),
                     jax.ShapeDtypeStruct((N, C, 2), jnp.float32))
        out_specs = (batch_spec, pl.BlockSpec((None, C, 2), lambda n: (n, 0, 0)))
    else:
        out_shape = jax.ShapeDtypeStruct((N, C, S), jnp.float32)
        out_specs = batch_spec

    flops = 2 * N * C * KP * S + 8 * N * C * S
    bytes_accessed = 4 * N * C * S * (2 + (1 if has_res else 0)) + 2 * C * KP

    return pl.pallas_call(
        kernel,
        grid=(N,),
        in_specs=in_specs,
        out_specs=out_specs,
        out_shape=out_shape,
        scratch_shapes=[pltpu.VMEM((KP, S), jnp.bfloat16)],
        compiler_params=pltpu.CompilerParams(
            dimension_semantics=("parallel",),
            vmem_limit_bytes=32 * 1024 * 1024),
        cost_estimate=pl.CostEstimate(flops=flops, transcendentals=0,
                                      bytes_accessed=bytes_accessed),
    )(*inputs)


def _pack_conv_weight(w):
    """PyTorch (Cout, Cin, 3, 3, 3) -> (Cout, 28*Cin) bf16, tap-major columns."""
    c_out, c_in = w.shape[0], w.shape[1]
    w2d = jnp.transpose(w, (0, 2, 3, 4, 1)).reshape(c_out, 27 * c_in)
    w2d = jnp.pad(w2d, ((0, 0), (0, c_in)))  # dummy 28th tap = zeros
    return w2d.astype(jnp.bfloat16)


def voxres_module_forward(x, params, eps=1e-5):
    """x: (N, C, D, H, W) float32 (PyTorch NCDHW).  Returns (N, C, D, H, W)."""
    N, C, D, H, W = x.shape
    S = D * H * W
    x3 = x.reshape(N, C, S).astype(jnp.float32)

    # BN1: training-mode batch statistics (biased variance), folded to scale/bias.
    mean1 = jnp.mean(x3, axis=(0, 2))
    var1 = jnp.var(x3, axis=(0, 2))
    s1 = params["gamma1"] / jnp.sqrt(var1 + eps)
    b1 = params["beta1"] - mean1 * s1

    w1 = _pack_conv_weight(params["w1"])
    w2 = _pack_conv_weight(params["w2"])

    mid, stats = _conv_stage(x3, s1, b1, w1, params["cb1"], (D, H, W),
                             residual=None, emit_stats=True)

    # BN2 batch statistics from the in-kernel per-channel partials.
    tot = jnp.sum(stats, axis=0)                      # (C, 2)
    cnt = float(N * S)
    mean2 = tot[:, 0] / cnt
    var2 = jnp.maximum(tot[:, 1] / cnt - mean2 * mean2, 0.0)
    s2 = params["gamma2"] / jnp.sqrt(var2 + eps)
    b2 = params["beta2"] - mean2 * s2

    out3 = _conv_stage(mid, s2, b2, w2, params["cb2"], (D, H, W),
                       residual=x3, emit_stats=False)
    return out3.reshape(N, C, D, H, W)


def _reference_forward(x, params, eps=1e-5, conv_dtype=jnp.float32):
    """Pure-JAX reference (lax.conv, NDHWC).  conv_dtype=bfloat16 mirrors the
    kernel's bf16 MXU operands (f32 accumulation either way)."""
    xl = jnp.transpose(x, (0, 2, 3, 4, 1)).astype(jnp.float32)

    def bn_relu(a, gamma, beta):
        mean = jnp.mean(a, axis=(0, 1, 2, 3), keepdims=True)
        var = jnp.var(a, axis=(0, 1, 2, 3), keepdims=True)
        return jnp.maximum((a - mean) / jnp.sqrt(var + eps) * gamma + beta, 0.0)

    def conv3d(a, w, b):
        wd = jnp.transpose(w, (2, 3, 4, 1, 0))  # (Cout,Cin,kd,kh,kw) -> DHWIO
        y = lax.conv_general_dilated(
            a.astype(conv_dtype), wd.astype(conv_dtype),
            window_strides=(1, 1, 1), padding="SAME",
            dimension_numbers=("NDHWC", "DHWIO", "NDHWC"),
            preferred_element_type=jnp.float32)
        return y + b

    out = conv3d(bn_relu(xl, params["gamma1"], params["beta1"]),
                 params["w1"], params["cb1"])
    out = conv3d(bn_relu(out, params["gamma2"], params["beta2"]),
                 params["w2"], params["cb2"])
    out = out + xl
    return jnp.transpose(out, (0, 4, 1, 2, 3))


def make_params(key, C):
    ks = jax.random.split(key, 8)
    # Conv weights in PyTorch layout (Cout, Cin, kd, kh, kw).
    w1 = 0.1 * jax.random.normal(ks[0], (C, C, 3, 3, 3), jnp.float32)
    cb1 = 0.1 * jax.random.normal(ks[1], (C,), jnp.float32)
    w2 = 0.1 * jax.random.normal(ks[2], (C, C, 3, 3, 3), jnp.float32)
    cb2 = 0.1 * jax.random.normal(ks[3], (C,), jnp.float32)
    gamma1 = 1.0 + 0.1 * jax.random.normal(ks[4], (C,), jnp.float32)
    beta1 = 0.1 * jax.random.normal(ks[5], (C,), jnp.float32)
    gamma2 = 1.0 + 0.1 * jax.random.normal(ks[6], (C,), jnp.float32)
    beta2 = 0.1 * jax.random.normal(ks[7], (C,), jnp.float32)
    return dict(w1=w1, cb1=cb1, w2=w2, cb2=cb2,
                gamma1=gamma1, beta1=beta1, gamma2=gamma2, beta2=beta2)


if __name__ == "__main__":
    N, C, D, H, W = 2, 8, 8, 8, 8
    key = jax.random.PRNGKey(0)
    kx, kp = jax.random.split(key)
    x = jax.random.normal(kx, (N, C, D, H, W), jnp.float32)
    params = make_params(kp, C)

    fwd = jax.jit(voxres_module_forward)
    out = jax.block_until_ready(fwd(x, params))
    assert out.shape == (N, C, D, H, W)

    # Tight check against a reference using the same bf16 conv operands
    # (f32 accumulation), plus a looser check against pure-f32 math.
    ref_bf16 = _reference_forward(x, params, conv_dtype=jnp.bfloat16)
    ref_f32 = _reference_forward(x, params, conv_dtype=jnp.float32)
    assert jnp.allclose(out, ref_bf16, rtol=2e-3, atol=2e-3), float(
        jnp.max(jnp.abs(out - ref_bf16)))
    assert jnp.allclose(out, ref_f32, rtol=5e-2, atol=5e-2), float(
        jnp.max(jnp.abs(out - ref_f32)))
    print("KERNEL_OK")
</pallas_src>

<mosaic_0001>
module attributes {stable_mosaic.version = 11 : i64} {
  func.func @kernel(%arg0: i32, %arg1: memref<1x8x512xf32, #tpu.memory_space<vmem>>, %arg2: memref<8x1xf32, #tpu.memory_space<vmem>>, %arg3: memref<8x1xf32, #tpu.memory_space<vmem>>, %arg4: memref<8x224xbf16, #tpu.memory_space<vmem>>, %arg5: memref<8x1xf32, #tpu.memory_space<vmem>>, %arg6: memref<3x512xi32, #tpu.memory_space<vmem>>, %arg7: memref<1x8x512xf32, #tpu.memory_space<vmem>>, %arg8: memref<1x8x2xf32, #tpu.memory_space<vmem>>, %arg9: memref<224x512xbf16, #tpu.memory_space<vmem>>) attributes {dimension_semantics = [#tpu.dimension_semantics<parallel>], iteration_bounds = array<i64: 2>, scalar_prefetch = 0 : i64, scratch_operands = 1 : i64, tpu.core_type = #tpu.core_type<tc>, window_params = [{transform_indices = @transform_0, window_bounds = array<i64: 1, 8, 512>}, {pipeline_mode = #tpu.pipeline_mode<synchronous>, transform_indices = @transform_1, window_bounds = array<i64: 8, 1>}, {pipeline_mode = #tpu.pipeline_mode<synchronous>, transform_indices = @transform_2, window_bounds = array<i64: 8, 1>}, {pipeline_mode = #tpu.pipeline_mode<synchronous>, transform_indices = @transform_3, window_bounds = array<i64: 8, 224>}, {pipeline_mode = #tpu.pipeline_mode<synchronous>, transform_indices = @transform_4, window_bounds = array<i64: 8, 1>}, {pipeline_mode = #tpu.pipeline_mode<synchronous>, transform_indices = @transform_5, window_bounds = array<i64: 3, 512>}, {transform_indices = @transform_6, window_bounds = array<i64: 1, 8, 512>}, {transform_indices = @transform_7, window_bounds = array<i64: 1, 8, 2>}]} {
    %c0 = arith.constant 0 : index
    %c0_0 = arith.constant 0 : index
    %c0_1 = arith.constant 0 : index
    %0 = vector.load %arg1[%c0, %c0_0, %c0_1] : memref<1x8x512xf32, #tpu.memory_space<vmem>>, vector<1x8x512xf32>
    %1 = vector.shape_cast %0 : vector<1x8x512xf32> to vector<8x512xf32>
    %c0_2 = arith.constant 0 : index
    %c0_3 = arith.constant 0 : index
    %2 = vector.load %arg2[%c0_2, %c0_3] : memref<8x1xf32, #tpu.memory_space<vmem>>, vector<8x1xf32>
    %3 = vector.broadcast %2 : vector<8x1xf32> to vector<8x512xf32>
    %4 = arith.mulf %1, %3 : vector<8x512xf32>
    %c0_4 = arith.constant 0 : index
    %c0_5 = arith.constant 0 : index
    %5 = vector.load %arg3[%c0_4, %c0_5] : memref<8x1xf32, #tpu.memory_space<vmem>>, vector<8x1xf32>
    %6 = vector.broadcast %5 : vector<8x1xf32> to vector<8x512xf32>
    %7 = arith.addf %4, %6 : vector<8x512xf32>
    %cst = arith.constant 0.000000e+00 : f32
    %8 = vector.broadcast %cst : f32 to vector<8x512xf32>
    %9 = arith.maximumf %7, %8 : vector<8x512xf32>
    %c0_6 = arith.constant 0 : index
    %c0_7 = arith.constant 0 : index
    %10 = vector.load %arg6[%c0_6, %c0_7] : memref<3x512xi32, #tpu.memory_space<vmem>>, vector<1x512xi32>
    %c1 = arith.constant 1 : index
    %c0_8 = arith.constant 0 : index
    %11 = vector.load %arg6[%c1, %c0_8] : memref<3x512xi32, #tpu.memory_space<vmem>>, vector<1x512xi32>
    %c2 = arith.constant 2 : index
    %c0_9 = arith.constant 0 : index
    %12 = vector.load %arg6[%c2, %c0_9] : memref<3x512xi32, #tpu.memory_space<vmem>>, vector<1x512xi32>
    %c1_i32 = arith.constant 1 : i32
    %13 = vector.broadcast %c1_i32 : i32 to vector<1x512xi32>
    %14 = arith.cmpi sge, %10, %13 : vector<1x512xi32>
    %c1_i32_10 = arith.constant 1 : i32
    %15 = vector.broadcast %c1_i32_10 : i32 to vector<1x512xi32>
    %16 = arith.cmpi sge, %11, %15 : vector<1x512xi32>
    %c1_i32_11 = arith.constant 1 : i32
    %17 = vector.broadcast %c1_i32_11 : i32 to vector<1x512xi32>
    %18 = arith.cmpi sge, %12, %17 : vector<1x512xi32>
    %c7_i32 = arith.constant 7 : i32
    %19 = vector.broadcast %c7_i32 : i32 to vector<1x512xi32>
    %20 = arith.cmpi slt, %10, %19 : vector<1x512xi32>
    %c7_i32_12 = arith.constant 7 : i32
    %21 = vector.broadcast %c7_i32_12 : i32 to vector<1x512xi32>
    %22 = arith.cmpi slt, %11, %21 : vector<1x512xi32>
    %c7_i32_13 = arith.constant 7 : i32
    %23 = vector.broadcast %c7_i32_13 : i32 to vector<1x512xi32>
    %24 = arith.cmpi slt, %12, %23 : vector<1x512xi32>
    %c73_i32 = arith.constant 73 : i32
    %25 = tpu.dynamic_rotate %9 by %c73_i32 dim 1 : vector<8x512xf32>, i32 -> vector<8x512xf32>
    %26 = arith.andi %14, %16 : vector<1x512xi1>
    %27 = arith.andi %26, %18 : vector<1x512xi1>
    %cst_14 = arith.constant 0.000000e+00 : f32
    %28 = vector.shape_cast %27 : vector<1x512xi1> to vector<1x512xi1>
    %29 = vector.broadcast %28 : vector<1x512xi1> to vector<8x512xi1>
    %30 = vector.broadcast %cst_14 : f32 to vector<8x512xf32>
    %31 = arith.select %29, %25, %30 : vector<8x512xi1>, vector<8x512xf32>
    %c72_i32 = arith.constant 72 : i32
    %32 = tpu.dynamic_rotate %9 by %c72_i32 dim 1 : vector<8x512xf32>, i32 -> vector<8x512xf32>
    %33 = arith.andi %14, %16 : vector<1x512xi1>
    %cst_15 = arith.constant 0.000000e+00 : f32
    %34 = vector.shape_cast %33 : vector<1x512xi1> to vector<1x512xi1>
    %35 = vector.broadcast %34 : vector<1x512xi1> to vector<8x512xi1>
    %36 = vector.broadcast %cst_15 : f32 to vector<8x512xf32>
    %37 = arith.select %35, %32, %36 : vector<8x512xi1>, vector<8x512xf32>
    %38 = tpu.concatenate %31, %37 in 0 : vector<8x512xf32>, vector<8x512xf32> -> vector<16x512xf32>
    %39 = arith.truncf %38 : vector<16x512xf32> to vector<16x512xbf16>
    %c0_16 = arith.constant 0 : index
    %c0_17 = arith.constant 0 : index
    %40 = vector.load %arg9[%c0_16, %c0_17] : memref<224x512xbf16, #tpu.memory_space<vmem>>, vector<16x512xbf16>
    tpu.vector_store %arg9[%c0_16, %c0_17], %39 {strides = array<i32>} : memref<224x512xbf16, #tpu.memory_space<vmem>>, vector<16x512xbf16>,
    %c71_i32 = arith.constant 71 : i32
    %41 = tpu.dynamic_rotate %9 by %c71_i32 dim 1 : vector<8x512xf32>, i32 -> vector<8x512xf32>
    %42 = arith.andi %14, %16 : vector<1x512xi1>
    %43 = arith.andi %42, %24 : vector<1x512xi1>
    %cst_18 = arith.constant 0.000000e+00 : f32
    %44 = vector.shape_cast %43 : vector<1x512xi1> to vector<1x512xi1>
    %45 = vector.broadcast %44 : vector<1x512xi1> to vector<8x512xi1>
    %46 = vector.broadcast %cst_18 : f32 to vector<8x512xf32>
    %47 = arith.select %45, %41, %46 : vector<8x512xi1>, vector<8x512xf32>
    %c65_i32 = arith.constant 65 : i32
    %48 = tpu.dynamic_rotate %9 by %c65_i32 dim 1 : vector<8x512xf32>, i32 -> vector<8x512xf32>
    %49 = arith.andi %14, %18 : vector<1x512xi1>
    %cst_19 = arith.constant 0.000000e+00 : f32
    %50 = vector.shape_cast %49 : vector<1x512xi1> to vector<1x512xi1>
    %51 = vector.broadcast %50 : vector<1x512xi1> to vector<8x512xi1>
    %52 = vector.broadcast %cst_19 : f32 to vector<8x512xf32>
    %53 = arith.select %51, %48, %52 : vector<8x512xi1>, vector<8x512xf32>
    %54 = tpu.concatenate %47, %53 in 0 : vector<8x512xf32>, vector<8x512xf32> -> vector<16x512xf32>
    %55 = arith.truncf %54 : vector<16x512xf32> to vector<16x512xbf16>
    %c16 = arith.constant 16 : index
    %c0_20 = arith.constant 0 : index
    %56 = vector.load %arg9[%c16, %c0_20] : memref<224x512xbf16, #tpu.memory_space<vmem>>, vector<16x512xbf16>
    tpu.vector_store %arg9[%c16, %c0_20], %55 {strides = array<i32>} : memref<224x512xbf16, #tpu.memory_space<vmem>>, vector<16x512xbf16>,
    %c64_i32 = arith.constant 64 : i32
    %57 = tpu.dynamic_rotate %9 by %c64_i32 dim 1 : vector<8x512xf32>, i32 -> vector<8x512xf32>
    %cst_21 = arith.constant 0.000000e+00 : f32
    %58 = vector.shape_cast %14 : vector<1x512xi1> to vector<1x512xi1>
    %59 = vector.broadcast %58 : vector<1x512xi1> to vector<8x512xi1>
    %60 = vector.broadcast %cst_21 : f32 to vector<8x512xf32>
    %61 = arith.select %59, %57, %60 : vector<8x512xi1>, vector<8x512xf32>
    %c63_i32 = arith.constant 63 : i32
    %62 = tpu.dynamic_rotate %9 by %c63_i32 dim 1 : vector<8x512xf32>, i32 -> vector<8x512xf32>
    %63 = arith.andi %14, %24 : vector<1x512xi1>
    %cst_22 = arith.constant 0.000000e+00 : f32
    %64 = vector.shape_cast %63 : vector<1x512xi1> to vector<1x512xi1>
    %65 = vector.broadcast %64 : vector<1x512xi1> to vector<8x512xi1>
    %66 = vector.broadcast %cst_22 : f32 to vector<8x512xf32>
    %67 = arith.select %65, %62, %66 : vector<8x512xi1>, vector<8x512xf32>
    %68 = tpu.concatenate %61, %67 in 0 : vector<8x512xf32>, vector<8x512xf32> -> vector<16x512xf32>
    %69 = arith.truncf %68 : vector<16x512xf32> to vector<16x512xbf16>
    %c32 = arith.constant 32 : index
    %c0_23 = arith.constant 0 : index
    %70 = vector.load %arg9[%c32, %c0_23] : memref<224x512xbf16, #tpu.memory_space<vmem>>, vector<16x512xbf16>
    tpu.vector_store %arg9[%c32, %c0_23], %69 {strides = array<i32>} : memref<224x512xbf16, #tpu.memory_space<vmem>>, vector<16x512xbf16>,
    %c57_i32 = arith.constant 57 : i32
    %71 = tpu.dynamic_rotate %9 by %c57_i32 dim 1 : vector<8x512xf32>, i32 -> vector<8x512xf32>
    %72 = arith.andi %14, %22 : vector<1x512xi1>
    %73 = arith.andi %72, %18 : vector<1x512xi1>
    %cst_24 = arith.constant 0.000000e+00 : f32
    %74 = vector.shape_cast %73 : vector<1x512xi1> to vector<1x512xi1>
    %75 = vector.broadcast %74 : vector<1x512xi1> to vector<8x512xi1>
    %76 = vector.broadcast %cst_24 : f32 to vector<8x512xf32>
    %77 = arith.select %75, %71, %76 : vector<8x512xi1>, vector<8x512xf32>
    %c56_i32 = arith.constant 56 : i32
    %78 = tpu.dynamic_rotate %9 by %c56_i32 dim 1 : vector<8x512xf32>, i32 -> vector<8x512xf32>
    %79 = arith.andi %14, %22 : vector<1x512xi1>
    %cst_25 = arith.constant 0.000000e+00 : f32
    %80 = vector.shape_cast %79 : vector<1x512xi1> to vector<1x512xi1>
    %81 = vector.broadcast %80 : vector<1x512xi1> to vector<8x512xi1>
    %82 = vector.broadcast %cst_25 : f32 to vector<8x512xf32>
    %83 = arith.select %81, %78, %82 : vector<8x512xi1>, vector<8x512xf32>
    %84 = tpu.concatenate %77, %83 in 0 : vector<8x512xf32>, vector<8x512xf32> -> vector<16x512xf32>
    %85 = arith.truncf %84 : vector<16x512xf32> to vector<16x512xbf16>
    %c48 = arith.constant 48 : index
    %c0_26 = arith.constant 0 : index
    %86 = vector.load %arg9[%c48, %c0_26] : memref<224x512xbf16, #tpu.memory_space<vmem>>, vector<16x512xbf16>
    tpu.vector_store %arg9[%c48, %c0_26], %85 {strides = array<i32>} : memref<224x512xbf16, #tpu.memory_space<vmem>>, vector<16x512xbf16>,
    %c55_i32 = arith.constant 55 : i32
    %87 = tpu.dynamic_rotate %9 by %c55_i32 dim 1 : vector<8x512xf32>, i32 -> vector<8x512xf32>
    %88 = arith.andi %14, %22 : vector<1x512xi1>
    %89 = arith.andi %88, %24 : vector<1x512xi1>
    %cst_27 = arith.constant 0.000000e+00 : f32
    %90 = vector.shape_cast %89 : vector<1x512xi1> to vector<1x512xi1>
    %91 = vector.broadcast %90 : vector<1x512xi1> to vector<8x512xi1>
    %92 = vector.broadcast %cst_27 : f32 to vector<8x512xf32>
    %93 = arith.select %91, %87, %92 : vector<8x512xi1>, vector<8x512xf32>
    %c9_i32 = arith.constant 9 : i32
    %94 = tpu.dynamic_rotate %9 by %c9_i32 dim 1 : vector<8x512xf32>, i32 -> vector<8x512xf32>
    %95 = arith.andi %16, %18 : vector<1x512xi1>
    %cst_28 = arith.constant 0.000000e+00 : f32
    %96 = vector.shape_cast %95 : vector<1x512xi1> to vector<1x512xi1>
    %97 = vector.broadcast %96 : vector<1x512xi1> to vector<8x512xi1>
    %98 = vector.broadcast %cst_28 : f32 to vector<8x512xf32>
    %99 = arith.select %97, %94, %98 : vector<8x512xi1>, vector<8x512xf32>
    %100 = tpu.concatenate %93, %99 in 0 : vector<8x512xf32>, vector<8x512xf32> -> vector<16x512xf32>
    %101 = arith.truncf %100 : vector<16x512xf32> to vector<16x512xbf16>
    %c64 = arith.constant 64 : index
    %c0_29 = arith.constant 0 : index
    %102 = vector.load %arg9[%c64, %c0_29] : memref<224x512xbf16, #tpu.memory_space<vmem>>, vector<16x512xbf16>
    tpu.vector_store %arg9[%c64, %c0_29], %101 {strides = array<i32>} : memref<224x512xbf16, #tpu.memory_space<vmem>>, vector<16x512xbf16>,
    %c8_i32 = arith.constant 8 : i32
    %103 = tpu.dynamic_rotate %9 by %c8_i32 dim 1 : vector<8x512xf32>, i32 -> vector<8x512xf32>
    %cst_30 = arith.constant 0.000000e+00 : f32
    %104 = vector.shape_cast %16 : vector<1x512xi1> to vector<1x512xi1>
    %105 = vector.broadcast %104 : vector<1x512xi1> to vector<8x512xi1>
    %106 = vector.broadcast %cst_30 : f32 to vector<8x512xf32>
    %107 = arith.select %105, %103, %106 : vector<8x512xi1>, vector<8x512xf32>
    %c7_i32_31 = arith.constant 7 : i32
    %108 = tpu.dynamic_rotate %9 by %c7_i32_31 dim 1 : vector<8x512xf32>, i32 -> vector<8x512xf32>
    %109 = arith.andi %16, %24 : vector<1x512xi1>
    %cst_32 = arith.constant 0.000000e+00 : f32
    %110 = vector.shape_cast %109 : vector<1x512xi1> to vector<1x512xi1>
    %111 = vector.broadcast %110 : vector<1x512xi1> to vector<8x512xi1>
    %112 = vector.broadcast %cst_32 : f32 to vector<8x512xf32>
    %113 = arith.select %111, %108, %112 : vector<8x512xi1>, vector<8x512xf32>
    %114 = tpu.concatenate %107, %113 in 0 : vector<8x512xf32>, vector<8x512xf32> -> vector<16x512xf32>
    %115 = arith.truncf %114 : vector<16x512xf32> to vector<16x512xbf16>
    %c80 = arith.constant 80 : index
    %c0_33 = arith.constant 0 : index
    %116 = vector.load %arg9[%c80, %c0_33] : memref<224x512xbf16, #tpu.memory_space<vmem>>, vector<16x512xbf16>
    tpu.vector_store %arg9[%c80, %c0_33], %115 {strides = array<i32>} : memref<224x512xbf16, #tpu.memory_space<vmem>>, vector<16x512xbf16>,
    %c1_i32_34 = arith.constant 1 : i32
    %117 = tpu.dynamic_rotate %9 by %c1_i32_34 dim 1 : vector<8x512xf32>, i32 -> vector<8x512xf32>
    %cst_35 = arith.constant 0.000000e+00 : f32
    %118 = vector.shape_cast %18 : vector<1x512xi1> to vector<1x512xi1>
    %119 = vector.broadcast %118 : vector<1x512xi1> to vector<8x512xi1>
    %120 = vector.broadcast %cst_35 : f32 to vector<8x512xf32>
    %121 = arith.select %119, %117, %120 : vector<8x512xi1>, vector<8x512xf32>
    %122 = tpu.concatenate %121, %9 in 0 : vector<8x512xf32>, vector<8x512xf32> -> vector<16x512xf32>
    %123 = arith.truncf %122 : vector<16x512xf32> to vector<16x512xbf16>
    %c96 = arith.constant 96 : index
    %c0_36 = arith.constant 0 : index
    %124 = vector.load %arg9[%c96, %c0_36] : memref<224x512xbf16, #tpu.memory_space<vmem>>, vector<16x512xbf16>
    tpu.vector_store %arg9[%c96, %c0_36], %123 {strides = array<i32>} : memref<224x512xbf16, #tpu.memory_space<vmem>>, vector<16x512xbf16>,
    %c511_i32 = arith.constant 511 : i32
    %125 = tpu.dynamic_rotate %9 by %c511_i32 dim 1 : vector<8x512xf32>, i32 -> vector<8x512xf32>
    %cst_37 = arith.constant 0.000000e+00 : f32
    %126 = vector.shape_cast %24 : vector<1x512xi1> to vector<1x512xi1>
    %127 = vector.broadcast %126 : vector<1x512xi1> to vector<8x512xi1>
    %128 = vector.broadcast %cst_37 : f32 to vector<8x512xf32>
    %129 = arith.select %127, %125, %128 : vector<8x512xi1>, vector<8x512xf32>
    %c505_i32 = arith.constant 505 : i32
    %130 = tpu.dynamic_rotate %9 by %c505_i32 dim 1 : vector<8x512xf32>, i32 -> vector<8x512xf32>
    %131 = arith.andi %22, %18 : vector<1x512xi1>
    %cst_38 = arith.constant 0.000000e+00 : f32
    %132 = vector.shape_cast %131 : vector<1x512xi1> to vector<1x512xi1>
    %133 = vector.broadcast %132 : vector<1x512xi1> to vector<8x512xi1>
    %134 = vector.broadcast %cst_38 : f32 to vector<8x512xf32>
    %135 = arith.select %133, %130, %134 : vector<8x512xi1>, vector<8x512xf32>
    %136 = tpu.concatenate %129, %135 in 0 : vector<8x512xf32>, vector<8x512xf32> -> vector<16x512xf32>
    %137 = arith.truncf %136 : vector<16x512xf32> to vector<16x512xbf16>
    %c112 = arith.constant 112 : index
    %c0_39 = arith.constant 0 : index
    %138 = vector.load %arg9[%c112, %c0_39] : memref<224x512xbf16, #tpu.memory_space<vmem>>, vector<16x512xbf16>
    tpu.vector_store %arg9[%c112, %c0_39], %137 {strides = array<i32>} : memref<224x512xbf16, #tpu.memory_space<vmem>>, vector<16x512xbf16>,
    %c504_i32 = arith.constant 504 : i32
    %139 = tpu.dynamic_rotate %9 by %c504_i32 dim 1 : vector<8x512xf32>, i32 -> vector<8x512xf32>
    %cst_40 = arith.constant 0.000000e+00 : f32
    %140 = vector.shape_cast %22 : vector<1x512xi1> to vector<1x512xi1>
    %141 = vector.broadcast %140 : vector<1x512xi1> to vector<8x512xi1>
    %142 = vector.broadcast %cst_40 : f32 to vector<8x512xf32>
    %143 = arith.select %141, %139, %142 : vector<8x512xi1>, vector<8x512xf32>
    %c503_i32 = arith.constant 503 : i32
    %144 = tpu.dynamic_rotate %9 by %c503_i32 dim 1 : vector<8x512xf32>, i32 -> vector<8x512xf32>
    %145 = arith.andi %22, %24 : vector<1x512xi1>
    %cst_41 = arith.constant 0.000000e+00 : f32
    %146 = vector.shape_cast %145 : vector<1x512xi1> to vector<1x512xi1>
    %147 = vector.broadcast %146 : vector<1x512xi1> to vector<8x512xi1>
    %148 = vector.broadcast %cst_41 : f32 to vector<8x512xf32>
    %149 = arith.select %147, %144, %148 : vector<8x512xi1>, vector<8x512xf32>
    %150 = tpu.concatenate %143, %149 in 0 : vector<8x512xf32>, vector<8x512xf32> -> vector<16x512xf32>
    %151 = arith.truncf %150 : vector<16x512xf32> to vector<16x512xbf16>
    %c128 = arith.constant 128 : index
    %c0_42 = arith.constant 0 : index
    %152 = vector.load %arg9[%c128, %c0_42] : memref<224x512xbf16, #tpu.memory_space<vmem>>, vector<16x512xbf16>
    tpu.vector_store %arg9[%c128, %c0_42], %151 {strides = array<i32>} : memref<224x512xbf16, #tpu.memory_space<vmem>>, vector<16x512xbf16>,
    %c457_i32 = arith.constant 457 : i32
    %153 = tpu.dynamic_rotate %9 by %c457_i32 dim 1 : vector<8x512xf32>, i32 -> vector<8x512xf32>
    %154 = arith.andi %20, %16 : vector<1x512xi1>
    %155 = arith.andi %154, %18 : vector<1x512xi1>
    %cst_43 = arith.constant 0.000000e+00 : f32
    %156 = vector.shape_cast %155 : vector<1x512xi1> to vector<1x512xi1>
    %157 = vector.broadcast %156 : vector<1x512xi1> to vector<8x512xi1>
    %158 = vector.broadcast %cst_43 : f32 to vector<8x512xf32>
    %159 = arith.select %157, %153, %158 : vector<8x512xi1>, vector<8x512xf32>
    %c456_i32 = arith.constant 456 : i32
    %160 = tpu.dynamic_rotate %9 by %c456_i32 dim 1 : vector<8x512xf32>, i32 -> vector<8x512xf32>
    %161 = arith.andi %20, %16 : vector<1x512xi1>
    %cst_44 = arith.constant 0.000000e+00 : f32
    %162 = vector.shape_cast %161 : vector<1x512xi1> to vector<1x512xi1>
    %163 = vector.broadcast %162 : vector<1x512xi1> to vector<8x512xi1>
    %164 = vector.broadcast %cst_44 : f32 to vector<8x512xf32>
    %165 = arith.select %163, %160, %164 : vector<8x512xi1>, vector<8x512xf32>
    %166 = tpu.concatenate %159, %165 in 0 : vector<8x512xf32>, vector<8x512xf32> -> vector<16x512xf32>
    %167 = arith.truncf %166 : vector<16x512xf32> to vector<16x512xbf16>
    %c144 = arith.constant 144 : index
    %c0_45 = arith.constant 0 : index
    %168 = vector.load %arg9[%c144, %c0_45] : memref<224x512xbf16, #tpu.memory_space<vmem>>, vector<16x512xbf16>
    tpu.vector_store %arg9[%c144, %c0_45], %167 {strides = array<i32>} : memref<224x512xbf16, #tpu.memory_space<vmem>>, vector<16x512xbf16>,
    %c455_i32 = arith.constant 455 : i32
    %169 = tpu.dynamic_rotate %9 by %c455_i32 dim 1 : vector<8x512xf32>, i32 -> vector<8x512xf32>
    %170 = arith.andi %20, %16 : vector<1x512xi1>
    %171 = arith.andi %170, %24 : vector<1x512xi1>
    %cst_46 = arith.constant 0.000000e+00 : f32
    %172 = vector.shape_cast %171 : vector<1x512xi1> to vector<1x512xi1>
    %173 = vector.broadcast %172 : vector<1x512xi1> to vector<8x512xi1>
    %174 = vector.broadcast %cst_46 : f32 to vector<8x512xf32>
    %175 = arith.select %173, %169, %174 : vector<8x512xi1>, vector<8x512xf32>
    %c449_i32 = arith.constant 449 : i32
    %176 = tpu.dynamic_rotate %9 by %c449_i32 dim 1 : vector<8x512xf32>, i32 -> vector<8x512xf32>
    %177 = arith.andi %20, %18 : vector<1x512xi1>
    %cst_47 = arith.constant 0.000000e+00 : f32
    %178 = vector.shape_cast %177 : vector<1x512xi1> to vector<1x512xi1>
    %179 = vector.broadcast %178 : vector<1x512xi1> to vector<8x512xi1>
    %180 = vector.broadcast %cst_47 : f32 to vector<8x512xf32>
    %181 = arith.select %179, %176, %180 : vector<8x512xi1>, vector<8x512xf32>
    %182 = tpu.concatenate %175, %181 in 0 : vector<8x512xf32>, vector<8x512xf32> -> vector<16x512xf32>
    %183 = arith.truncf %182 : vector<16x512xf32> to vector<16x512xbf16>
    %c160 = arith.constant 160 : index
    %c0_48 = arith.constant 0 : index
    %184 = vector.load %arg9[%c160, %c0_48] : memref<224x512xbf16, #tpu.memory_space<vmem>>, vector<16x512xbf16>
    tpu.vector_store %arg9[%c160, %c0_48], %183 {strides = array<i32>} : memref<224x512xbf16, #tpu.memory_space<vmem>>, vector<16x512xbf16>,
    %c448_i32 = arith.constant 448 : i32
    %185 = tpu.dynamic_rotate %9 by %c448_i32 dim 1 : vector<8x512xf32>, i32 -> vector<8x512xf32>
    %cst_49 = arith.constant 0.000000e+00 : f32
    %186 = vector.shape_cast %20 : vector<1x512xi1> to vector<1x512xi1>
    %187 = vector.broadcast %186 : vector<1x512xi1> to vector<8x512xi1>
    %188 = vector.broadcast %cst_49 : f32 to vector<8x512xf32>
    %189 = arith.select %187, %185, %188 : vector<8x512xi1>, vector<8x512xf32>
    %c447_i32 = arith.constant 447 : i32
    %190 = tpu.dynamic_rotate %9 by %c447_i32 dim 1 : vector<8x512xf32>, i32 -> vector<8x512xf32>
    %191 = arith.andi %20, %24 : vector<1x512xi1>
    %cst_50 = arith.constant 0.000000e+00 : f32
    %192 = vector.shape_cast %191 : vector<1x512xi1> to vector<1x512xi1>
    %193 = vector.broadcast %192 : vector<1x512xi1> to vector<8x512xi1>
    %194 = vector.broadcast %cst_50 : f32 to vector<8x512xf32>
    %195 = arith.select %193, %190, %194 : vector<8x512xi1>, vector<8x512xf32>
    %196 = tpu.concatenate %189, %195 in 0 : vector<8x512xf32>, vector<8x512xf32> -> vector<16x512xf32>
    %197 = arith.truncf %196 : vector<16x512xf32> to vector<16x512xbf16>
    %c176 = arith.constant 176 : index
    %c0_51 = arith.constant 0 : index
    %198 = vector.load %arg9[%c176, %c0_51] : memref<224x512xbf16, #tpu.memory_space<vmem>>, vector<16x512xbf16>
    tpu.vector_store %arg9[%c176, %c0_51], %197 {strides = array<i32>} : memref<224x512xbf16, #tpu.memory_space<vmem>>, vector<16x512xbf16>,
    %c441_i32 = arith.constant 441 : i32
    %199 = tpu.dynamic_rotate %9 by %c441_i32 dim 1 : vector<8x512xf32>, i32 -> vector<8x512xf32>
    %200 = arith.andi %20, %22 : vector<1x512xi1>
    %201 = arith.andi %200, %18 : vector<1x512xi1>
    %cst_52 = arith.constant 0.000000e+00 : f32
    %202 = vector.shape_cast %201 : vector<1x512xi1> to vector<1x512xi1>
    %203 = vector.broadcast %202 : vector<1x512xi1> to vector<8x512xi1>
    %204 = vector.broadcast %cst_52 : f32 to vector<8x512xf32>
    %205 = arith.select %203, %199, %204 : vector<8x512xi1>, vector<8x512xf32>
    %c440_i32 = arith.constant 440 : i32
    %206 = tpu.dynamic_rotate %9 by %c440_i32 dim 1 : vector<8x512xf32>, i32 -> vector<8x512xf32>
    %207 = arith.andi %20, %22 : vector<1x512xi1>
    %cst_53 = arith.constant 0.000000e+00 : f32
    %208 = vector.shape_cast %207 : vector<1x512xi1> to vector<1x512xi1>
    %209 = vector.broadcast %208 : vector<1x512xi1> to vector<8x512xi1>
    %210 = vector.broadcast %cst_53 : f32 to vector<8x512xf32>
    %211 = arith.select %209, %206, %210 : vector<8x512xi1>, vector<8x512xf32>
    %212 = tpu.concatenate %205, %211 in 0 : vector<8x512xf32>, vector<8x512xf32> -> vector<16x512xf32>
    %213 = arith.truncf %212 : vector<16x512xf32> to vector<16x512xbf16>
    %c192 = arith.constant 192 : index
    %c0_54 = arith.constant 0 : index
    %214 = vector.load %arg9[%c192, %c0_54] : memref<224x512xbf16, #tpu.memory_space<vmem>>, vector<16x512xbf16>
    tpu.vector_store %arg9[%c192, %c0_54], %213 {strides = array<i32>} : memref<224x512xbf16, #tpu.memory_space<vmem>>, vector<16x512xbf16>,
    %c439_i32 = arith.constant 439 : i32
    %215 = tpu.dynamic_rotate %9 by %c439_i32 dim 1 : vector<8x512xf32>, i32 -> vector<8x512xf32>
    %216 = arith.andi %20, %22 : vector<1x512xi1>
    %217 = arith.andi %216, %24 : vector<1x512xi1>
    %cst_55 = arith.constant 0.000000e+00 : f32
    %218 = vector.shape_cast %217 : vector<1x512xi1> to vector<1x512xi1>
    %219 = vector.broadcast %218 : vector<1x512xi1> to vector<8x512xi1>
    %220 = vector.broadcast %cst_55 : f32 to vector<8x512xf32>
    %221 = arith.select %219, %215, %220 : vector<8x512xi1>, vector<8x512xf32>
    %cst_56 = arith.constant 0.000000e+00 : f32
    %222 = vector.broadcast %cst_56 : f32 to vector<8x512xf32>
    %223 = tpu.concatenate %221, %222 in 0 : vector<8x512xf32>, vector<8x512xf32> -> vector<16x512xf32>
    %224 = arith.truncf %223 : vector<16x512xf32> to vector<16x512xbf16>
    %c208 = arith.constant 208 : index
    %c0_57 = arith.constant 0 : index
    %225 = vector.load %arg9[%c208, %c0_57] : memref<224x512xbf16, #tpu.memory_space<vmem>>, vector<16x512xbf16>
    tpu.vector_store %arg9[%c208, %c0_57], %224 {strides = array<i32>} : memref<224x512xbf16, #tpu.memory_space<vmem>>, vector<16x512xbf16>,
    %c0_58 = arith.constant 0 : index
    %c0_59 = arith.constant 0 : index
    %226 = vector.load %arg4[%c0_58, %c0_59] : memref<8x224xbf16, #tpu.memory_space<vmem>>, vector<8x224xbf16>
    %c0_60 = arith.constant 0 : index
    %c0_61 = arith.constant 0 : index
    %227 = vector.load %arg9[%c0_60, %c0_61] : memref<224x512xbf16, #tpu.memory_space<vmem>>, vector<224x512xbf16>
    %cst_62 = arith.constant dense<0.000000e+00> : vector<8x512xf32>
    %228 = tpu.matmul %226, %227, %cst_62 {dimension_numbers = #tpu.dot_dimension_numbers<[1], [0], [0], [1], [0, 0, 1, 1], [], []>} : vector<8x224xbf16>, vector<224x512xbf16>, vector<8x512xf32> -> vector<8x512xf32>
    %c0_63 = arith.constant 0 : index
    %c0_64 = arith.constant 0 : index
    %229 = vector.load %arg5[%c0_63, %c0_64] : memref<8x1xf32, #tpu.memory_space<vmem>>, vector<8x1xf32>
    %230 = vector.broadcast %229 : vector<8x1xf32> to vector<8x512xf32>
    %231 = arith.addf %228, %230 : vector<8x512xf32>
    %cst_65 = arith.constant dense<0.000000e+00> : vector<8xf32>
    %232 = vector.multi_reduction <add>, %231, %cst_65 [1] : vector<8x512xf32> to vector<8xf32>
    %233 = vector.shape_cast %232 : vector<8xf32> to vector<8x1xf32>
    %234 = arith.mulf %231, %231 : vector<8x512xf32>
    %cst_66 = arith.constant dense<0.000000e+00> : vector<8xf32>
    %235 = vector.multi_reduction <add>, %234, %cst_66 [1] : vector<8x512xf32> to vector<8xf32>
    %236 = vector.shape_cast %235 : vector<8xf32> to vector<8x1xf32>
    %237 = tpu.concatenate %233, %236 in 1 : vector<8x1xf32>, vector<8x1xf32> -> vector<8x2xf32>
    %c0_67 = arith.constant 0 : index
    %c0_68 = arith.constant 0 : index
    %c0_69 = arith.constant 0 : index
    %238 = vector.load %arg8[%c0_67, %c0_68, %c0_69] : memref<1x8x2xf32, #tpu.memory_space<vmem>>, vector<1x8x2xf32>
    %239 = vector.shape_cast %238 : vector<1x8x2xf32> to vector<8x2xf32>
    %240 = vector.shape_cast %237 : vector<8x2xf32> to vector<1x8x2xf32>
    tpu.vector_store %arg8[%c0_67, %c0_68, %c0_69], %240 {strides = array<i32>} : memref<1x8x2xf32, #tpu.memory_space<vmem>>, vector<1x8x2xf32>,
    %c0_70 = arith.constant 0 : index
    %c0_71 = arith.constant 0 : index
    %c0_72 = arith.constant 0 : index
    %241 = vector.load %arg7[%c0_70, %c0_71, %c0_72] : memref<1x8x512xf32, #tpu.memory_space<vmem>>, vector<1x8x512xf32>
    %242 = vector.shape_cast %241 : vector<1x8x512xf32> to vector<8x512xf32>
    %243 = vector.shape_cast %231 : vector<8x512xf32> to vector<1x8x512xf32>
    tpu.vector_store %arg7[%c0_70, %c0_71, %c0_72], %243 {strides = array<i32>} : memref<1x8x512xf32, #tpu.memory_space<vmem>>, vector<1x8x512xf32>,
    return
  }
  func.func @transform_0(%arg0: i32) -> (i32, i32, i32) {
    %c0_i32 = arith.constant 0 : i32
    %c0_i32_0 = arith.constant 0 : i32
    %c0_i32_1 = arith.constant 0 : i32
    return %arg0, %c0_i32, %c0_i32_0 : i32, i32, i32
  }
  func.func @transform_1(%arg0: i32) -> (i32, i32) {
    %c0_i32 = arith.constant 0 : i32
    %c0_i32_0 = arith.constant 0 : i32
    %c0_i32_1 = arith.constant 0 : i32
    return %c0_i32, %c0_i32_0 : i32, i32
  }
  func.func @transform_2(%arg0: i32) -> (i32, i32) {
    %c0_i32 = arith.constant 0 : i32
    %c0_i32_0 = arith.constant 0 : i32
    %c0_i32_1 = arith.constant 0 : i32
    return %c0_i32, %c0_i32_0 : i32, i32
  }
  func.func @transform_3(%arg0: i32) -> (i32, i32) {
    %c0_i32 = arith.constant 0 : i32
    %c0_i32_0 = arith.constant 0 : i32
    %c0_i32_1 = arith.constant 0 : i32
    return %c0_i32, %c0_i32_0 : i32, i32
  }
  func.func @transform_4(%arg0: i32) -> (i32, i32) {
    %c0_i32 = arith.constant 0 : i32
    %c0_i32_0 = arith.constant 0 : i32
    %c0_i32_1 = arith.constant 0 : i32
    return %c0_i32, %c0_i32_0 : i32, i32
  }
  func.func @transform_5(%arg0: i32) -> (i32, i32) {
    %c0_i32 = arith.constant 0 : i32
    %c0_i32_0 = arith.constant 0 : i32
    %c0_i32_1 = arith.constant 0 : i32
    return %c0_i32, %c0_i32_0 : i32, i32
  }
  func.func @transform_6(%arg0: i32) -> (i32, i32, i32) {
    %c0_i32 = arith.constant 0 : i32
    %c0_i32_0 = arith.constant 0 : i32
    %c0_i32_1 = arith.constant 0 : i32
    return %arg0, %c0_i32, %c0_i32_0 : i32, i32, i32
  }
  func.func @transform_7(%arg0: i32) -> (i32, i32, i32) {
    %c0_i32 = arith.constant 0 : i32
    %c0_i32_0 = arith.constant 0 : i32
    %c0_i32_1 = arith.constant 0 : i32
    return %arg0, %c0_i32, %c0_i32_0 : i32, i32, i32
  }
}

module attributes {stable_mosaic.version = 11 : i64} {
  func.func @kernel(%arg0: i32, %arg1: memref<1x8x512xf32, #tpu.memory_space<vmem>>, %arg2: memref<1x8x512xf32, #tpu.memory_space<vmem>>, %arg3: memref<8x1xf32, #tpu.memory_space<vmem>>, %arg4: memref<8x1xf32, #tpu.memory_space<vmem>>, %arg5: memref<8x224xbf16, #tpu.memory_space<vmem>>, %arg6: memref<8x1xf32, #tpu.memory_space<vmem>>, %arg7: memref<3x512xi32, #tpu.memory_space<vmem>>, %arg8: memref<1x8x512xf32, #tpu.memory_space<vmem>>, %arg9: memref<224x512xbf16, #tpu.memory_space<vmem>>) attributes {dimension_semantics = [#tpu.dimension_semantics<parallel>], iteration_bounds = array<i64: 2>, scalar_prefetch = 0 : i64, scratch_operands = 1 : i64, tpu.core_type = #tpu.core_type<tc>, window_params = [{transform_indices = @transform_0, window_bounds = array<i64: 1, 8, 512>}, {transform_indices = @transform_1, window_bounds = array<i64: 1, 8, 512>}, {pipeline_mode = #tpu.pipeline_mode<synchronous>, transform_indices = @transform_2, window_bounds = array<i64: 8, 1>}, {pipeline_mode = #tpu.pipeline_mode<synchronous>, transform_indices = @transform_3, window_bounds = array<i64: 8, 1>}, {pipeline_mode = #tpu.pipeline_mode<synchronous>, transform_indices = @transform_4, window_bounds = array<i64: 8, 224>}, {pipeline_mode = #tpu.pipeline_mode<synchronous>, transform_indices = @transform_5, window_bounds = array<i64: 8, 1>}, {pipeline_mode = #tpu.pipeline_mode<synchronous>, transform_indices = @transform_6, window_bounds = array<i64: 3, 512>}, {transform_indices = @transform_7, window_bounds = array<i64: 1, 8, 512>}]} {
    %c0 = arith.constant 0 : index
    %c0_0 = arith.constant 0 : index
    %c0_1 = arith.constant 0 : index
    %0 = vector.load %arg1[%c0, %c0_0, %c0_1] : memref<1x8x512xf32, #tpu.memory_space<vmem>>, vector<1x8x512xf32>
    %1 = vector.shape_cast %0 : vector<1x8x512xf32> to vector<8x512xf32>
    %c0_2 = arith.constant 0 : index
    %c0_3 = arith.constant 0 : index
    %2 = vector.load %arg3[%c0_2, %c0_3] : memref<8x1xf32, #tpu.memory_space<vmem>>, vector<8x1xf32>
    %3 = vector.broadcast %2 : vector<8x1xf32> to vector<8x512xf32>
    %4 = arith.mulf %1, %3 : vector<8x512xf32>
    %c0_4 = arith.constant 0 : index
    %c0_5 = arith.constant 0 : index
    %5 = vector.load %arg4[%c0_4, %c0_5] : memref<8x1xf32, #tpu.memory_space<vmem>>, vector<8x1xf32>
    %6 = vector.broadcast %5 : vector<8x1xf32> to vector<8x512xf32>
    %7 = arith.addf %4, %6 : vector<8x512xf32>
    %cst = arith.constant 0.000000e+00 : f32
    %8 = vector.broadcast %cst : f32 to vector<8x512xf32>
    %9 = arith.maximumf %7, %8 : vector<8x512xf32>
    %c0_6 = arith.constant 0 : index
    %c0_7 = arith.constant 0 : index
    %10 = vector.load %arg7[%c0_6, %c0_7] : memref<3x512xi32, #tpu.memory_space<vmem>>, vector<1x512xi32>
    %c1 = arith.constant 1 : index
    %c0_8 = arith.constant 0 : index
    %11 = vector.load %arg7[%c1, %c0_8] : memref<3x512xi32, #tpu.memory_space<vmem>>, vector<1x512xi32>
    %c2 = arith.constant 2 : index
    %c0_9 = arith.constant 0 : index
    %12 = vector.load %arg7[%c2, %c0_9] : memref<3x512xi32, #tpu.memory_space<vmem>>, vector<1x512xi32>
    %c1_i32 = arith.constant 1 : i32
    %13 = vector.broadcast %c1_i32 : i32 to vector<1x512xi32>
    %14 = arith.cmpi sge, %10, %13 : vector<1x512xi32>
    %c1_i32_10 = arith.constant 1 : i32
    %15 = vector.broadcast %c1_i32_10 : i32 to vector<1x512xi32>
    %16 = arith.cmpi sge, %11, %15 : vector<1x512xi32>
    %c1_i32_11 = arith.constant 1 : i32
    %17 = vector.broadcast %c1_i32_11 : i32 to vector<1x512xi32>
    %18 = arith.cmpi sge, %12, %17 : vector<1x512xi32>
    %c7_i32 = arith.constant 7 : i32
    %19 = vector.broadcast %c7_i32 : i32 to vector<1x512xi32>
    %20 = arith.cmpi slt, %10, %19 : vector<1x512xi32>
    %c7_i32_12 = arith.constant 7 : i32
    %21 = vector.broadcast %c7_i32_12 : i32 to vector<1x512xi32>
    %22 = arith.cmpi slt, %11, %21 : vector<1x512xi32>
    %c7_i32_13 = arith.constant 7 : i32
    %23 = vector.broadcast %c7_i32_13 : i32 to vector<1x512xi32>
    %24 = arith.cmpi slt, %12, %23 : vector<1x512xi32>
    %c73_i32 = arith.constant 73 : i32
    %25 = tpu.dynamic_rotate %9 by %c73_i32 dim 1 : vector<8x512xf32>, i32 -> vector<8x512xf32>
    %26 = arith.andi %14, %16 : vector<1x512xi1>
    %27 = arith.andi %26, %18 : vector<1x512xi1>
    %cst_14 = arith.constant 0.000000e+00 : f32
    %28 = vector.shape_cast %27 : vector<1x512xi1> to vector<1x512xi1>
    %29 = vector.broadcast %28 : vector<1x512xi1> to vector<8x512xi1>
    %30 = vector.broadcast %cst_14 : f32 to vector<8x512xf32>
    %31 = arith.select %29, %25, %30 : vector<8x512xi1>, vector<8x512xf32>
    %c72_i32 = arith.constant 72 : i32
    %32 = tpu.dynamic_rotate %9 by %c72_i32 dim 1 : vector<8x512xf32>, i32 -> vector<8x512xf32>
    %33 = arith.andi %14, %16 : vector<1x512xi1>
    %cst_15 = arith.constant 0.000000e+00 : f32
    %34 = vector.shape_cast %33 : vector<1x512xi1> to vector<1x512xi1>
    %35 = vector.broadcast %34 : vector<1x512xi1> to vector<8x512xi1>
    %36 = vector.broadcast %cst_15 : f32 to vector<8x512xf32>
    %37 = arith.select %35, %32, %36 : vector<8x512xi1>, vector<8x512xf32>
    %38 = tpu.concatenate %31, %37 in 0 : vector<8x512xf32>, vector<8x512xf32> -> vector<16x512xf32>
    %39 = arith.truncf %38 : vector<16x512xf32> to vector<16x512xbf16>
    %c0_16 = arith.constant 0 : index
    %c0_17 = arith.constant 0 : index
    %40 = vector.load %arg9[%c0_16, %c0_17] : memref<224x512xbf16, #tpu.memory_space<vmem>>, vector<16x512xbf16>
    tpu.vector_store %arg9[%c0_16, %c0_17], %39 {strides = array<i32>} : memref<224x512xbf16, #tpu.memory_space<vmem>>, vector<16x512xbf16>,
    %c71_i32 = arith.constant 71 : i32
    %41 = tpu.dynamic_rotate %9 by %c71_i32 dim 1 : vector<8x512xf32>, i32 -> vector<8x512xf32>
    %42 = arith.andi %14, %16 : vector<1x512xi1>
    %43 = arith.andi %42, %24 : vector<1x512xi1>
    %cst_18 = arith.constant 0.000000e+00 : f32
    %44 = vector.shape_cast %43 : vector<1x512xi1> to vector<1x512xi1>
    %45 = vector.broadcast %44 : vector<1x512xi1> to vector<8x512xi1>
    %46 = vector.broadcast %cst_18 : f32 to vector<8x512xf32>
    %47 = arith.select %45, %41, %46 : vector<8x512xi1>, vector<8x512xf32>
    %c65_i32 = arith.constant 65 : i32
    %48 = tpu.dynamic_rotate %9 by %c65_i32 dim 1 : vector<8x512xf32>, i32 -> vector<8x512xf32>
    %49 = arith.andi %14, %18 : vector<1x512xi1>
    %cst_19 = arith.constant 0.000000e+00 : f32
    %50 = vector.shape_cast %49 : vector<1x512xi1> to vector<1x512xi1>
    %51 = vector.broadcast %50 : vector<1x512xi1> to vector<8x512xi1>
    %52 = vector.broadcast %cst_19 : f32 to vector<8x512xf32>
    %53 = arith.select %51, %48, %52 : vector<8x512xi1>, vector<8x512xf32>
    %54 = tpu.concatenate %47, %53 in 0 : vector<8x512xf32>, vector<8x512xf32> -> vector<16x512xf32>
    %55 = arith.truncf %54 : vector<16x512xf32> to vector<16x512xbf16>
    %c16 = arith.constant 16 : index
    %c0_20 = arith.constant 0 : index
    %56 = vector.load %arg9[%c16, %c0_20] : memref<224x512xbf16, #tpu.memory_space<vmem>>, vector<16x512xbf16>
    tpu.vector_store %arg9[%c16, %c0_20], %55 {strides = array<i32>} : memref<224x512xbf16, #tpu.memory_space<vmem>>, vector<16x512xbf16>,
    %c64_i32 = arith.constant 64 : i32
    %57 = tpu.dynamic_rotate %9 by %c64_i32 dim 1 : vector<8x512xf32>, i32 -> vector<8x512xf32>
    %cst_21 = arith.constant 0.000000e+00 : f32
    %58 = vector.shape_cast %14 : vector<1x512xi1> to vector<1x512xi1>
    %59 = vector.broadcast %58 : vector<1x512xi1> to vector<8x512xi1>
    %60 = vector.broadcast %cst_21 : f32 to vector<8x512xf32>
    %61 = arith.select %59, %57, %60 : vector<8x512xi1>, vector<8x512xf32>
    %c63_i32 = arith.constant 63 : i32
    %62 = tpu.dynamic_rotate %9 by %c63_i32 dim 1 : vector<8x512xf32>, i32 -> vector<8x512xf32>
    %63 = arith.andi %14, %24 : vector<1x512xi1>
    %cst_22 = arith.constant 0.000000e+00 : f32
    %64 = vector.shape_cast %63 : vector<1x512xi1> to vector<1x512xi1>
    %65 = vector.broadcast %64 : vector<1x512xi1> to vector<8x512xi1>
    %66 = vector.broadcast %cst_22 : f32 to vector<8x512xf32>
    %67 = arith.select %65, %62, %66 : vector<8x512xi1>, vector<8x512xf32>
    %68 = tpu.concatenate %61, %67 in 0 : vector<8x512xf32>, vector<8x512xf32> -> vector<16x512xf32>
    %69 = arith.truncf %68 : vector<16x512xf32> to vector<16x512xbf16>
    %c32 = arith.constant 32 : index
    %c0_23 = arith.constant 0 : index
    %70 = vector.load %arg9[%c32, %c0_23] : memref<224x512xbf16, #tpu.memory_space<vmem>>, vector<16x512xbf16>
    tpu.vector_store %arg9[%c32, %c0_23], %69 {strides = array<i32>} : memref<224x512xbf16, #tpu.memory_space<vmem>>, vector<16x512xbf16>,
    %c57_i32 = arith.constant 57 : i32
    %71 = tpu.dynamic_rotate %9 by %c57_i32 dim 1 : vector<8x512xf32>, i32 -> vector<8x512xf32>
    %72 = arith.andi %14, %22 : vector<1x512xi1>
    %73 = arith.andi %72, %18 : vector<1x512xi1>
    %cst_24 = arith.constant 0.000000e+00 : f32
    %74 = vector.shape_cast %73 : vector<1x512xi1> to vector<1x512xi1>
    %75 = vector.broadcast %74 : vector<1x512xi1> to vector<8x512xi1>
    %76 = vector.broadcast %cst_24 : f32 to vector<8x512xf32>
    %77 = arith.select %75, %71, %76 : vector<8x512xi1>, vector<8x512xf32>
    %c56_i32 = arith.constant 56 : i32
    %78 = tpu.dynamic_rotate %9 by %c56_i32 dim 1 : vector<8x512xf32>, i32 -> vector<8x512xf32>
    %79 = arith.andi %14, %22 : vector<1x512xi1>
    %cst_25 = arith.constant 0.000000e+00 : f32
    %80 = vector.shape_cast %79 : vector<1x512xi1> to vector<1x512xi1>
    %81 = vector.broadcast %80 : vector<1x512xi1> to vector<8x512xi1>
    %82 = vector.broadcast %cst_25 : f32 to vector<8x512xf32>
    %83 = arith.select %81, %78, %82 : vector<8x512xi1>, vector<8x512xf32>
    %84 = tpu.concatenate %77, %83 in 0 : vector<8x512xf32>, vector<8x512xf32> -> vector<16x512xf32>
    %85 = arith.truncf %84 : vector<16x512xf32> to vector<16x512xbf16>
    %c48 = arith.constant 48 : index
    %c0_26 = arith.constant 0 : index
    %86 = vector.load %arg9[%c48, %c0_26] : memref<224x512xbf16, #tpu.memory_space<vmem>>, vector<16x512xbf16>
    tpu.vector_store %arg9[%c48, %c0_26], %85 {strides = array<i32>} : memref<224x512xbf16, #tpu.memory_space<vmem>>, vector<16x512xbf16>,
    %c55_i32 = arith.constant 55 : i32
    %87 = tpu.dynamic_rotate %9 by %c55_i32 dim 1 : vector<8x512xf32>, i32 -> vector<8x512xf32>
    %88 = arith.andi %14, %22 : vector<1x512xi1>
    %89 = arith.andi %88, %24 : vector<1x512xi1>
    %cst_27 = arith.constant 0.000000e+00 : f32
    %90 = vector.shape_cast %89 : vector<1x512xi1> to vector<1x512xi1>
    %91 = vector.broadcast %90 : vector<1x512xi1> to vector<8x512xi1>
    %92 = vector.broadcast %cst_27 : f32 to vector<8x512xf32>
    %93 = arith.select %91, %87, %92 : vector<8x512xi1>, vector<8x512xf32>
    %c9_i32 = arith.constant 9 : i32
    %94 = tpu.dynamic_rotate %9 by %c9_i32 dim 1 : vector<8x512xf32>, i32 -> vector<8x512xf32>
    %95 = arith.andi %16, %18 : vector<1x512xi1>
    %cst_28 = arith.constant 0.000000e+00 : f32
    %96 = vector.shape_cast %95 : vector<1x512xi1> to vector<1x512xi1>
    %97 = vector.broadcast %96 : vector<1x512xi1> to vector<8x512xi1>
    %98 = vector.broadcast %cst_28 : f32 to vector<8x512xf32>
    %99 = arith.select %97, %94, %98 : vector<8x512xi1>, vector<8x512xf32>
    %100 = tpu.concatenate %93, %99 in 0 : vector<8x512xf32>, vector<8x512xf32> -> vector<16x512xf32>
    %101 = arith.truncf %100 : vector<16x512xf32> to vector<16x512xbf16>
    %c64 = arith.constant 64 : index
    %c0_29 = arith.constant 0 : index
    %102 = vector.load %arg9[%c64, %c0_29] : memref<224x512xbf16, #tpu.memory_space<vmem>>, vector<16x512xbf16>
    tpu.vector_store %arg9[%c64, %c0_29], %101 {strides = array<i32>} : memref<224x512xbf16, #tpu.memory_space<vmem>>, vector<16x512xbf16>,
    %c8_i32 = arith.constant 8 : i32
    %103 = tpu.dynamic_rotate %9 by %c8_i32 dim 1 : vector<8x512xf32>, i32 -> vector<8x512xf32>
    %cst_30 = arith.constant 0.000000e+00 : f32
    %104 = vector.shape_cast %16 : vector<1x512xi1> to vector<1x512xi1>
    %105 = vector.broadcast %104 : vector<1x512xi1> to vector<8x512xi1>
    %106 = vector.broadcast %cst_30 : f32 to vector<8x512xf32>
    %107 = arith.select %105, %103, %106 : vector<8x512xi1>, vector<8x512xf32>
    %c7_i32_31 = arith.constant 7 : i32
    %108 = tpu.dynamic_rotate %9 by %c7_i32_31 dim 1 : vector<8x512xf32>, i32 -> vector<8x512xf32>
    %109 = arith.andi %16, %24 : vector<1x512xi1>
    %cst_32 = arith.constant 0.000000e+00 : f32
    %110 = vector.shape_cast %109 : vector<1x512xi1> to vector<1x512xi1>
    %111 = vector.broadcast %110 : vector<1x512xi1> to vector<8x512xi1>
    %112 = vector.broadcast %cst_32 : f32 to vector<8x512xf32>
    %113 = arith.select %111, %108, %112 : vector<8x512xi1>, vector<8x512xf32>
    %114 = tpu.concatenate %107, %113 in 0 : vector<8x512xf32>, vector<8x512xf32> -> vector<16x512xf32>
    %115 = arith.truncf %114 : vector<16x512xf32> to vector<16x512xbf16>
    %c80 = arith.constant 80 : index
    %c0_33 = arith.constant 0 : index
    %116 = vector.load %arg9[%c80, %c0_33] : memref<224x512xbf16, #tpu.memory_space<vmem>>, vector<16x512xbf16>
    tpu.vector_store %arg9[%c80, %c0_33], %115 {strides = array<i32>} : memref<224x512xbf16, #tpu.memory_space<vmem>>, vector<16x512xbf16>,
    %c1_i32_34 = arith.constant 1 : i32
    %117 = tpu.dynamic_rotate %9 by %c1_i32_34 dim 1 : vector<8x512xf32>, i32 -> vector<8x512xf32>
    %cst_35 = arith.constant 0.000000e+00 : f32
    %118 = vector.shape_cast %18 : vector<1x512xi1> to vector<1x512xi1>
    %119 = vector.broadcast %118 : vector<1x512xi1> to vector<8x512xi1>
    %120 = vector.broadcast %cst_35 : f32 to vector<8x512xf32>
    %121 = arith.select %119, %117, %120 : vector<8x512xi1>, vector<8x512xf32>
    %122 = tpu.concatenate %121, %9 in 0 : vector<8x512xf32>, vector<8x512xf32> -> vector<16x512xf32>
    %123 = arith.truncf %122 : vector<16x512xf32> to vector<16x512xbf16>
    %c96 = arith.constant 96 : index
    %c0_36 = arith.constant 0 : index
    %124 = vector.load %arg9[%c96, %c0_36] : memref<224x512xbf16, #tpu.memory_space<vmem>>, vector<16x512xbf16>
    tpu.vector_store %arg9[%c96, %c0_36], %123 {strides = array<i32>} : memref<224x512xbf16, #tpu.memory_space<vmem>>, vector<16x512xbf16>,
    %c511_i32 = arith.constant 511 : i32
    %125 = tpu.dynamic_rotate %9 by %c511_i32 dim 1 : vector<8x512xf32>, i32 -> vector<8x512xf32>
    %cst_37 = arith.constant 0.000000e+00 : f32
    %126 = vector.shape_cast %24 : vector<1x512xi1> to vector<1x512xi1>
    %127 = vector.broadcast %126 : vector<1x512xi1> to vector<8x512xi1>
    %128 = vector.broadcast %cst_37 : f32 to vector<8x512xf32>
    %129 = arith.select %127, %125, %128 : vector<8x512xi1>, vector<8x512xf32>
    %c505_i32 = arith.constant 505 : i32
    %130 = tpu.dynamic_rotate %9 by %c505_i32 dim 1 : vector<8x512xf32>, i32 -> vector<8x512xf32>
    %131 = arith.andi %22, %18 : vector<1x512xi1>
    %cst_38 = arith.constant 0.000000e+00 : f32
    %132 = vector.shape_cast %131 : vector<1x512xi1> to vector<1x512xi1>
    %133 = vector.broadcast %132 : vector<1x512xi1> to vector<8x512xi1>
    %134 = vector.broadcast %cst_38 : f32 to vector<8x512xf32>
    %135 = arith.select %133, %130, %134 : vector<8x512xi1>, vector<8x512xf32>
    %136 = tpu.concatenate %129, %135 in 0 : vector<8x512xf32>, vector<8x512xf32> -> vector<16x512xf32>
    %137 = arith.truncf %136 : vector<16x512xf32> to vector<16x512xbf16>
    %c112 = arith.constant 112 : index
    %c0_39 = arith.constant 0 : index
    %138 = vector.load %arg9[%c112, %c0_39] : memref<224x512xbf16, #tpu.memory_space<vmem>>, vector<16x512xbf16>
    tpu.vector_store %arg9[%c112, %c0_39], %137 {strides = array<i32>} : memref<224x512xbf16, #tpu.memory_space<vmem>>, vector<16x512xbf16>,
    %c504_i32 = arith.constant 504 : i32
    %139 = tpu.dynamic_rotate %9 by %c504_i32 dim 1 : vector<8x512xf32>, i32 -> vector<8x512xf32>
    %cst_40 = arith.constant 0.000000e+00 : f32
    %140 = vector.shape_cast %22 : vector<1x512xi1> to vector<1x512xi1>
    %141 = vector.broadcast %140 : vector<1x512xi1> to vector<8x512xi1>
    %142 = vector.broadcast %cst_40 : f32 to vector<8x512xf32>
    %143 = arith.select %141, %139, %142 : vector<8x512xi1>, vector<8x512xf32>
    %c503_i32 = arith.constant 503 : i32
    %144 = tpu.dynamic_rotate %9 by %c503_i32 dim 1 : vector<8x512xf32>, i32 -> vector<8x512xf32>
    %145 = arith.andi %22, %24 : vector<1x512xi1>
    %cst_41 = arith.constant 0.000000e+00 : f32
    %146 = vector.shape_cast %145 : vector<1x512xi1> to vector<1x512xi1>
    %147 = vector.broadcast %146 : vector<1x512xi1> to vector<8x512xi1>
    %148 = vector.broadcast %cst_41 : f32 to vector<8x512xf32>
    %149 = arith.select %147, %144, %148 : vector<8x512xi1>, vector<8x512xf32>
    %150 = tpu.concatenate %143, %149 in 0 : vector<8x512xf32>, vector<8x512xf32> -> vector<16x512xf32>
    %151 = arith.truncf %150 : vector<16x512xf32> to vector<16x512xbf16>
    %c128 = arith.constant 128 : index
    %c0_42 = arith.constant 0 : index
    %152 = vector.load %arg9[%c128, %c0_42] : memref<224x512xbf16, #tpu.memory_space<vmem>>, vector<16x512xbf16>
    tpu.vector_store %arg9[%c128, %c0_42], %151 {strides = array<i32>} : memref<224x512xbf16, #tpu.memory_space<vmem>>, vector<16x512xbf16>,
    %c457_i32 = arith.constant 457 : i32
    %153 = tpu.dynamic_rotate %9 by %c457_i32 dim 1 : vector<8x512xf32>, i32 -> vector<8x512xf32>
    %154 = arith.andi %20, %16 : vector<1x512xi1>
    %155 = arith.andi %154, %18 : vector<1x512xi1>
    %cst_43 = arith.constant 0.000000e+00 : f32
    %156 = vector.shape_cast %155 : vector<1x512xi1> to vector<1x512xi1>
    %157 = vector.broadcast %156 : vector<1x512xi1> to vector<8x512xi1>
    %158 = vector.broadcast %cst_43 : f32 to vector<8x512xf32>
    %159 = arith.select %157, %153, %158 : vector<8x512xi1>, vector<8x512xf32>
    %c456_i32 = arith.constant 456 : i32
    %160 = tpu.dynamic_rotate %9 by %c456_i32 dim 1 : vector<8x512xf32>, i32 -> vector<8x512xf32>
    %161 = arith.andi %20, %16 : vector<1x512xi1>
    %cst_44 = arith.constant 0.000000e+00 : f32
    %162 = vector.shape_cast %161 : vector<1x512xi1> to vector<1x512xi1>
    %163 = vector.broadcast %162 : vector<1x512xi1> to vector<8x512xi1>
    %164 = vector.broadcast %cst_44 : f32 to vector<8x512xf32>
    %165 = arith.select %163, %160, %164 : vector<8x512xi1>, vector<8x512xf32>
    %166 = tpu.concatenate %159, %165 in 0 : vector<8x512xf32>, vector<8x512xf32> -> vector<16x512xf32>
    %167 = arith.truncf %166 : vector<16x512xf32> to vector<16x512xbf16>
    %c144 = arith.constant 144 : index
    %c0_45 = arith.constant 0 : index
    %168 = vector.load %arg9[%c144, %c0_45] : memref<224x512xbf16, #tpu.memory_space<vmem>>, vector<16x512xbf16>
    tpu.vector_store %arg9[%c144, %c0_45], %167 {strides = array<i32>} : memref<224x512xbf16, #tpu.memory_space<vmem>>, vector<16x512xbf16>,
    %c455_i32 = arith.constant 455 : i32
    %169 = tpu.dynamic_rotate %9 by %c455_i32 dim 1 : vector<8x512xf32>, i32 -> vector<8x512xf32>
    %170 = arith.andi %20, %16 : vector<1x512xi1>
    %171 = arith.andi %170, %24 : vector<1x512xi1>
    %cst_46 = arith.constant 0.000000e+00 : f32
    %172 = vector.shape_cast %171 : vector<1x512xi1> to vector<1x512xi1>
    %173 = vector.broadcast %172 : vector<1x512xi1> to vector<8x512xi1>
    %174 = vector.broadcast %cst_46 : f32 to vector<8x512xf32>
    %175 = arith.select %173, %169, %174 : vector<8x512xi1>, vector<8x512xf32>
    %c449_i32 = arith.constant 449 : i32
    %176 = tpu.dynamic_rotate %9 by %c449_i32 dim 1 : vector<8x512xf32>, i32 -> vector<8x512xf32>
    %177 = arith.andi %20, %18 : vector<1x512xi1>
    %cst_47 = arith.constant 0.000000e+00 : f32
    %178 = vector.shape_cast %177 : vector<1x512xi1> to vector<1x512xi1>
    %179 = vector.broadcast %178 : vector<1x512xi1> to vector<8x512xi1>
    %180 = vector.broadcast %cst_47 : f32 to vector<8x512xf32>
    %181 = arith.select %179, %176, %180 : vector<8x512xi1>, vector<8x512xf32>
    %182 = tpu.concatenate %175, %181 in 0 : vector<8x512xf32>, vector<8x512xf32> -> vector<16x512xf32>
    %183 = arith.truncf %182 : vector<16x512xf32> to vector<16x512xbf16>
    %c160 = arith.constant 160 : index
    %c0_48 = arith.constant 0 : index
    %184 = vector.load %arg9[%c160, %c0_48] : memref<224x512xbf16, #tpu.memory_space<vmem>>, vector<16x512xbf16>
    tpu.vector_store %arg9[%c160, %c0_48], %183 {strides = array<i32>} : memref<224x512xbf16, #tpu.memory_space<vmem>>, vector<16x512xbf16>,
    %c448_i32 = arith.constant 448 : i32
    %185 = tpu.dynamic_rotate %9 by %c448_i32 dim 1 : vector<8x512xf32>, i32 -> vector<8x512xf32>
    %cst_49 = arith.constant 0.000000e+00 : f32
    %186 = vector.shape_cast %20 : vector<1x512xi1> to vector<1x512xi1>
    %187 = vector.broadcast %186 : vector<1x512xi1> to vector<8x512xi1>
    %188 = vector.broadcast %cst_49 : f32 to vector<8x512xf32>
    %189 = arith.select %187, %185, %188 : vector<8x512xi1>, vector<8x512xf32>
    %c447_i32 = arith.constant 447 : i32
    %190 = tpu.dynamic_rotate %9 by %c447_i32 dim 1 : vector<8x512xf32>, i32 -> vector<8x512xf32>
    %191 = arith.andi %20, %24 : vector<1x512xi1>
    %cst_50 = arith.constant 0.000000e+00 : f32
    %192 = vector.shape_cast %191 : vector<1x512xi1> to vector<1x512xi1>
    %193 = vector.broadcast %192 : vector<1x512xi1> to vector<8x512xi1>
    %194 = vector.broadcast %cst_50 : f32 to vector<8x512xf32>
    %195 = arith.select %193, %190, %194 : vector<8x512xi1>, vector<8x512xf32>
    %196 = tpu.concatenate %189, %195 in 0 : vector<8x512xf32>, vector<8x512xf32> -> vector<16x512xf32>
    %197 = arith.truncf %196 : vector<16x512xf32> to vector<16x512xbf16>
    %c176 = arith.constant 176 : index
    %c0_51 = arith.constant 0 : index
    %198 = vector.load %arg9[%c176, %c0_51] : memref<224x512xbf16, #tpu.memory_space<vmem>>, vector<16x512xbf16>
    tpu.vector_store %arg9[%c176, %c0_51], %197 {strides = array<i32>} : memref<224x512xbf16, #tpu.memory_space<vmem>>, vector<16x512xbf16>,
    %c441_i32 = arith.constant 441 : i32
    %199 = tpu.dynamic_rotate %9 by %c441_i32 dim 1 : vector<8x512xf32>, i32 -> vector<8x512xf32>
    %200 = arith.andi %20, %22 : vector<1x512xi1>
    %201 = arith.andi %200, %18 : vector<1x512xi1>
    %cst_52 = arith.constant 0.000000e+00 : f32
    %202 = vector.shape_cast %201 : vector<1x512xi1> to vector<1x512xi1>
    %203 = vector.broadcast %202 : vector<1x512xi1> to vector<8x512xi1>
    %204 = vector.broadcast %cst_52 : f32 to vector<8x512xf32>
    %205 = arith.select %203, %199, %204 : vector<8x512xi1>, vector<8x512xf32>
    %c440_i32 = arith.constant 440 : i32
    %206 = tpu.dynamic_rotate %9 by %c440_i32 dim 1 : vector<8x512xf32>, i32 -> vector<8x512xf32>
    %207 = arith.andi %20, %22 : vector<1x512xi1>
    %cst_53 = arith.constant 0.000000e+00 : f32
    %208 = vector.shape_cast %207 : vector<1x512xi1> to vector<1x512xi1>
    %209 = vector.broadcast %208 : vector<1x512xi1> to vector<8x512xi1>
    %210 = vector.broadcast %cst_53 : f32 to vector<8x512xf32>
    %211 = arith.select %209, %206, %210 : vector<8x512xi1>, vector<8x512xf32>
    %212 = tpu.concatenate %205, %211 in 0 : vector<8x512xf32>, vector<8x512xf32> -> vector<16x512xf32>
    %213 = arith.truncf %212 : vector<16x512xf32> to vector<16x512xbf16>
    %c192 = arith.constant 192 : index
    %c0_54 = arith.constant 0 : index
    %214 = vector.load %arg9[%c192, %c0_54] : memref<224x512xbf16, #tpu.memory_space<vmem>>, vector<16x512xbf16>
    tpu.vector_store %arg9[%c192, %c0_54], %213 {strides = array<i32>} : memref<224x512xbf16, #tpu.memory_space<vmem>>, vector<16x512xbf16>,
    %c439_i32 = arith.constant 439 : i32
    %215 = tpu.dynamic_rotate %9 by %c439_i32 dim 1 : vector<8x512xf32>, i32 -> vector<8x512xf32>
    %216 = arith.andi %20, %22 : vector<1x512xi1>
    %217 = arith.andi %216, %24 : vector<1x512xi1>
    %cst_55 = arith.constant 0.000000e+00 : f32
    %218 = vector.shape_cast %217 : vector<1x512xi1> to vector<1x512xi1>
    %219 = vector.broadcast %218 : vector<1x512xi1> to vector<8x512xi1>
    %220 = vector.broadcast %cst_55 : f32 to vector<8x512xf32>
    %221 = arith.select %219, %215, %220 : vector<8x512xi1>, vector<8x512xf32>
    %cst_56 = arith.constant 0.000000e+00 : f32
    %222 = vector.broadcast %cst_56 : f32 to vector<8x512xf32>
    %223 = tpu.concatenate %221, %222 in 0 : vector<8x512xf32>, vector<8x512xf32> -> vector<16x512xf32>
    %224 = arith.truncf %223 : vector<16x512xf32> to vector<16x512xbf16>
    %c208 = arith.constant 208 : index
    %c0_57 = arith.constant 0 : index
    %225 = vector.load %arg9[%c208, %c0_57] : memref<224x512xbf16, #tpu.memory_space<vmem>>, vector<16x512xbf16>
    tpu.vector_store %arg9[%c208, %c0_57], %224 {strides = array<i32>} : memref<224x512xbf16, #tpu.memory_space<vmem>>, vector<16x512xbf16>,
    %c0_58 = arith.constant 0 : index
    %c0_59 = arith.constant 0 : index
    %226 = vector.load %arg5[%c0_58, %c0_59] : memref<8x224xbf16, #tpu.memory_space<vmem>>, vector<8x224xbf16>
    %c0_60 = arith.constant 0 : index
    %c0_61 = arith.constant 0 : index
    %227 = vector.load %arg9[%c0_60, %c0_61] : memref<224x512xbf16, #tpu.memory_space<vmem>>, vector<224x512xbf16>
    %cst_62 = arith.constant dense<0.000000e+00> : vector<8x512xf32>
    %228 = tpu.matmul %226, %227, %cst_62 {dimension_numbers = #tpu.dot_dimension_numbers<[1], [0], [0], [1], [0, 0, 1, 1], [], []>} : vector<8x224xbf16>, vector<224x512xbf16>, vector<8x512xf32> -> vector<8x512xf32>
    %c0_63 = arith.constant 0 : index
    %c0_64 = arith.constant 0 : index
    %229 = vector.load %arg6[%c0_63, %c0_64] : memref<8x1xf32, #tpu.memory_space<vmem>>, vector<8x1xf32>
    %230 = vector.broadcast %229 : vector<8x1xf32> to vector<8x512xf32>
    %231 = arith.addf %228, %230 : vector<8x512xf32>
    %c0_65 = arith.constant 0 : index
    %c0_66 = arith.constant 0 : index
    %c0_67 = arith.constant 0 : index
    %232 = vector.load %arg2[%c0_65, %c0_66, %c0_67] : memref<1x8x512xf32, #tpu.memory_space<vmem>>, vector<1x8x512xf32>
    %233 = vector.shape_cast %232 : vector<1x8x512xf32> to vector<8x512xf32>
    %234 = arith.addf %231, %233 : vector<8x512xf32>
    %c0_68 = arith.constant 0 : index
    %c0_69 = arith.constant 0 : index
    %c0_70 = arith.constant 0 : index
    %235 = vector.load %arg8[%c0_68, %c0_69, %c0_70] : memref<1x8x512xf32, #tpu.memory_space<vmem>>, vector<1x8x512xf32>
    %236 = vector.shape_cast %235 : vector<1x8x512xf32> to vector<8x512xf32>
    %237 = vector.shape_cast %234 : vector<8x512xf32> to vector<1x8x512xf32>
    tpu.vector_store %arg8[%c0_68, %c0_69, %c0_70], %237 {strides = array<i32>} : memref<1x8x512xf32, #tpu.memory_space<vmem>>, vector<1x8x512xf32>,
    return
  }
  func.func @transform_0(%arg0: i32) -> (i32, i32, i32) {
    %c0_i32 = arith.constant 0 : i32
    %c0_i32_0 = arith.constant 0 : i32
    %c0_i32_1 = arith.constant 0 : i32
    return %arg0, %c0_i32, %c0_i32_0 : i32, i32, i32
  }
  func.func @transform_1(%arg0: i32) -> (i32, i32, i32) {
    %c0_i32 = arith.constant 0 : i32
    %c0_i32_0 = arith.constant 0 : i32
    %c0_i32_1 = arith.constant 0 : i32
    return %arg0, %c0_i32, %c0_i32_0 : i32, i32, i32
  }
  func.func @transform_2(%arg0: i32) -> (i32, i32) {
    %c0_i32 = arith.constant 0 : i32
    %c0_i32_0 = arith.constant 0 : i32
    %c0_i32_1 = arith.constant 0 : i32
    return %c0_i32, %c0_i32_0 : i32, i32
  }
  func.func @transform_3(%arg0: i32) -> (i32, i32) {
    %c0_i32 = arith.constant 0 : i32
    %c0_i32_0 = arith.constant 0 : i32
    %c0_i32_1 = arith.constant 0 : i32
    return %c0_i32, %c0_i32_0 : i32, i32
  }
  func.func @transform_4(%arg0: i32) -> (i32, i32) {
    %c0_i32 = arith.constant 0 : i32
    %c0_i32_0 = arith.constant 0 : i32
    %c0_i32_1 = arith.constant 0 : i32
    return %c0_i32, %c0_i32_0 : i32, i32
  }
  func.func @transform_5(%arg0: i32) -> (i32, i32) {
    %c0_i32 = arith.constant 0 : i32
    %c0_i32_0 = arith.constant 0 : i32
    %c0_i32_1 = arith.constant 0 : i32
    return %c0_i32, %c0_i32_0 : i32, i32
  }
  func.func @transform_6(%arg0: i32) -> (i32, i32) {
    %c0_i32 = arith.constant 0 : i32
    %c0_i32_0 = arith.constant 0 : i32
    %c0_i32_1 = arith.constant 0 : i32
    return %c0_i32, %c0_i32_0 : i32, i32
  }
  func.func @transform_7(%arg0: i32) -> (i32, i32, i32) {
    %c0_i32 = arith.constant 0 : i32
    %c0_i32_0 = arith.constant 0 : i32
    %c0_i32_1 = arith.constant 0 : i32
    return %arg0, %c0_i32, %c0_i32_0 : i32, i32, i32
  }
}

</mosaic_0001>

<bundles_post_ra>
// kernel: voxres_module_forward.2
= control target key start
LH: loop header
LB: loop body
LE: loop exit
PB: predicated region body
PF: predicated region fallthrough
CT: control target
= control target key end

     0   :  { %s2052_s24 = smov 0   ;;  %s3829_s0 = inlined_call_operand.vmem [shape: f32[2,8,512], index: 0, kind: input, shape index: {}]   ;;  %s3830_s1 = inlined_call_operand.vmem [shape: f32[8,1], index: 1, kind: input, shape index: {}]   ;;  %s3831_s2 = inlined_call_operand.vmem [shape: f32[8,1], index: 2, kind: input, shape index: {}]   ;;  %s3832_s3 = inlined_call_operand.vmem [shape: bf16[8,224], index: 3, kind: input, shape index: {}]   ;;  %s3833_s4 = inlined_call_operand.vmem [shape: f32[8,1], index: 4, kind: input, shape index: {}]   ;;  %s3834_s5 = inlined_call_operand.vmem [shape: s32[3,512], index: 5, kind: input, shape index: {}]   ;;  %s3835_s6 = inlined_call_operand.vmem [shape: f32[2,8,512], index: 6, kind: output, shape index: {0}]   ;;  %s3836_s7 = inlined_call_operand.vmem [shape: f32[2,8,2], index: 7, kind: output, shape index: {1}]  }
   0x1 LB: > { %s1598_s25 = sadd.s32 4294967295, %s1990_s24   ;;  %p1602_p0 = scmp.ge.s32.totalorder %s1990_s24, 1  ;;  %s1990_s24 = sphi %s2052_s24, %s18_s24  }
   0x2   : > { %p240_p1 = scmp.lt.s32.totalorder %s1990_s24, 3 }
   0x4   : > { %p241_p2 = pnand %p1602_p0, %p240_p1 }
   0x6   : > { %244 = sbr.rel (%p241_p2) target bundleno = 795 (0x31b), region = 44 }
   0xd   : > { %v295_v0 = vld [vmem:[%s3830_s1] sm:$0xff]  ;;  %v3852_v1 = vmov 0   ;;  %p276_p3 = scmp.lt.s32.totalorder %s1598_s25, 1  ;;  %s1993_s11 = smov 73   ;;  %vm1404_vm0 = vcmask 785408   ;;  %v338_v31 = vlaneseq }
   0xe   : > { %1814 = vset.pattern.permute.xlu0 %v3852_v1  ;;  %1980 = vset.pattern.permute.xlu1 %v3852_v1  ;;  %v305_v2 = vld [vmem:[%s3831_s2] sm:$0xff]  ;;  %s1994_s12 = smov 71   ;;  %s1995_s13 = smov 72  }
   0xf   : > { %298 = vperm.xlu0 %1814, %v295_v0   ;;  %s4405_s25 = smov (!%p276_p3, %s1598_s25), 1  ;;  %s1996_s14 = smov 64   ;;  %v1335_v25 = vld [vmem:[%s3832_s3] sm:$0xff]  ;;  %v349_v32 = vshrl.u32 %v338_v31, 7  ;;  %v2141_v39 = vand.u32 127, %v338_v31 }
  0x10   : > { %s1616_s30 = sshll.u32 %s4405_s25, 5  ;;  %s1997_s15 = smov 65   ;;  %v1611_v26 = vcombine.high %v1335_v25, %v1335_v25  ;;  %v1392_v27 = vld [vmem:[%s3833_s4] sm:$0xff] }
  0x11   : > { %s280_s10 = scalar_lea.vmem %s3829_s0, %s1616_s30  ;;  %s1998_s16 = smov 57   ;;  %v2103_v28 = vld [vmem:[%s3834_s5] ss:$4 sm:$0xf]  ;;  %v2125_v33 = vsub.s32 1, %v349_v32  ;;  %v2132_v35 = vsub.s32 0, %v349_v32 }
  0x12   : > { %v291_v3 = vld [vmem:[%s280_s10] sm:$0xff]  ;;  %v292_v5 = vld [vmem:[%s280_s10 + $0x8] sm:$0xff]  ;;  %v293_v6 = vld [vmem:[%s280_s10 + $0x10] sm:$0xff]  ;;  %s1999_s17 = smov 63   ;;  %s2000_s18 = smov 55   ;;  %1612 = vmatprep.mubr.msk.bf16.mxu0 %vm1404_vm0, %v1611_v26  ;;  %1613 = vmatprep.mubr.msk.bf16.mxu1 %vm1404_vm0, %v1611_v26  ;;  %vm324_vm1 = vcmp.ge.s32.totalorder %v2103_v28, 1 }
  0x13   : > { %308 = vperm.xlu0 %1814, %v305_v2   ;;  %v294_v7 = vld [vmem:[%s280_s10 + $0x18] sm:$0xff]  ;;  %s2001_s19 = smov 56   ;;  %s2002_s20 = smov 8   ;;  %v2108_v29 = vld [vmem:[%s3834_s5 + $0x1] ss:$4 sm:$0xf] }
  0x14   : > { %s2003_s21 = smov 9   ;;  %s2004_s22 = smov 1   ;;  %v2113_v30 = vld [vmem:[%s3834_s5 + $0x2] ss:$4 sm:$0xf]  ;;  %vm3838_vm2 = vcmp.ge.s32.totalorder %v2108_v29, 1 }
  0x15   : > { %s2005_s23 = smov 7   ;;  %s2006_s26 = smov 127   ;;  %vm3840_vm3 = vcmp.ge.s32.totalorder %v2113_v30, 1  ;;  %vm345_vm4 = vmand %vm324_vm1, %vm3838_vm2  ;;  %vm3839_vm5 = vcmp.lt.s32.totalorder %v2113_v30, 7  ;;  %v2134_v36 = vsub.s32 3, %v349_v32  ;;  %v2139_v38 = vsub.s32 2, %v349_v32 }
  0x16   : > { %s2007_s27 = smov 120   ;;  %s2008_s28 = smov 121   ;;  %vm346_vm6 = vmand %vm345_vm4, %vm3840_vm3  ;;  %v385_v37 = vsel %vm345_vm4, 1, %v3852_v1  ;;  %vm3837_vm9 = vcmp.lt.s32.totalorder %v2108_v29, 7 }
  0x17   : > { %s2009_s29 = smov 119   ;;  %vm470_vm7 = vmand %vm324_vm1, %vm3840_vm3  ;;  %v347_v34 = vsel %vm346_vm6, 1, %v3852_v1  ;;  %v393_v41 = vrot.slane %v385_v37, %v2125_v33  ;;  %v389_v45 = vrot.slane %v385_v37, %v2132_v35  ;;  %v401_v47 = vrot.slane %v385_v37, %v2134_v36 }
  0x18   : > { %vm431_vm8 = vmand %vm345_vm4, %vm3839_vm5  ;;  %v355_v40 = vrot.slane %v347_v34, %v2125_v33  ;;  %v2149_v43 = vsel %vm470_vm7, 1, %v3852_v1  ;;  %v351_v44 = vrot.slane %v347_v34, %v2132_v35  ;;  %v363_v46 = vrot.slane %v347_v34, %v2134_v36 }
  0x19   : > { %v2146_v42 = vsel %vm431_vm8, 1, %v3852_v1  ;;  %v359_v48 = vrot.slane %v347_v34, %v2139_v38  ;;  %v397_v49 = vrot.slane %v385_v37, %v2139_v38  ;;  %vm2168_vm13 = vcmp.eq.s32.totalorder %v393_v41, 1  ;;  %vm2196_vm6 = vmand %vm324_vm1, %vm3837_vm9 }
  0x1a   : > { %vm2164_vm12 = vcmp.eq.s32.totalorder %v355_v40, 1  ;;  %v440_v54 = vrot.slane %v2146_v42, %v2125_v33  ;;  %v479_v55 = vrot.slane %v2149_v43, %v2125_v33  ;;  %vm2176_vm14 = vcmp.eq.s32.totalorder %v351_v44, 1  ;;  %vm2216_vm9 = vmand %vm324_vm1, %vm3839_vm5 }
  0x1b   : > { %vm2180_vm15 = vcmp.eq.s32.totalorder %v389_v45, 1  ;;  %vm2184_vm0 = vcmp.eq.s32.totalorder %v363_v46, 1  ;;  %vm2188_vm4 = vcmp.eq.s32.totalorder %v401_v47, 1  ;;  %vm2200_vm7 = vcmp.eq.s32.totalorder %v359_v48, 1 }
  0x1c   : > { %vm2204_vm8 = vcmp.eq.s32.totalorder %v397_v49, 1  ;;  %v436_v63 = vrot.slane %v2146_v42, %v2132_v35  ;;  %v475_v0 = vrot.slane %v2149_v43, %v2132_v35  ;;  %vm2233_vm11 = vcmp.eq.s32.totalorder %v440_v54, 1 }
  0x1d   : > { %vm2237_vm10 = vcmp.eq.s32.totalorder %v479_v55, 1  ;;  %v2271_v25 = vsel %vm2196_vm6, 1, %v3852_v1  ;;  %v3944_v49 = vmov 0 }
  0x1e   : > { %vm2256_vm5 = vcmp.eq.s32.totalorder %v436_v63, 1  ;;  %vm2260_vm2 = vcmp.eq.s32.totalorder %v475_v0, 1  ;;  %v650_v2 = vrot.slane %v2271_v25, %v2125_v33  ;;  %v646_v57 = vrot.slane %v2271_v25, %v2132_v35 }
  0x1f   : > { %v658_v59 = vrot.slane %v2271_v25, %v2134_v36  ;;  %v654_v61 = vrot.slane %v2271_v25, %v2139_v38 }
  0x8e   : > { %v299_v4 = vpop.permute.xlu0 %298 }
  0x8f   : > { %v301_v8 = vmul.f32 %v299_v4, %v291_v3  ;;  %v302_v9 = vmul.f32 %v299_v4, %v292_v5  ;;  %v303_v10 = vmul.f32 %v299_v4, %v293_v6  ;;  %v304_v11 = vmul.f32 %v299_v4, %v294_v7 }
  0x90   : > { %v448_v5 = vrot.slane %v2146_v42, %v2134_v36  ;;  %v2227_v6 = vsel %vm324_vm1, 1, %v3852_v1  ;;  %vm603_vm1 = vmand %vm2196_vm6, %vm3840_vm3  ;;  %vm3938_vm3 = vcmp.lt.s32.totalorder %v2141_v39, 72 }
  0x91   : > { %v2285_v32 = vsel %vm603_vm1, 1, %v3852_v1  ;;  %v533_v44 = vrot.slane %v2227_v6, %v2134_v36  ;;  %v529_v45 = vrot.slane %v2227_v6, %v2139_v38 }
  0x92   : > { %v309_v12 = vpop.permute.xlu0 %308  ;;  %v612_v60 = vrot.slane %v2285_v32, %v2125_v33  ;;  %v608_v56 = vrot.slane %v2285_v32, %v2132_v35  ;;  %v616_v58 = vrot.slane %v2285_v32, %v2139_v38 }
  0x93   : > { %v311_v13 = vadd.f32 %v309_v12, %v301_v8  ;;  %v312_v14 = vadd.f32 %v309_v12, %v302_v9  ;;  %v313_v15 = vadd.f32 %v309_v12, %v303_v10  ;;  %v314_v16 = vadd.f32 %v309_v12, %v304_v11 }
  0x94   : > { %v487_v11 = vrot.slane %v2149_v43, %v2134_v36  ;;  %v444_v12 = vrot.slane %v2146_v42, %v2139_v38  ;;  %v3942_v42 = vmov 0 }
  0x95   : > { %v2076_v17 = vmax.f32 %v311_v13, 0.0  ;;  %v2078_v18 = vmax.f32 %v312_v14, 0.0  ;;  %v2080_v19 = vmax.f32 %v313_v15, 0.0  ;;  %v2082_v20 = vmax.f32 %v314_v16, 0.0 }
  0x96   : > { %v483_v15 = vrot.slane %v2149_v43, %v2139_v38  ;;  %v2254_v16 = vsel %vm2216_vm9, 1, %v3852_v1  ;;  %vm3937_vm9 = vcmp.lt.s32.totalorder %v2141_v39, 73 }
  0x97   : > { %v1825_v21 = vpack.i.bf16 %v2080_v19, %v2082_v20  ;;  %v1815_v22 = vpack.i.bf16 %v2078_v18, %v2076_v17  ;;  %v1945_v23 = vpack.i.bf16 %v2080_v19, %v2078_v18  ;;  %v1955_v24 = vpack.i.bf16 %v2082_v20, %v2076_v17 }
  0x98   : > { %v564_v43 = vrot.slane %v2254_v16, %v2125_v33  ;;  %vm2310_vm1 = vcmp.eq.s32.totalorder %v483_v15, 1  ;;  %v560_v55 = vrot.slane %v2254_v16, %v2132_v35  ;;  %v568_v0 = vrot.slane %v2254_v16, %v2139_v38 }
  0x99   : > { %1826 = vrot.lane.b32.xlu0 %v1825_v21, %s1993_s11  ;;  %1816 = vrot.lane.b32.xlu1 %v1815_v22, %s1993_s11 }
  0x9d   : > { %1836 = vrot.lane.b32.xlu0 %v1815_v22, %s1994_s12  ;;  %1821 = vrot.lane.b32.xlu1 %v1815_v22, %s1995_s13 }
  0xa1   : > { %1846 = vrot.lane.b32.xlu0 %v1825_v21, %s1994_s12  ;;  %1831 = vrot.lane.b32.xlu1 %v1825_v21, %s1995_s13 }
  0xa5   : > { %1856 = vrot.lane.b32.xlu0 %v1815_v22, %s1996_s14  ;;  %1841 = vrot.lane.b32.xlu1 %v1815_v22, %s1997_s15 }
  0xa9   : > { %1866 = vrot.lane.b32.xlu0 %v1825_v21, %s1996_s14  ;;  %1851 = vrot.lane.b32.xlu1 %v1825_v21, %s1997_s15 }
  0xad   : > { %1876 = vrot.lane.b32.xlu0 %v1815_v22, %s1998_s16  ;;  %1861 = vrot.lane.b32.xlu1 %v1815_v22, %s1999_s17 }
  0xb1   : > { %1886 = vrot.lane.b32.xlu0 %v1825_v21, %s1998_s16  ;;  %1871 = vrot.lane.b32.xlu1 %v1825_v21, %s1999_s17 }
  0xb5   : > { %1896 = vrot.lane.b32.xlu0 %v1815_v22, %s2000_s18  ;;  %1881 = vrot.lane.b32.xlu1 %v1815_v22, %s2001_s19 }
  0xb9   : > { %1906 = vrot.lane.b32.xlu0 %v1825_v21, %s2000_s18  ;;  %1891 = vrot.lane.b32.xlu1 %v1825_v21, %s2001_s19 }
  0xbd   : > { %1916 = vrot.lane.b32.xlu0 %v1815_v22, %s2002_s20  ;;  %1901 = vrot.lane.b32.xlu1 %v1815_v22, %s2003_s21 }
  0xc1   : > { %1926 = vrot.lane.b32.xlu0 %v1825_v21, %s2002_s20  ;;  %1911 = vrot.lane.b32.xlu1 %v1825_v21, %s2003_s21 }
  0xc5   : > { %1936 = vrot.lane.b32.xlu0 %v1815_v22, %s2004_s22  ;;  %1921 = vrot.lane.b32.xlu1 %v1815_v22, %s2005_s23  ;;  %v3935_v22 = vmov 0 }
  0xc6   : > { %v3936_v22 = vsel %vm2260_vm2, 4294967295, %v3935_v22  ;;  %vm3948_vm2 = vcmp.lt.s32.totalorder %v2113_v30, 7 }
  0xc9   : > { %1946 = vrot.lane.b32.xlu0 %v1945_v23, %s2006_s26  ;;  %1931 = vrot.lane.b32.xlu1 %v1825_v21, %s2005_s23 }
  0xcd   : > { %1956 = vrot.lane.b32.xlu0 %v1955_v24, %s2006_s26  ;;  %1941 = vrot.lane.b32.xlu1 %v1825_v21, %s2004_s22  ;;  %v3933_v21 = vmov 0  ;;  %s285_s22 = scalar_lea.vmem %s3835_s6, %s1616_s30  ;;  %s1607_s30 = sshll.u32 %s4405_s25, 3 }
  0xce   : > { %v3934_v21 = vsel %vm2256_vm5, 4294967295, %v3933_v21  ;;  %vm2291_vm5 = vcmp.eq.s32.totalorder %v448_v5, 1 }
  0xd1   : > { %1966 = vrot.lane.b32.xlu0 %v1945_v23, %s2007_s27  ;;  %1951 = vrot.lane.b32.xlu1 %v1945_v23, %s2008_s28 }
  0xd5   : > { %1976 = vrot.lane.b32.xlu0 %v1955_v24, %s2007_s27  ;;  %1961 = vrot.lane.b32.xlu1 %v1955_v24, %s2008_s28  ;;  %v521_v24 = vrot.slane %v2227_v6, %v2132_v35  ;;  %s289_s27 = scalar_lea.vmem %s3836_s7, %s1607_s30 }
  0xd9   : > { %1021 = vrot.lane.b32.xlu0 %v2082_v20, %s2009_s29  ;;  %1971 = vrot.lane.b32.xlu1 %v1945_v23, %s2009_s29  ;;  %v525_v23 = vrot.slane %v2227_v6, %v2125_v33 }
  0xdd   : > { %1015 = vrot.lane.b32.xlu1 %v2076_v17, %s2009_s29 }
  0xe1   : > { %1395 = vperm.xlu1 %1980, %v1392_v27  }
 0x10b   : > { %v2160_v50 = vpop.permute.xlu0 %1826  ;;  %v2162_v51 = vpop.permute.xlu1 %1816 }
 0x10c   : > { %v1819_v3 = vunpack.i.h.bf16 %v2162_v51  ;;  %v1818_v4 = vunpack.i.l.bf16 %v2162_v51  ;;  %v1828_v26 = vunpack.i.l.bf16 %v2160_v50  ;;  %v1829_v46 = vunpack.i.h.bf16 %v2160_v50 }
 0x10d   : > { %v572_v50 = vrot.slane %v2254_v16, %v2134_v36 }
 0x10e   : > { %v343_v27 = vsel %vm3937_vm9, %v1818_v4, %v1819_v3  ;;  %vm2295_vm9 = vcmp.eq.s32.totalorder %v487_v11, 1 }
 0x10f   : > { %v2230_v7 = vpop.permute.xlu0 %1836  ;;  %v1822_v8 = vpop.permute.xlu1 %1821  ;;  %v3943_v42 = vsel %vm2295_vm9, 4294967295, %v3942_v42  ;;  %vm2320_vm9 = vmand %vm2196_vm6, %vm3948_vm2  ;;  %vm3952_vm2 = vcmp.lt.s32.totalorder %v2141_v39, 73 }
 0x110   : > { %v1824_v13 = vunpack.i.h.bf16 %v1822_v8  ;;  %v1823_v14 = vunpack.i.l.bf16 %v1822_v8  ;;  %v1839_v5 = vunpack.i.h.bf16 %v2230_v7  ;;  %v1838_v53 = vunpack.i.l.bf16 %v2230_v7 }
 0x111   : > { %v344_v52 = vsel %vm3952_vm2, %v1828_v26, %v1818_v4  ;;  %v2363_v7 = vsel %vm2320_vm9, 1, %v3852_v1  ;;  %vm3964_vm9 = vcmp.lt.s32.totalorder %v2141_v39, 71 }
 0x112   : > { %v383_v31 = vsel %vm3938_vm3, %v1823_v14, %v1824_v13  ;;  %vm2306_vm3 = vcmp.eq.s32.totalorder %v444_v12, 1 }
 0x113   : > { %v2287_v34 = vpop.permute.xlu0 %1846  ;;  %v1832_v37 = vpop.permute.xlu1 %1831  ;;  %v2289_v40 = vpack.c.bf16 %v383_v31, %v343_v27  ;;  %v3945_v49 = vsel %vm2306_vm3, 4294967295, %v3944_v49  ;;  %vm3951_vm3 = vmpackc.low %vm2168_vm13, %vm2164_vm12  ;;  %vm3953_vm12 = vcmp.lt.s32.totalorder %v2141_v39, 72  ;;  %vm3956_vm13 = vcmp.lt.s32.totalorder %v2141_v39, 73 }
 0x114   : > { %v1834_v47 = vunpack.i.h.bf16 %v1832_v37  ;;  %v1833_v48 = vunpack.i.l.bf16 %v1832_v37  ;;  %vm3954_vm6 = vmmov %vm3953_vm12  ;;  %v341_v31 = vsel %vm3956_vm13, %v1829_v46, %v1828_v26  ;;  %v1849_v51 = vunpack.i.h.bf16 %v2287_v34 }
 0x115   : > { %3939 = vst [vmem:[#allocation3_spill] sm:$0xff] %v2289_v40  ;;  %1620 = vmatprep.subr.msk.bf16.mxu0 %vm3951_vm3, %v2289_v40  ;;  %vm3955_vm2 = vmmov %vm3954_vm6  ;;  %vm2377_vm3 = vcmp.eq.s32.totalorder %v525_v23, 1  ;;  %v1848_v26 = vunpack.i.l.bf16 %v2287_v34 }
 0x116   : > { %v384_v8 = vsel %vm3953_vm12, %v1833_v48, %v1823_v14  ;;  %v381_v16 = vsel %vm3954_vm6, %v1834_v47, %v1833_v48  ;;  %v382_v4 = vsel %vm3955_vm2, %v1824_v13, %v1834_v47  ;;  %vm3957_vm6 = vmmov %vm3956_vm13  ;;  %vm2381_vm12 = vcmp.eq.s32.totalorder %v564_v43, 1 }
 0x117   : > { %v2348_v11 = vpop.permute.xlu0 %1856  ;;  %v1842_v12 = vpop.permute.xlu1 %1841  ;;  %v2350_v15 = vpack.c.bf16 %v384_v8, %v344_v52  ;;  %v342_v37 = vsel %vm3957_vm6, %v1819_v3, %v1829_v46  ;;  %vm3962_vm13 = vmpackc.low %vm2180_vm15, %vm2176_vm14  ;;  %v2393_v3 = vpack.c.bf16 %v381_v16, %v341_v31  ;;  %v429_v43 = vsel %vm3964_vm9, %v1838_v53, %v1839_v5 }
 0x118   : > { %v1844_v14 = vunpack.i.h.bf16 %v1842_v12  ;;  %v1843_v27 = vunpack.i.l.bf16 %v1842_v12  ;;  %v2395_v23 = vpack.c.bf16 %v382_v4, %v342_v37  ;;  %vm3965_vm2 = vcmp.lt.s32.totalorder %v2141_v39, 65 }
 0x119   : > { %1623 = vmatpush1.bf16.msk.msra.mxu0 %vm3962_vm13, %v2350_v15  ;;  %3963 = vst [vmem:[#allocation4_spill] sm:$0xff] %v2393_v3  ;;  %vm3966_vm14 = vcmp.ge.s32.totalorder %v2113_v30, 1  ;;  %vm3967_vm15 = vcmp.ge.s32.totalorder %v2108_v29, 1  ;;  %vm2427_vm9 = vcmp.eq.s32.totalorder %v521_v24, 1  ;;  %v3974_v12 = vmov 0 }
 0x11a   : > { %v468_v34 = vsel %vm3965_vm2, %v1843_v27, %v1844_v14  ;;  %vm2413_vm13 = vmand %vm3967_vm15, %vm3966_vm14  ;;  %vm2431_vm14 = vcmp.eq.s32.totalorder %v560_v55, 1  ;;  %v620_v16 = vrot.slane %v2285_v32, %v2134_v36  ;;  %vm3978_vm15 = vnez %v3936_v22 }
 0x11b   : > { %v2417_v48 = vpack.c.bf16 %v468_v34, %v429_v43  ;;  %vm3971_vm2 = vmpackc.low %vm2188_vm4, %vm2184_vm0  ;;  %v2425_v63 = vpop.permute.xlu0 %1866  ;;  %v1852_v52 = vpop.permute.xlu1 %1851  ;;  %v3975_v12 = vsel %vm2431_vm14, 4294967295, %v3974_v12  ;;  %vm3977_vm4 = vnez %v3934_v21  ;;  %vm2451_vm6 = vcmp.eq.s32.totalorder %v533_v44, 1 }
 0x11c   : > { %1704 = vmatprep.subr.msk.bf16.mxu1 %vm3971_vm2, %v2393_v3  ;;  %vm3976_vm0 = vmpackc.low %vm2204_vm8, %vm2200_vm7  ;;  %v1854_v24 = vunpack.i.h.bf16 %v1852_v52  ;;  %v1853_v55 = vunpack.i.l.bf16 %v1852_v52  ;;  %vm2455_vm14 = vcmp.eq.s32.totalorder %v572_v50, 1  ;;  %v3981_v31 = vmov 0 }
 0x11d   : > { %3970 = vst [vmem:[#allocation5_spill] sm:$0xff] %v2417_v48  ;;  %1707 = vmatpush1.bf16.msk.msra.mxu1 %vm3976_vm0, %v2395_v23  ;;  %v3982_v31 = vsel %vm2455_vm14, 4294967295, %v3981_v31  ;;  %vm3983_vm7 = vcmp.lt.s32.totalorder %v2141_v39, 71  ;;  %vm3984_vm8 = vmpackc.low %vm2237_vm10, %vm2233_vm11  ;;  %vm2474_vm0 = vcmp.eq.s32.totalorder %v529_v45, 1  ;;  %v3985_v44 = vmov 0 }
 0x11e   : > { %v427_v37 = vsel %vm3983_vm7, %v1849_v51, %v1848_v26  ;;  %1626 = vmatprep.subr.msk.bf16.mxu0 %vm3984_vm8, %v2417_v48  ;;  %v3986_v44 = vsel %vm2474_vm0, 4294967295, %v3985_v44  ;;  %vm2478_vm2 = vcmp.eq.s32.totalorder %v568_v0, 1  ;;  %v3987_v50 = vmov 0 }
 0x11f   : > { %v3988_v50 = vsel %vm2478_vm2, 4294967295, %v3987_v50  ;;  %v2485_v43 = vsel %vm2413_vm13, 1, %v3852_v1  ;;  %vm3989_vm10 = vcmp.lt.s32.totalorder %v2113_v30, 7  ;;  %vm3990_vm11 = vcmp.ge.s32.totalorder %v2108_v29, 1 }
 0x120   : > { %vm2495_vm7 = vmand %vm3990_vm11, %vm3989_vm10  ;;  %vm3993_vm8 = vcmp.lt.s32.totalorder %v2141_v39, 71  ;;  %v1859_v34 = vunpack.i.h.bf16 %v2348_v11  ;;  %vm3995_vm2 = vcmp.lt.s32.totalorder %v2141_v39, 65  ;;  %vm3996_vm0 = vnez %v3943_v42 }
 0x121   : > { %v428_v45 = vsel %vm3993_vm8, %v1839_v5, %v1849_v51  ;;  %vm3994_vm13 = vmmov %vm3993_vm8  ;;  %v466_v46 = vsel %vm3995_vm2, %v1854_v24, %v1853_v55  ;;  %v1858_v52 = vunpack.i.l.bf16 %v2348_v11  ;;  %vm4005_vm14 = vcmp.ge.s32.totalorder %v2108_v29, 1 }
 0x122   : > { %v430_v0 = vsel %vm3994_vm13, %v1848_v26, %v1838_v53  ;;  %vm3997_vm10 = vmmov %vm3995_vm2  ;;  %v2515_v51 = vpack.c.bf16 %v466_v46, %v427_v37  ;;  %v2517_v53 = vpop.permute.xlu0 %1876  ;;  %v1862_v26 = vpop.permute.xlu1 %1861  ;;  %v2544_v54 = vsel %vm2495_vm7, 1, %v3852_v1  ;;  %vm2564_vm7 = vcmp.eq.s32.totalorder %v612_v60, 1 }
 0x123   : > { %v467_v10 = vsel %vm3997_vm10, %v1844_v14, %v1854_v24  ;;  %vm3998_vm11 = vmmov %vm3995_vm2  ;;  %vm4000_vm2 = vnez %v3945_v49  ;;  %v2539_v49 = vsel %vm4005_vm14, 1, %v3852_v1  ;;  %v1869_v14 = vunpack.i.h.bf16 %v2425_v63 }
 0x124   : > { %v469_v5 = vsel %vm3998_vm11, %v1853_v55, %v1843_v27  ;;  %3999 = vst [vmem:[#allocation6_spill] sm:$0xff] %v2515_v51  ;;  %vm1711_vm8 = vmpackc.low %vm2310_vm1, %vm4000_vm2  ;;  %v2525_v62 = vpack.c.bf16 %v467_v10, %v428_v45  ;;  %vm2532_vm11 = vcmp.eq.s32.totalorder %v650_v2, 1  ;;  %v1868_v27 = vunpack.i.l.bf16 %v2425_v63 }
 0x125   : > { %v2523_v9 = vpack.c.bf16 %v469_v5, %v430_v0  ;;  %v1864_v24 = vunpack.i.h.bf16 %v1862_v26  ;;  %v1863_v25 = vunpack.i.l.bf16 %v1862_v26  ;;  %vm4006_vm1 = vmpackc.low %vm3996_vm0, %vm2291_vm5  ;;  %v736_v41 = vrot.slane %v2485_v43, %v2125_v33 }
 0x126   : > { %4002 = vst [vmem:[#allocation8_spill] sm:$0xff] %v2525_v62  ;;  %1710 = vmatprep.subr.msk.bf16.mxu1 %vm4006_vm1, %v2515_v51  ;;  %vm4007_vm14 = vmpackc.low %vm3978_vm15, %vm3977_vm4  ;;  %v732_v42 = vrot.slane %v2485_v43, %v2132_v35  ;;  %v744_v21 = vrot.slane %v2485_v43, %v2134_v36  ;;  %vm4010_vm5 = vcmp.lt.s32.totalorder %v2141_v39, 64  ;;  %vm4011_vm4 = vcmp.lt.s32.totalorder %v2141_v39, 63  ;;  %v2578_v55 = vpop.permute.xlu0 %1886  ;;  %v1872_v60 = vpop.permute.xlu1 %1871 }
 0x127   : > { %4001 = vst [vmem:[#allocation7_spill] sm:$0xff] %v2523_v9  ;;  %1629 = vmatpush1.bf16.msk.msra.mxu0 %vm4007_vm14, %v2523_v9  ;;  %1713 = vmatpush1.bf16.msk.msra.mxu1 %vm1711_vm8, %v2525_v62  ;;  %v515_v22 = vsel %vm4010_vm5, %v1858_v52, %v1859_v34  ;;  %v553_v63 = vsel %vm4011_vm4, %v1863_v25, %v1864_v24  ;;  %vm2584_vm0 = vcmp.eq.s32.totalorder %v608_v56, 1  ;;  %vm2588_vm2 = vcmp.eq.s32.totalorder %v646_v57, 1  ;;  %vm4021_vm14 = vmmov %vm4010_vm5 }
 0x128   : > { %v2596_v0 = vpack.c.bf16 %v553_v63, %v515_v22  ;;  %v1874_v46 = vunpack.i.h.bf16 %v1872_v60  ;;  %vm2598_vm8 = vcmp.eq.s32.totalorder %v620_v16, 1  ;;  %vm2602_vm1 = vcmp.eq.s32.totalorder %v658_v59, 1  ;;  %vm4027_vm13 = vmmov %vm4021_vm14 }
 0x129   : > { %v4019_v56 = vmov 0  ;;  %v513_v45 = vsel %vm4021_vm14, %v1869_v14, %v1868_v27  ;;  %v1873_v22 = vunpack.i.l.bf16 %v1872_v60  ;;  %vm2615_vm5 = vcmp.eq.s32.totalorder %v616_v58, 1 }
 0x12a   : > { %4016 = vst [vmem:[#allocation9_spill] sm:$0xff] %v2596_v0  ;;  %v4020_v56 = vsel %vm2602_vm1, 4294967295, %v4019_v56  ;;  %v4022_v16 = vmov 0  ;;  %vm2619_vm4 = vcmp.eq.s32.totalorder %v654_v61, 1  ;;  %v4024_v59 = vmov 0  ;;  %v2654_v47 = vpop.permute.xlu0 %1896  ;;  %v1882_v13 = vpop.permute.xlu1 %1881 }
 0x12b   : > { %v4023_v16 = vsel %vm2615_vm5, 4294967295, %v4022_v16  ;;  %v4025_v59 = vsel %vm2619_vm4, 4294967295, %v4024_v59  ;;  %vm4026_vm10 = vcmp.ge.s32.totalorder %v2113_v30, 1  ;;  %v514_v60 = vsel %vm4021_vm14, %v1859_v34, %v1869_v14  ;;  %vm4029_vm4 = vmpackc.low %vm2381_vm12, %vm2377_vm3 }
 0x12c   : > { %v2628_v26 = vsel %vm4026_vm10, 1, %v3852_v1  ;;  %v516_v32 = vsel %vm4027_vm13, %v1868_v27, %v1858_v52  ;;  %v1879_v58 = vunpack.i.h.bf16 %v2517_v53  ;;  %vm4028_vm15 = vcmp.lt.s32.totalorder %v2141_v39, 63  ;;  %1632 = vmatprep.subr.msk.bf16.mxu0 %vm4029_vm4, %v2596_v0 }
 0x12d   : > { %v552_v61 = vsel %vm4028_vm15, %v1864_v24, %v1874_v46  ;;  %vm4030_vm10 = vnez %v3975_v12  ;;  %v1878_v34 = vunpack.i.l.bf16 %v2517_v53  ;;  %vm4031_vm13 = vmmov %vm4028_vm15  ;;  %vm4034_vm3 = vnez %v3982_v31 }
 0x12e   : > { %v551_v52 = vsel %vm4031_vm13, %v1874_v46, %v1873_v22  ;;  %vm4032_vm5 = vmmov %vm4031_vm13  ;;  %v2652_v27 = vpack.c.bf16 %v552_v61, %v514_v60  ;;  %vm4037_vm4 = vnez %v3986_v44  ;;  %v4039_v53 = vrot.slane %v2363_v7, %v2125_v33  ;;  %v2729_v31 = vpop.permute.xlu0 %1906 }
 0x12f   : > { %v554_v14 = vsel %vm4032_vm5, %v1873_v22, %v1863_v25  ;;  %v2662_v63 = vpack.c.bf16 %v551_v52, %v513_v45  ;;  %vm4038_vm5 = vnez %v3988_v50  ;;  %vm2677_vm12 = vcmp.eq.s32.totalorder %v736_v41, 1  ;;  %vm4044_vm15 = vmpackc.low %vm4030_vm10, %vm2427_vm9 }
 0x130   : > { %4033 = vst [vmem:[#allocation10_spill] sm:$0xff] %v2652_v27  ;;  %v2660_v24 = vpack.c.bf16 %v554_v14, %v516_v32  ;;  %vm2673_vm1 = vcmp.eq.s32.totalorder %v4039_v53, 1  ;;  %v4042_v46 = vmov 0  ;;  %v817_v45 = vrot.slane %v2544_v54, %v2132_v35  ;;  %vm4045_vm13 = vmpackc.low %vm4034_vm3, %vm2451_vm6  ;;  %v1892_v53 = vpop.permute.xlu1 %1891 }
 0x131   : > { %4036 = vst [vmem:[#allocation12_spill] sm:$0xff] %v2662_v63  ;;  %v4043_v46 = vsel %vm2677_vm12, 4294967295, %v4042_v46  ;;  %v1884_v60 = vunpack.i.h.bf16 %v1882_v13  ;;  %v1883_v32 = vunpack.i.l.bf16 %v1882_v13  ;;  %v829_v61 = vrot.slane %v2544_v54, %v2134_v36  ;;  %1716 = vmatprep.subr.msk.bf16.mxu1 %vm4045_vm13, %v2662_v63 }
 0x132   : > { %4035 = vst [vmem:[#allocation11_spill] sm:$0xff] %v2660_v24  ;;  %v1889_v41 = vunpack.i.h.bf16 %v2578_v55  ;;  %v1888_v14 = vunpack.i.l.bf16 %v2578_v55  ;;  %1635 = vmatpush1.bf16.msk.msra.mxu0 %vm4044_vm15, %v2660_v24  ;;  %vm4046_vm14 = vcmp.lt.s32.totalorder %v2113_v30, 7  ;;  %vm4047_vm12 = vcmp.ge.s32.totalorder %v2113_v30, 1 }
 0x133   : > { %v2709_v55 = vsel %vm4046_vm14, 1, %v3852_v1  ;;  %vm4048_vm9 = vcmp.lt.s32.totalorder %v2108_v29, 7  ;;  %vm4051_vm15 = vcmp.lt.s32.totalorder %v2141_v39, 57  ;;  %vm4052_vm6 = vcmp.lt.s32.totalorder %v2141_v39, 56  ;;  %vm4053_vm14 = vmpackc.low %vm4038_vm5, %vm4037_vm4 }
 0x134   : > { %vm2715_vm10 = vmand %vm4048_vm9, %vm4047_vm12  ;;  %v600_v12 = vsel %vm4051_vm15, %v1878_v34, %v1879_v58  ;;  %v640_v4 = vsel %vm4052_vm6, %v1883_v32, %v1884_v60  ;;  %1719 = vmatpush1.bf16.msk.msra.mxu1 %vm4053_vm14, %v2652_v27  ;;  %v4054_v13 = vrot.slane %v2363_v7, %v2132_v35  ;;  %vm2745_vm4 = vcmp.eq.s32.totalorder %v732_v42, 1 }
 0x135   : > { %v825_v50 = vrot.slane %v2544_v54, %v2139_v38  ;;  %v2753_v57 = vpack.c.bf16 %v640_v4, %v600_v12  ;;  %v1894_v1 = vunpack.i.h.bf16 %v1892_v53  ;;  %vm2765_vm13 = vcmp.eq.s32.totalorder %v744_v21, 1 }
 0x136   : > { %vm2738_vm12 = vcmp.eq.s32.totalorder %v4054_v13, 1  ;;  %v4060_v13 = vrot.slane %v2363_v7, %v2134_v36  ;;  %v1893_v4 = vunpack.i.l.bf16 %v1892_v53  ;;  %v4066_v63 = vmov 0 }
 0x137   : > { %4059 = vst [vmem:[#allocation13_spill] sm:$0xff] %v2753_v57  ;;  %v4068_v21 = vrot.slane %v2485_v43, %v2139_v38  ;;  %v4069_v0 = vmov 0  ;;  %v4071_v24 = vmov 0   ;;  %vm4072_vm6 = vcmp.lt.s32.totalorder %v2141_v39, 57 }
 0x138   : > { %vm2758_vm5 = vcmp.eq.s32.totalorder %v4060_v13, 1  ;;  %v4065_v13 = vrot.slane %v2363_v7, %v2139_v38  ;;  %v2792_v53 = vsel %vm2715_vm10, 1, %v4071_v24  ;;  %vm4073_vm14 = vmmov %vm4072_vm6  ;;  %vm4074_vm3 = vcmp.lt.s32.totalorder %v2141_v39, 56  ;;  %v1902_v7 = vpop.permute.xlu1 %1901 }
 0x139   : > { %vm2783_vm15 = vcmp.eq.s32.totalorder %v4068_v21, 1  ;;  %v599_v43 = vsel %vm4073_vm14, %v1879_v58, %v1889_v41  ;;  %v639_v21 = vsel %vm4074_vm3, %v1884_v60, %v1894_v1  ;;  %v601_v58 = vsel %vm4073_vm14, %v1888_v14, %v1878_v34 }
 0x13a   : > { %vm2776_vm9 = vcmp.eq.s32.totalorder %v4065_v13, 1  ;;  %v4070_v0 = vsel %vm2783_vm15, 4294967295, %v4069_v0  ;;  %v598_v13 = vsel %vm4072_vm6, %v1889_v41, %v1888_v14  ;;  %vm4075_vm15 = vmpackc.low %vm2532_vm11, %vm2564_vm7  ;;  %vm4076_vm6 = vcmp.lt.s32.totalorder %v2108_v29, 7  ;;  %v2823_v41 = vpop.permute.xlu0 %1916 }
 0x13b   : > { %v4067_v63 = vsel %vm2776_vm9, 4294967295, %v4066_v63  ;;  %1638 = vmatprep.subr.msk.bf16.mxu0 %vm4075_vm15, %v2753_v57  ;;  %v2815_v8 = vsel %vm4076_vm6, 1, %v4071_v24  ;;  %v1899_v60 = vunpack.i.h.bf16 %v2654_v47  ;;  %v1898_v11 = vunpack.i.l.bf16 %v2654_v47  ;;  %vm4077_vm11 = vmmov %vm4074_vm3 }
 0x13c   : > { %v638_v2 = vsel %vm4077_vm11, %v1894_v1, %v1893_v4  ;;  %vm4078_vm7 = vnez %v4020_v56  ;;  %v1909_v22 = vunpack.i.h.bf16 %v2729_v31  ;;  %vm4079_vm15 = vmmov %vm4074_vm3  ;;  %v2832_v14 = vpack.c.bf16 %v639_v21, %v599_v43 }
 0x13d   : > { %v641_v34 = vsel %vm4079_vm15, %v1893_v4, %v1883_v32  ;;  %v2834_v12 = vpack.c.bf16 %v638_v2, %v598_v13  ;;  %vm4082_vm14 = vnez %v4023_v16  ;;  %vm4083_vm11 = vnez %v4025_v59  ;;  %vm4096_vm10 = vmpackc.low %vm4078_vm7, %vm2598_vm8 }
 0x13e   : > { %4080 = vst [vmem:[#allocation14_spill] sm:$0xff] %v2832_v14  ;;  %v4084_v1 = vrot.slane %v2539_v49, %v2125_v33  ;;  %v4085_v47 = vmov 0  ;;  %v4087_v32 = vrot.slane %v2544_v54, %v2125_v33  ;;  %v4088_v4 = vmov 0 }
 0x13f   : > { %4081 = vst [vmem:[#allocation15_spill] sm:$0xff] %v2834_v12  ;;  %v1908_v13 = vunpack.i.l.bf16 %v2729_v31  ;;  %v2857_v43 = vpack.c.bf16 %v641_v34, %v601_v58  ;;  %v1904_v21 = vunpack.i.h.bf16 %v1902_v7  ;;  %v1903_v2 = vunpack.i.l.bf16 %v1902_v7  ;;  %1722 = vmatprep.subr.msk.bf16.mxu1 %vm4096_vm10, %v2834_v12 }
 0x140   : > { %vm2845_vm3 = vcmp.eq.s32.totalorder %v4084_v1, 1  ;;  %vm2852_vm15 = vcmp.eq.s32.totalorder %v4087_v32, 1  ;;  %v4091_v57 = vrot.slane %v2539_v49, %v2132_v35  ;;  %vm2866_vm6 = vcmp.eq.s32.totalorder %v817_v45, 1  ;;  %v2921_v32 = vpop.permute.xlu0 %1926 }
 0x141   : > { %v4086_v47 = vsel %vm2845_vm3, 4294967295, %v4085_v47  ;;  %v4089_v4 = vsel %vm2852_vm15, 4294967295, %v4088_v4  ;;  %4090 = vst [vmem:[#allocation16_spill] sm:$0xff] %v2857_v43  ;;  %v4094_v51 = vmov 0  ;;  %v4097_v54 = vrot.slane %v2539_v49, %v2134_v36 }
 0x142   : > { %vm2862_vm9 = vcmp.eq.s32.totalorder %v4091_v57, 1  ;;  %v4095_v51 = vsel %vm2866_vm6, 4294967295, %v4094_v51  ;;  %v4098_v31 = vmov 0  ;;  %vm2883_vm3 = vcmp.eq.s32.totalorder %v829_v61, 1  ;;  %vm4109_vm6 = vmpackc.low %vm2588_vm2, %vm2584_vm0 }
 0x143   : > { %vm2879_vm15 = vcmp.eq.s32.totalorder %v4097_v54, 1  ;;  %v4100_v57 = vmov 0  ;;  %v952_v45 = vrot.slane %v2792_v53, %v2125_v33  ;;  %vm4102_vm8 = vcmp.lt.s32.totalorder %v2113_v30, 7  ;;  %1641 = vmatpush1.bf16.msk.msra.mxu0 %vm4109_vm6, %v2857_v43  ;;  %v1912_v54 = vpop.permute.xlu1 %1911 }
 0x144   : > { %v4099_v31 = vsel %vm2879_vm15, 4294967295, %v4098_v31  ;;  %v4101_v57 = vsel %vm2883_vm3, 4294967295, %v4100_v57  ;;  %vm4103_vm10 = vcmp.lt.s32.totalorder %v2108_v29, 7  ;;  %vm4106_vm3 = vcmp.lt.s32.totalorder %v2141_v39, 55 }
 0x145   : > { %vm2899_vm7 = vmand %vm4103_vm10, %vm4102_vm8  ;;  %v2905_v58 = vsel %vm4106_vm3, %v1898_v11, %v1899_v60  ;;  %vm4108_vm15 = vcmp.lt.s32.totalorder %v2141_v39, 9  ;;  %vm4111_vm3 = vnez %v4043_v46  ;;  %v4112_v37 = vrot.slane %v2628_v26, %v2125_v33  ;;  %v3005_v46 = vpop.permute.xlu0 %1936 }
 0x146   : > { %4107 = vst [vmem:[#allocation17_spill] sm:$0xff] %v2905_v58  ;;  %v725_v34 = vsel %vm4108_vm15, %v1903_v2, %v1904_v21  ;;  %vm4110_vm8 = vmpackc.low %vm4083_vm11, %vm4082_vm14  ;;  %v960_v16 = vrot.slane %v2792_v53, %v2134_v36  ;;  %v1914_v7 = vunpack.i.h.bf16 %v1912_v54  ;;  %v4115_v5 = vrot.slane %v2539_v49, %v2139_v38 }
 0x147   : > { %1725 = vmatpush1.bf16.msk.msra.mxu1 %vm4110_vm8, %v2832_v14  ;;  %vm2931_vm0 = vcmp.eq.s32.totalorder %v4112_v37, 1  ;;  %v1643_v59 = vpack.c.bf16 %v725_v34, %v2905_v58  ;;  %vm2945_vm6 = vcmp.eq.s32.totalorder %v825_v50, 1  ;;  %v956_v37 = vrot.slane %v2792_v53, %v2139_v38  ;;  %v1922_v25 = vpop.permute.xlu1 %1921 }
 0x148   : > { %vm2941_vm2 = vcmp.eq.s32.totalorder %v4115_v5, 1  ;;  %vm4120_vm14 = vcmp.lt.s32.totalorder %v2141_v39, 55  ;;  %v1913_v58 = vunpack.i.l.bf16 %v1912_v54  ;;  %v4122_v49 = vrot.slane %v2628_v26, %v2132_v35 }
 0x149   : > { %v2955_v34 = vsel %vm4120_vm14, %v1909_v22, %v1908_v13  ;;  %v4123_v5 = vmov 0  ;;  %v2967_v50 = vsel %vm2899_vm7, 1, %v4071_v24  ;;  %vm4125_vm8 = vcmp.ge.s32.totalorder %v2108_v29, 1  ;;  %v3086_v6 = vpop.permute.xlu0 %1946 }
 0x14a   : > { %4121 = vst [vmem:[#allocation18_spill] sm:$0xff] %v2955_v34  ;;  %vm2960_vm11 = vcmp.eq.s32.totalorder %v4122_v49, 1  ;;  %vm4126_vm14 = vcmp.lt.s32.totalorder %v2103_v28, 7  ;;  %vm4129_vm15 = vcmp.lt.s32.totalorder %v2141_v39, 55  ;;  %v1919_v14 = vunpack.i.h.bf16 %v2823_v41 }
 0x14b   : > { %v4124_v5 = vsel %vm2960_vm11, 4294967295, %v4123_v5  ;;  %vm2975_vm10 = vmand %vm4126_vm14, %vm4125_vm8  ;;  %v2981_v49 = vsel %vm4129_vm15, %v1899_v60, %v1909_v22  ;;  %vm4133_vm7 = vcmp.lt.s32.totalorder %v2141_v39, 9  ;;  %v1923_v22 = vunpack.i.l.bf16 %v1922_v25 }
 0x14c   : > { %4130 = vst [vmem:[#allocation19_spill] sm:$0xff] %v2981_v49  ;;  %vm4131_vm11 = vmmov %vm4129_vm15  ;;  %v724_v43 = vsel %vm4133_vm7, %v1904_v21, %v1914_v7  ;;  %v4137_v21 = vrot.slane %v2628_v26, %v2134_v36  ;;  %v1929_v27 = vunpack.i.h.bf16 %v2921_v32  ;;  %v4154_v44 = vunpack.i.l.bf16 %v2823_v41 }
 0x14d   : > { %v2985_v61 = vsel %vm4131_vm11, %v1908_v13, %v1898_v11  ;;  %vm4134_vm8 = vmpackc.low %vm4111_vm3, %vm2673_vm1  ;;  %v1730_v13 = vpack.c.bf16 %v724_v43, %v2981_v49  ;;  %v4142_v43 = vrot.slane %v2628_v26, %v2139_v38  ;;  %vm3045_vm1 = vcmp.eq.s32.totalorder %v952_v45, 1 }
 0x14e   : > { %4132 = vst [vmem:[#allocation20_spill] sm:$0xff] %v2985_v61  ;;  %1644 = vmatprep.subr.msk.bf16.mxu0 %vm4134_vm8, %v1643_v59  ;;  %vm1645_vm15 = vmpackc.low %vm2745_vm4, %vm2738_vm12  ;;  %vm3014_vm3 = vcmp.eq.s32.totalorder %v4137_v21, 1  ;;  %v4138_v59 = vmov 0  ;;  %vm4141_vm8 = vnez %v4070_v0  ;;  %v1037_v21 = vrot.slane %v2967_v50, %v2125_v33 }
 0x14f   : > { %vm4135_vm11 = vmmov %vm4133_vm7  ;;  %v4139_v59 = vsel %vm3014_vm3, 4294967295, %v4138_v59  ;;  %v4148_v26 = vmov 0  ;;  %v1006_v49 = vrot.slane %v2815_v8, %v2134_v36  ;;  %vm4155_vm3 = vcmp.lt.s32.totalorder %v2141_v39, 8 }
 0x150   : > { %v723_v60 = vsel %vm4135_vm11, %v1914_v7, %v1913_v58  ;;  %vm4136_vm14 = vmmov %vm4133_vm7  ;;  %vm4140_vm7 = vnez %v4067_v63  ;;  %v4149_v26 = vsel %vm3045_vm1, 4294967295, %v4148_v26  ;;  %v772_v52 = vsel %vm4155_vm3, %v4154_v44, %v1919_v14 }
 0x151   : > { %v726_v11 = vsel %vm4136_vm14, %v1913_v58, %v1903_v2  ;;  %v1727_v2 = vpack.c.bf16 %v723_v60, %v2955_v34  ;;  %vm3027_vm14 = vcmp.eq.s32.totalorder %v4142_v43, 1  ;;  %v4143_v58 = vmov 0  ;;  %vm4150_vm1 = vmpackc.low %vm2765_vm13, %vm2758_vm5 }
 0x152   : > { %v1646_v7 = vpack.c.bf16 %v726_v11, %v2985_v61  ;;  %v4144_v58 = vsel %vm3027_vm14, 4294967295, %v4143_v58  ;;  %v3036_v11 = vsel %vm2975_vm10, 1, %v4071_v24  ;;  %v1924_v60 = vunpack.i.h.bf16 %v1922_v25  ;;  %vm4157_vm4 = vmpackc.low %vm4141_vm8, %vm4140_vm7 }
 0x153   : > { %v4145_v34 = vrot.slane %v2709_v55, %v2125_v33  ;;  %v4146_v61 = vmov 0  ;;  %v1033_v43 = vrot.slane %v2967_v50, %v2132_v35  ;;  %v1928_v25 = vunpack.i.l.bf16 %v2921_v32  ;;  %1728 = vmatprep.subr.msk.bf16.mxu1 %vm4150_vm1, %v1727_v2  ;;  %v1932_v32 = vpop.permute.xlu1 %1931 }
 0x154   : > { %1647 = vmatpush1.bf16.msk.msra.mxu0 %vm1645_vm15, %v1646_v7  ;;  %vm4156_vm12 = vcmp.lt.s32.totalorder %v2141_v39, 7  ;;  %1731 = vmatpush1.bf16.msk.msra.mxu1 %vm4157_vm4, %v1730_v13  ;;  %vm4158_vm5 = vnez %v4086_v47  ;;  %vm4159_vm13 = vnez %v4089_v4  ;;  %v4160_v7 = vrot.slane %v2709_v55, %v2132_v35 }
 0x155   : > { %vm3041_vm11 = vcmp.eq.s32.totalorder %v4145_v34, 1  ;;  %v810_v42 = vsel %vm4156_vm12, %v1923_v22, %v1924_v60  ;;  %v4163_v0 = vrot.slane %v2792_v53, %v2132_v35  ;;  %v4164_v63 = vmov 0 }
 0x156   : > { %v4147_v61 = vsel %vm3041_vm11, 4294967295, %v4146_v61  ;;  %vm4151_vm11 = vcmp.ge.s32.totalorder %v2113_v30, 1  ;;  %vm3095_vm1 = vcmp.eq.s32.totalorder %v4160_v7, 1  ;;  %v1045_v13 = vrot.slane %v2967_v50, %v2134_v36 }
 0x157   : > { %vm3071_vm14 = vmand %vm2975_vm10, %vm4151_vm11  ;;  %vm3102_vm3 = vcmp.eq.s32.totalorder %v4163_v0, 1  ;;  %v1649_v34 = vpack.c.bf16 %v810_v42, %v772_v52  ;;  %v1934_v7 = vunpack.i.h.bf16 %v1932_v32  ;;  %vm4166_vm8 = vnez %v4095_v51  ;;  %v1942_v3 = vpop.permute.xlu1 %1941 }
 0x158   : > { %v4165_v63 = vsel %vm3102_vm3, 4294967295, %v4164_v63  ;;  %v4167_v53 = vrot.slane %v2709_v55, %v2134_v36  ;;  %v4168_v0 = vmov 0  ;;  %vm3123_vm15 = vcmp.eq.s32.totalorder %v960_v16, 1  ;;  %vm4185_vm3 = vmpackc.low %vm4159_vm13, %vm4158_vm5 }
 0x159   : > { %v4170_v44 = vmov 0  ;;  %v1002_v52 = vrot.slane %v2815_v8, %v2139_v38  ;;  %v1041_v42 = vrot.slane %v2967_v50, %v2139_v38  ;;  %v1933_v48 = vunpack.i.l.bf16 %v1932_v32  ;;  %1650 = vmatprep.subr.msk.bf16.mxu0 %vm4185_vm3, %v1649_v34 }
 0x15a   : > { %vm3119_vm4 = vcmp.eq.s32.totalorder %v4167_v53, 1  ;;  %v4171_v44 = vsel %vm3123_vm15, 4294967295, %v4170_v44  ;;  %vm4172_vm12 = vnez %v4099_v31  ;;  %vm4173_vm7 = vnez %v4101_v57 }
 0x15b   : > { %v4169_v0 = vsel %vm3119_vm4, 4294967295, %v4168_v0  ;;  %v4174_v53 = vrot.slane %v2709_v55, %v2139_v38  ;;  %v4175_v16 = vmov 0  ;;  %vm3142_vm15 = vcmp.eq.s32.totalorder %v956_v37, 1 }
 0x15c   : > { %v4177_v9 = vmov 0  ;;  %v3149_v50 = vsel %vm3071_vm14, 1, %v4071_v24  ;;  %v1105_v32 = vrot.slane %v3036_v11, %v2134_v36  ;;  %vm4179_vm11 = vcmp.lt.s32.totalorder %v2141_v39, 8 }
 0x15d   : > { %vm3138_vm4 = vcmp.eq.s32.totalorder %v4174_v53, 1  ;;  %v4178_v9 = vsel %vm3142_vm15, 4294967295, %v4177_v9  ;;  %v770_v55 = vsel %vm4179_vm11, %v1929_v27, %v1928_v25  ;;  %v4181_v53 = vunpack.i.h.bf16 %v3005_v46 }
 0x15e   : > { %v4176_v16 = vsel %vm3138_vm4, 4294967295, %v4175_v16  ;;  %vm4180_vm4 = vmmov %vm4179_vm11  ;;  %v4182_v62 = vunpack.i.l.bf16 %v3005_v46  ;;  %vm4183_vm15 = vcmp.lt.s32.totalorder %v2141_v39, 1  ;;  %vm4184_vm14 = vcmp.lt.s32.totalorder %v2141_v39, 7 }
 0x15f   : > { %v771_v37 = vsel %vm4180_vm4, %v1919_v14, %v1929_v27  ;;  %v809_v40 = vsel %vm4184_vm14, %v1924_v60, %v1934_v7  ;;  %vm3886_vm11 = vmmov 1   ;;  %v4189_v14 = vmov 0 }
 0x160   : > { %v857_v45 = vsel %vm4183_vm15, %v4182_v62, %v4181_v53  ;;  %vm3175_vm4 = vmpackc.low %vm3886_vm11, %vm2931_vm0  ;;  %v4188_v62 = vrot.slane %v2815_v8, %v2125_v33  ;;  %vm3186_vm14 = vcmp.eq.s32.totalorder %v1037_v21, 1  ;;  %v4191_v4 = vmov 0 }
 0x161   : > { %v4192_v4 = vsel %vm3186_vm14, 4294967295, %v4191_v4  ;;  %v4193_v47 = vunpack.i.l.bf16 %v2823_v41  ;;  %vm4194_vm5 = vcmp.lt.s32.totalorder %v2141_v39, 8  ;;  %vm4195_vm0 = vcmp.lt.s32.totalorder %v2141_v39, 7 }
 0x162   : > { %vm3182_vm15 = vcmp.eq.s32.totalorder %v4188_v62, 1  ;;  %v808_v60 = vsel %vm4195_vm0, %v1934_v7, %v1933_v48  ;;  %vm4196_vm13 = vmmov %vm4195_vm0  ;;  %v1736_v53 = vpack.c.bf16 %v809_v40, %v771_v37  ;;  %v3198_v62 = vpop.permute.xlu0 %1956  ;;  %v4197_v41 = vrot.slane %v2815_v8, %v2132_v35 }
 0x163   : > { %v4190_v14 = vsel %vm3182_vm15, 4294967295, %v4189_v14  ;;  %v773_v10 = vsel %vm4194_vm5, %v1928_v25, %v4193_v47  ;;  %v811_v34 = vsel %vm4196_vm13, %v1933_v48, %v1923_v22  ;;  %v4198_v21 = vmov 0 }
 0x164   : > { %vm3207_vm11 = vcmp.eq.s32.totalorder %v4197_v41, 1  ;;  %vm3211_vm5 = vcmp.eq.s32.totalorder %v1033_v43, 1  ;;  %v4200_v25 = vmov 0  ;;  %v1652_v40 = vpack.c.bf16 %v811_v34, %v773_v10 }
 0x165   : > { %v4199_v21 = vsel %vm3207_vm11, 4294967295, %v4198_v21  ;;  %v4201_v25 = vsel %vm3211_vm5, 4294967295, %v4200_v25  ;;  %v1733_v48 = vpack.c.bf16 %v808_v60, %v770_v55  ;;  %vm4202_vm0 = vnez %v4124_v5 }
 0x166   : > { %vm4203_vm13 = vmmov 1   ;;  %v1101_v8 = vrot.slane %v3036_v11, %v2139_v38  ;;  %vm4206_vm3 = vcmp.lt.s32.totalorder %v2103_v28, 7  ;;  %v1655_v43 = vpack.c.bf16 %v2078_v18, %v857_v45 }
 0x167   : > { %vm3218_vm14 = vmpackc.low %vm4203_vm13, %vm4202_vm0  ;;  %v3227_v7 = vsel %vm4206_vm3, 1, %v4071_v24  ;;  %v1944_v37 = vunpack.i.h.bf16 %v1942_v3  ;;  %v1943_v47 = vunpack.i.l.bf16 %v1942_v3  ;;  %vm3230_vm5 = vcmp.eq.s32.totalorder %v1006_v49, 1 }
 0x168   : > { %v4207_v55 = vmov 0  ;;  %vm3234_vm0 = vcmp.eq.s32.totalorder %v1045_v13, 1  ;;  %v4209_v5 = vmov 0  ;;  %v1072_v10 = vrot.slane %v3149_v50, %v2125_v33 }
 0x169   : > { %v4208_v55 = vsel %vm3230_vm5, 4294967295, %v4207_v55  ;;  %v4210_v5 = vsel %vm3234_vm0, 4294967295, %v4209_v5  ;;  %vm4211_vm11 = vcmp.lt.s32.totalorder %v2113_v30, 7  ;;  %v1949_v18 = vunpack.i.h.bf16 %v3086_v6  ;;  %vm4214_vm5 = vmpackc.low %vm4166_vm8, %vm2862_vm9 }
 0x16a   : > { %vm3244_vm3 = vmand %vm2975_vm10, %vm4211_vm11  ;;  %1653 = vmatpush1.bf16.msk.msra.mxu0 %vm4214_vm5, %v1652_v40  ;;  %vm4216_vm15 = vnez %v4139_v59  ;;  %v1080_v51 = vrot.slane %v3149_v50, %v2134_v36  ;;  %v1068_v1 = vrot.slane %v3149_v50, %v2132_v35  ;;  %v1076_v57 = vrot.slane %v3149_v50, %v2139_v38  ;;  %v1952_v50 = vpop.permute.xlu1 %1951 }
 0x16b   : > { %vm4215_vm0 = vmpackc.low %vm4173_vm7, %vm4172_vm12  ;;  %v1948_v31 = vunpack.i.l.bf16 %v3086_v6  ;;  %v4219_v54 = vunpack.i.h.bf16 %v3005_v46  ;;  %vm4220_vm9 = vcmp.lt.s32.totalorder %v2141_v39, 1  ;;  %v4222_v13 = vunpack.i.l.bf16 %v3005_v46  ;;  %1656 = vmatprep.subr.msk.bf16.mxu0 %vm3175_vm4, %v1655_v43  ;;  %v3291_v6 = vpop.permute.xlu0 %1966 }
 0x16c   : > { %1734 = vmatprep.subr.msk.bf16.mxu1 %vm4215_vm0, %v1733_v48  ;;  %vm3262_vm10 = vmpackc.low %vm4203_vm13, %vm4216_vm15  ;;  %vm4225_vm15 = vnez %v4144_v58  ;;  %vm3301_vm0 = vcmp.eq.s32.totalorder %v1002_v52, 1  ;;  %v4228_v12 = vmov 0  ;;  %v4230_v56 = vmov 0 }
 0x16d   : > { %v856_v49 = vsel %vm4220_vm9, %v4219_v54, %v1944_v37  ;;  %vm4221_vm7 = vmmov %vm4220_vm9  ;;  %v4229_v12 = vsel %vm3301_vm0, 4294967295, %v4228_v12  ;;  %vm4233_vm9 = vnez %v4149_v26  ;;  %v4234_v52 = vrot.slane %v3036_v11, %v2125_v33 }
 0x16e   : > { %v855_v59 = vsel %vm4221_vm7, %v1944_v37, %v1943_v47  ;;  %vm4223_vm8 = vmmov %vm4221_vm7  ;;  %v1742_v27 = vpack.c.bf16 %v2080_v19, %v856_v49  ;;  %v3326_v19 = vsel %vm3244_vm3, 1, %v4071_v24  ;;  %v1953_v41 = vunpack.i.l.bf16 %v1952_v50 }
 0x16f   : > { %v858_v45 = vsel %vm4223_vm8, %v1943_v47, %v4222_v13  ;;  %vm4224_vm12 = vmpackc.low %vm2945_vm6, %vm2941_vm2  ;;  %vm3305_vm2 = vcmp.eq.s32.totalorder %v1041_v42, 1  ;;  %v1739_v58 = vpack.c.bf16 %v2082_v20, %v855_v59  ;;  %vm4232_vm6 = vnez %v4147_v61  ;;  %v4352_v61 = vld [vmem:[#allocation8_spill] sm:$0xff] }
 0x170   : > { %1737 = vmatpush1.bf16.msk.msra.mxu1 %vm4224_vm12, %v1736_v53  ;;  %vm3296_vm5 = vmpackc.low %vm4203_vm13, %vm4225_vm15  ;;  %v4231_v56 = vsel %vm3305_vm2, 4294967295, %v4230_v56  ;;  %v1658_v34 = vpack.c.bf16 %v2076_v17, %v858_v45  ;;  %vm3319_vm8 = vcmp.eq.s32.totalorder %v4234_v52, 1  ;;  %v4235_v53 = vmov 0 }
 0x171   : > { %v4236_v53 = vsel %vm3319_vm8, 4294967295, %v4235_v53  ;;  %v1959_v17 = vunpack.i.h.bf16 %v3198_v62  ;;  %v1958_v20 = vunpack.i.l.bf16 %v3198_v62  ;;  %v1954_v42 = vunpack.i.h.bf16 %v1952_v50  ;;  %1740 = vmatprep.subr.msk.bf16.mxu1 %vm3262_vm10, %v1739_v58 }
 0x172   : > { %vm4237_vm12 = vcmp.ge.s32.totalorder %v2113_v30, 1  ;;  %vm4238_vm15 = vcmp.lt.s32.totalorder %v2103_v28, 7  ;;  %1659 = vmatpush1.bf16.msk.msra.mxu0 %vm3218_vm14, %v1658_v34  ;;  %vm4241_vm3 = vnez %v4165_v63  ;;  %vm3346_vm7 = vcmp.eq.s32.totalorder %v1072_v10, 1  ;;  %v3367_v10 = vpop.permute.xlu0 %1976 }
 0x173   : > { %vm3334_vm4 = vmand %vm4238_vm15, %vm4237_vm12  ;;  %v4242_v62 = vmov 0  ;;  %vm3353_vm12 = vcmp.eq.s32.totalorder %v1105_v32, 1  ;;  %v4244_v48 = vmov 0  ;;  %v1190_v22 = vrot.slane %v3227_v7, %v2125_v33  ;;  %v1962_v32 = vpop.permute.xlu1 %1961 }
 0x174   : > { %v4243_v62 = vsel %vm3346_vm7, 4294967295, %v4242_v62  ;;  %v4245_v48 = vsel %vm3353_vm12, 4294967295, %v4244_v48  ;;  %v1198_v43 = vrot.slane %v3227_v7, %v2134_v36  ;;  %vm4246_vm14 = vcmp.lt.s32.totalorder %v2141_v39, 127  ;;  %1743 = vmatpush1.bf16.msk.msra.mxu1 %vm3296_vm5, %v1742_v27 }
 0x175   : > { %v902_v37 = vsel %vm4246_vm14, %v1948_v31, %v1949_v18  ;;  %vm4247_vm10 = vcmp.lt.s32.totalorder %v2141_v39, 121  ;;  %vm4248_vm15 = vnez %v4169_v0  ;;  %vm4249_vm11 = vnez %v4171_v44 }
 0x176   : > { %v940_v47 = vsel %vm4247_vm10, %v1953_v41, %v1954_v42  ;;  %vm3373_vm12 = vcmp.eq.s32.totalorder %v1080_v51, 1  ;;  %v4250_v60 = vmov 0  ;;  %vm3377_vm8 = vcmp.eq.s32.totalorder %v1068_v1, 1 }
 0x177   : > { %v4251_v60 = vsel %vm3373_vm12, 4294967295, %v4250_v60  ;;  %v4252_v3 = vmov 0  ;;  %v4254_v54 = vrot.slane %v3036_v11, %v2132_v35  ;;  %v4255_v49 = vmov 0 }
 0x178   : > { %v4253_v3 = vsel %vm3377_vm8, 4294967295, %v4252_v3  ;;  %v1661_v59 = vpack.c.bf16 %v940_v47, %v902_v37  ;;  %v1964_v13 = vunpack.i.h.bf16 %v1962_v32  ;;  %v1131_v51 = vrot.slane %v3326_v19, %v2125_v33 }
 0x179   : > { %vm3384_vm5 = vcmp.eq.s32.totalorder %v4254_v54, 1  ;;  %v3397_v1 = vsel %vm3334_vm4, 1, %v4071_v24  ;;  %vm4259_vm8 = vcmp.lt.s32.totalorder %v2141_v39, 127  ;;  %v1963_v27 = vunpack.i.l.bf16 %v1962_v32 }
 0x17a   : > { %v4256_v49 = vsel %vm3384_vm5, 4294967295, %v4255_v49  ;;  %v901_v45 = vsel %vm4259_vm8, %v1949_v18, %v1959_v17  ;;  %vm4260_vm5 = vmmov %vm4259_vm8  ;;  %vm4263_vm7 = vnez %v4192_v4  ;;  %vm3409_vm10 = vcmp.eq.s32.totalorder %v1076_v57, 1 }
 0x17b   : > { %v903_v50 = vsel %vm4260_vm5, %v1958_v20, %v1948_v31  ;;  %vm4261_vm12 = vmmov %vm4260_vm5  ;;  %v4264_v34 = vmov 0  ;;  %vm3416_vm4 = vcmp.eq.s32.totalorder %v1101_v8, 1  ;;  %v4266_v18 = vmov 0 }
 0x17c   : > { %v904_v46 = vsel %vm4261_vm12, %v1959_v17, %v1958_v20  ;;  %v4265_v34 = vsel %vm3409_vm10, 4294967295, %v4264_v34  ;;  %v4267_v18 = vsel %vm3416_vm4, 4294967295, %v4266_v18  ;;  %v1969_v31 = vunpack.i.h.bf16 %v3291_v6  ;;  %vm4269_vm12 = vmpackc.low %vm4233_vm9, %vm4232_vm6  ;;  %v1972_v20 = vpop.permute.xlu1 %1971 }
 0x17d   : > { %v1968_v58 = vunpack.i.l.bf16 %v3291_v6  ;;  %v1979_v52 = vunpack.i.h.bf16 %v3367_v10  ;;  %vm4268_vm8 = vcmp.lt.s32.totalorder %v2141_v39, 121  ;;  %1662 = vmatprep.subr.msk.bf16.mxu0 %vm4269_vm12, %v1661_v59  ;;  %vm4270_vm5 = vnez %v4199_v21 }
 0x17e   : > { %v939_v17 = vsel %vm4268_vm8, %v1954_v42, %v1964_v13  ;;  %vm4271_vm14 = vnez %v4201_v25  ;;  %v1978_v11 = vunpack.i.l.bf16 %v3367_v10  ;;  %vm4272_vm10 = vmmov %vm4268_vm8  ;;  %vm4275_vm6 = vcmp.lt.s32.totalorder %v2103_v28, 7 }
 0x17f   : > { %v941_v8 = vsel %vm4272_vm10, %v1963_v27, %v1953_v41  ;;  %vm4273_vm13 = vmmov %vm4268_vm8  ;;  %v1748_v6 = vpack.c.bf16 %v939_v17, %v901_v45  ;;  %vm4274_vm8 = vcmp.lt.s32.totalorder %v2113_v30, 7  ;;  %v1974_v40 = vunpack.i.h.bf16 %v1972_v20 }
 0x180   : > { %v942_v57 = vsel %vm4273_vm13, %v1964_v13, %v1963_v27  ;;  %vm3443_vm9 = vmand %vm4275_vm6, %vm4274_vm8  ;;  %v1664_v26 = vpack.c.bf16 %v941_v8, %v903_v50  ;;  %v1973_v37 = vunpack.i.l.bf16 %v1972_v20  ;;  %vm3451_vm13 = vcmp.eq.s32.totalorder %v1131_v51, 1  ;;  %v1022_v51 = vpop.permute.xlu0 %1021  ;;  %v1016_v63 = vpop.permute.xlu1 %1015 }
 0x181   : > { %v1745_v42 = vpack.c.bf16 %v942_v57, %v904_v46  ;;  %v4280_v41 = vmov 0  ;;  %v1157_v47 = vrot.slane %v3397_v1, %v2125_v33  ;;  %v1139_v10 = vrot.slane %v3326_v19, %v2134_v36  ;;  %vm4289_vm10 = vmpackc.low %vm4241_vm3, %vm3095_vm1 }
 0x182   : > { %v4281_v41 = vsel %vm3451_vm13, 4294967295, %v4280_v41  ;;  %v1127_v32 = vrot.slane %v3326_v19, %v2132_v35  ;;  %vm3461_vm8 = vcmp.eq.s32.totalorder %v1190_v22, 1  ;;  %v4282_v54 = vmov 0  ;;  %1665 = vmatpush1.bf16.msk.msra.mxu0 %vm4289_vm10, %v1664_v26 }
 0x183   : > { %v4283_v54 = vsel %vm3461_vm8, 4294967295, %v4282_v54  ;;  %vm4284_vm6 = vcmp.lt.s32.totalorder %v2108_v29, 7  ;;  %vm4285_vm4 = vcmp.lt.s32.totalorder %v2103_v28, 7  ;;  %vm4288_vm13 = vcmp.lt.s32.totalorder %v2141_v39, 120  ;;  %vm4290_vm8 = vmpackc.low %vm4249_vm11, %vm4248_vm15 }
 0x184   : > { %vm3469_vm12 = vmand %vm4285_vm4, %vm4284_vm6  ;;  %v987_v13 = vsel %vm4288_vm13, %v1968_v58, %v1969_v31  ;;  %1746 = vmatprep.subr.msk.bf16.mxu1 %vm4290_vm8, %v1745_v42  ;;  %vm4291_vm4 = vcmp.lt.s32.totalorder %v2141_v39, 119  ;;  %v1165_v29 = vrot.slane %v3397_v1, %v2134_v36  ;;  %v3496_v2 = vsel %vm3443_vm9, 1, %v4071_v24 }
 0x185   : > { %v1025_v28 = vsel %vm4291_vm4, %v1973_v37, %v1974_v40  ;;  %vm4292_vm1 = vnez %v4178_v9  ;;  %vm4293_vm11 = vnez %v4176_v16  ;;  %vm4295_vm15 = vnez %v4243_v62  ;;  %vm4297_vm6 = vmmov %vm4291_vm4 }
 0x186   : > { %vm4294_vm3 = vmpackc.low %vm4292_vm1, %vm4293_vm11  ;;  %v1667_v44 = vpack.c.bf16 %v1025_v28, %v987_v13  ;;  %vm4296_vm10 = vnez %v4236_v53  ;;  %v1024_v0 = vsel %vm4297_vm6, %v1974_v40, %v1022_v51  ;;  %v1153_v22 = vrot.slane %v3397_v1, %v2132_v35  ;;  %v4372_v13 = vld [vmem:[#allocation5_spill] sm:$0xff] }
 0x187   : > { %1749 = vmatpush1.bf16.msk.msra.mxu1 %vm4294_vm3, %v1748_v6  ;;  %v1135_v9 = vrot.slane %v3326_v19, %v2139_v38  ;;  %vm4298_vm9 = vmmov %vm4288_vm13  ;;  %vm4302_vm3 = vcmp.ge.s32.totalorder %v2113_v30, 1  ;;  %vm3546_vm2 = vcmp.eq.s32.totalorder %v1157_v47, 1  ;;  %v1161_v4 = vrot.slane %v3397_v1, %v2139_v38  ;;  %v4344_v6 = vld [vmem:[#allocation3_spill] sm:$0xff] }
 0x188   : > { %v988_v16 = vsel %vm4298_vm9, %v1978_v11, %v1968_v58  ;;  %vm4299_vm4 = vmmov %vm4298_vm9  ;;  %vm4306_vm9 = vnez %v4190_v14  ;;  %vm4318_vm0 = vnez %v4208_v55  ;;  %v1268_v21 = vsel %vm3469_vm12, 1, %v4071_v24  ;;  %v4403_v14 = vld [vmem:[#allocation18_spill] sm:$0xff] }
 0x189   : > { %v989_v45 = vsel %vm4299_vm4, %v1979_v52, %v1978_v11  ;;  %vm4300_vm1 = vmmov %vm4297_vm6  ;;  %v1216_v11 = vrot.slane %v3496_v2, %v2125_v33  ;;  %v4323_v55 = vmov 0  ;;  %v1194_v62 = vrot.slane %v3227_v7, %v2139_v38 }
 0x18a   : > { %v1026_v50 = vsel %vm4300_vm1, %v1016_v63, %v1973_v37  ;;  %vm4301_vm11 = vmmov %vm4300_vm1  ;;  %vm4308_vm1 = vnez %v4251_v60  ;;  %v1276_v1 = vrot.slane %v1268_v21, %v2125_v33  ;;  %v1280_v59 = vrot.slane %v1268_v21, %v2139_v38 }
 0x18b   : > { %v1027_v46 = vsel %vm4301_vm11, %v1022_v51, %v1016_v63  ;;  %vm3525_vm6 = vmand %vm3469_vm12, %vm4302_vm3  ;;  %v1670_v58 = vpack.c.bf16 %v1026_v50, %v988_v16  ;;  %vm4309_vm11 = vnez %v4245_v48  ;;  %vm3566_vm3 = vcmp.eq.s32.totalorder %v1165_v29, 1  ;;  %v4380_v29 = vld [vmem:[#allocation10_spill] sm:$0xff]  ;;  %v4392_v16 = vld [vmem:[#allocation9_spill] sm:$0xff] }
 0x18c   : > { %vm4305_vm13 = vmmov %vm4299_vm4  ;;  %v1751_v17 = vpack.c.bf16 %v1027_v46, %v989_v45  ;;  %v1243_v25 = vsel %vm3525_vm6, 1, %v4071_v24  ;;  %vm4327_vm6 = vnez %v4229_v12  ;;  %v1212_v12 = vrot.slane %v3496_v2, %v2132_v35  ;;  %v4395_v45 = vld [vmem:[#allocation12_spill] sm:$0xff]  ;;  %v4398_v46 = vld [vmem:[#allocation19_spill] sm:$0xff] }
 0x18d   : > { %v986_v19 = vsel %vm4305_vm13, %v1969_v31, %v1979_v52  ;;  %vm4307_vm4 = vmpackc.low %vm4263_vm7, %vm4306_vm9  ;;  %vm3550_vm7 = vcmp.eq.s32.totalorder %v1139_v10, 1  ;;  %v1224_v52 = vrot.slane %v3496_v2, %v2134_v36  ;;  %vm3601_vm13 = vcmp.eq.s32.totalorder %v1127_v32, 1  ;;  %v1983_v31 = vld [vmem:[%s3832_s3] sm:$0xff] }
 0x18e   : > { %1668 = vmatprep.subr.msk.bf16.mxu0 %vm4307_vm4, %v1667_v44  ;;  %v1754_v8 = vpack.c.bf16 %v1024_v0, %v986_v19  ;;  %vm4316_vm9 = vmpackc.low %vm4271_vm14, %vm4270_vm5  ;;  %vm4317_vm4 = vnez %v4210_v5  ;;  %vm4322_vm14 = vcmp.lt.s32.totalorder %v2113_v30, 7  ;;  %v4331_v30 = vmov 0  ;;  %v4387_v44 = vld [vmem:[#allocation11_spill] sm:$0xff]  ;;  %v4399_v19 = vld [vmem:[#allocation20_spill] sm:$0xff] }
 0x18f   : > { %1671 = vmatpush1.bf16.msk.msra.mxu0 %vm4316_vm9, %v1670_v58  ;;  %vm4319_vm8 = vmpackc.low %vm4317_vm4, %vm4318_vm0  ;;  %vm4329_vm4 = vnez %v4265_v34  ;;  %v4332_v30 = vsel %vm3601_vm13, 4294967295, %v4331_v30  ;;  %v4333_v5 = vmov 0  ;;  %v1220_v48 = vrot.slane %v3496_v2, %v2139_v38  ;;  %v4361_v34 = vld [vmem:[#allocation7_spill] sm:$0xff]  ;;  %v4382_v2 = vld [vmem:[#allocation6_spill] sm:$0xff] }
 0x190   : > { %1752 = vmatprep.subr.msk.bf16.mxu1 %vm4319_vm8, %v1751_v17  ;;  %vm3582_vm0 = vmand %vm3469_vm12, %vm4322_vm14  ;;  %vm4326_vm8 = vnez %v4231_v56  ;;  %vm4330_vm12 = vnez %v4267_v18  ;;  %v1251_v60 = vrot.slane %v1243_v25, %v2125_v33  ;;  %vm4346_vm14 = vnez %v4253_v3  ;;  %v4400_v17 = vld [vmem:[#allocation13_spill] sm:$0xff] }
 0x191   : > { %v4324_v55 = vsel %vm3582_vm0, 4294967295, %v4323_v55  ;;  %vm4325_vm5 = vmpackc.low %vm4296_vm10, %vm4295_vm15  ;;  %vm3605_vm0 = vcmp.eq.s32.totalorder %v1153_v22, 1  ;;  %vm4336_vm10 = vnez %v4281_v41  ;;  %v1259_v3 = vrot.slane %v1243_v25, %v2134_v36 }
 0x192   : > { %1674 = vmatprep.subr.msk.bf16.mxu0 %vm4325_vm5, %v2395_v23  ;;  %vm4328_vm9 = vmpackc.low %vm4326_vm8, %vm4327_vm6  ;;  %v4334_v5 = vsel %vm3605_vm0, 4294967295, %v4333_v5  ;;  %v1186_v23 = vrot.slane %v3227_v7, %v2132_v35  ;;  %vm3623_vm8 = vcmp.eq.s32.totalorder %v1216_v11, 1  ;;  %vm3627_vm6 = vcmp.eq.s32.totalorder %v1135_v9, 1  ;;  %v4354_v7 = vld [vmem:[#allocation4_spill] sm:$0xff]  ;;  %v4401_v11 = vld [vmem:[#allocation15_spill] sm:$0xff] }
 0x193   : > { %1755 = vmatpush1.bf16.msk.msra.mxu1 %vm4328_vm9, %v1754_v8  ;;  %vm4335_vm15 = vmpackc.low %vm4309_vm11, %vm4308_vm1  ;;  %vm3639_vm11 = vcmp.eq.s32.totalorder %v1161_v4, 1  ;;  %vm4343_vm9 = vnez %v4324_v55  ;;  %vm3691_vm0 = vcmp.eq.s32.totalorder %v1212_v12, 1  ;;  %v1247_v42 = vrot.slane %v1243_v25, %v2132_v35  ;;  %v4402_v8 = vld [vmem:[#allocation17_spill] sm:$0xff] }
 0x194   : > { %1758 = vmatprep.subr.msk.bf16.mxu1 %vm4335_vm15, %v2350_v15  ;;  %v4341_v15 = vmov 0  ;;  %v1302_v57 = vsel %vm4343_vm9, 1, %v4071_v24  ;;  %vm4345_vm15 = vnez %v4256_v49  ;;  %vm3665_vm9 = vcmp.eq.s32.totalorder %v1224_v52, 1 }
 0x195   : > { %v4342_v15 = vsel %vm3639_vm11, 4294967295, %v4341_v15  ;;  %vm4347_vm5 = vmpackc.low %vm4345_vm15, %vm4346_vm14  ;;  %vm3661_vm11 = vcmp.eq.s32.totalorder %v1198_v43, 1  ;;  %v1284_v49 = vrot.slane %v1268_v21, %v2134_v36  ;;  %vm4356_vm15 = vnez %v4283_v54 }
 0x196   : > { %1677 = vmatpush1.bf16.msk.msra.mxu0 %vm4347_vm5, %v4344_v6  ;;  %vm4353_vm14 = vmpackc.low %vm3546_vm2, %vm4336_vm10  ;;  %vm3687_vm13 = vcmp.eq.s32.totalorder %v1186_v23, 1  ;;  %v1272_v18 = vrot.slane %v1268_v21, %v2132_v35  ;;  %vm3707_vm10 = vcmp.eq.s32.totalorder %v1194_v62, 1  ;;  %v1310_v41 = vrot.slane %v1302_v57, %v2125_v33 }
 0x197   : > { %1680 = vmatprep.subr.msk.bf16.mxu0 %vm4353_vm14, %v4352_v61  ;;  %vm4355_vm5 = vmpackc.low %vm4330_vm12, %vm4329_vm4  ;;  %vm4363_vm4 = vnez %v4342_v15  ;;  %vm3711_vm14 = vcmp.eq.s32.totalorder %v1220_v48, 1  ;;  %v1255_v32 = vrot.slane %v1243_v25, %v2139_v38  ;;  %vm3744_vm1 = vcmp.eq.s32.totalorder %v1284_v49, 1  ;;  %v1396_v25 = vpop.permute.xlu1 %1395 }
 0x198   : > { %1761 = vmatpush1.bf16.msk.msra.mxu1 %vm4355_vm5, %v4354_v7  ;;  %vm4362_vm2 = vmpackc.low %vm3566_vm3, %vm3550_vm7  ;;  %vm3720_vm7 = vcmp.eq.s32.totalorder %v1251_v60, 1  ;;  %vm4373_vm5 = vnez %v4334_v5  ;;  %v1318_v28 = vrot.slane %v1302_v57, %v2134_v36  ;;  %v1306_v54 = vrot.slane %v1302_v57, %v2132_v35  ;;  %v4394_v35 = vld [vmem:[#allocation14_spill] sm:$0xff] }
 0x199   : > { %1764 = vmatprep.subr.msk.bf16.mxu1 %vm4362_vm2, %v4361_v34  ;;  %vm1765_vm12 = vmpackc.low %vm4363_vm4, %vm3627_vm6  ;;  %vm3724_vm6 = vcmp.eq.s32.totalorder %v1276_v1, 1  ;;  %vm4374_vm2 = vnez %v4332_v30  ;;  %v1314_v9 = vrot.slane %v1302_v57, %v2139_v38  ;;  %v4397_v38 = vld [vmem:[#allocation16_spill] sm:$0xff]  ;;  %v2011_v50 = vmov 0.0  }
 0x19a   : > { %vm1768_vm3 = vmpackc.low %vm3665_vm9, %vm3661_vm11  ;;  %vm3740_vm9 = vcmp.eq.s32.totalorder %v1259_v3, 1  ;;  %vm3764_vm11 = vcmp.eq.s32.totalorder %v1272_v18, 1  ;;  %v1697_v27 = vpack.c.bf16 %v2011_v50, %v4398_v46  ;;  %v1781_v58 = vpack.c.bf16 %v2011_v50, %v4399_v19 }
 0x19b   : > { %vm4375_vm4 = vmpackc.low %vm4373_vm5, %vm4374_vm2  ;;  %v1700_v39 = vpack.c.bf16 %v2011_v50, %v4402_v8  ;;  %v1784_v4 = vpack.c.bf16 %v2011_v50, %v4403_v14  ;;  %v1610_v52 = vcombine.low %v1983_v31, %v1983_v31 }
 0x19c   : > { %1683 = vmatpush1.bf16.msk.msra.mxu0 %vm4375_vm4, %v4372_v13  ;;  %vm4381_vm5 = vmpackc.low %vm3623_vm8, %vm4356_vm15  ;;  %1767 = vmatpush1.bf16.msk.msra.mxu1 %vm1765_vm12, %v4382_v2  ;;  %vm3760_vm4 = vcmp.eq.s32.totalorder %v1247_v42, 1  ;;  %vm1320_vm15 = vcmp.eq.s32.totalorder %v1310_v41, 1 }
 0x19d   : > { %1686 = vmatprep.subr.msk.bf16.mxu0 %vm4381_vm5, %v4380_v29  ;;  %vm1771_vm2 = vmpackc.low %vm3711_vm14, %vm3707_vm10  ;;  %1770 = vmatprep.subr.msk.bf16.mxu1 %vm1768_vm3, %v4387_v44  ;;  %vm3778_vm10 = vcmp.eq.s32.totalorder %v1255_v32, 1  ;;  %vm3782_vm14 = vcmp.eq.s32.totalorder %v1280_v59, 1  ;;  %vm1321_vm5 = vcmp.eq.s32.totalorder %v1314_v9, 1 }
 0x19e   : > { %vm1690_vm8 = vmpackc.low %vm3724_vm6, %vm3720_vm7  ;;  %vm1322_vm7 = vcmp.eq.s32.totalorder %v1318_v28, 1  ;;  %vm4396_vm6 = vmmov 1  }
 0x19f   : > { %vm1774_vm12 = vmpackc.low %vm3744_vm1, %vm3740_vm9 }
 0x1a0   : > { %vm4393_vm3 = vmpackc.low %vm3691_vm0, %vm3687_vm13  ;;  %1773 = vmatpush1.bf16.msk.msra.mxu1 %vm1771_vm2, %v4395_v45  ;;  %vm1319_vm0 = vcmp.eq.s32.totalorder %v1306_v54, 1 }
 0x1a1   : > { %1689 = vmatpush1.bf16.msk.msra.mxu0 %vm4393_vm3, %v4392_v16  ;;  %vm1693_vm1 = vmpackc.low %vm3764_vm11, %vm3760_vm4  ;;  %1776 = vmatprep.subr.msk.bf16.mxu1 %vm1774_vm12, %v4397_v38 }
 0x1a2   : > { %1692 = vmatprep.subr.msk.bf16.mxu0 %vm1690_vm8, %v4394_v35  ;;  %vm1696_vm9 = vmpackc.low %vm4396_vm6, %vm1320_vm15  ;;  %vm1504_vm8 = vcmask 7168   ;;  %vm1506_vm15 = vcmask 15360  }
 0x1a3   : > { %vm1777_vm13 = vmpackc.low %vm3782_vm14, %vm3778_vm10 }
 0x1a4   : > { %vm1780_vm11 = vmpackc.low %vm4396_vm6, %vm1322_vm7  ;;  %1779 = vmatpush1.bf16.msk.msra.mxu1 %vm1777_vm13, %v4401_v11 }
 0x1a5   : > { %1695 = vmatpush1.bf16.msk.msra.mxu0 %vm1693_vm1, %v4400_v17  ;;  %vm1699_vm2 = vmpackc.low %vm4396_vm6, %vm1319_vm0  ;;  %1782 = vmatprep.subr.msk.bf16.mxu1 %vm1780_vm11, %v1781_v58 }
 0x1a6   : > { %1698 = vmatprep.subr.msk.bf16.mxu0 %vm1696_vm9, %v1697_v27  ;;  %vm1783_vm4 = vmpackc.low %vm4396_vm6, %vm1321_vm5 }
 0x1a8   : > { %1785 = vmatpush1.bf16.msk.msra.mxu1 %vm1783_vm4, %v1784_v4 }
 0x1a9   : > { %1701 = vmatpush1.bf16.msk.msra.mxu0 %vm1699_vm2, %v1700_v39 }
 0x1ab   : > { %1482 = vmatmul.mubr.bf16.vlgmr.msra.gmra.mrb[0].mxu1 %v1610_v52 }
 0x1ac   : > { %1441 = vmatmul.mubr.bf16.vlgmr.msra.gmra.mrb[0].mxu0 %v1610_v52 }
 0x27e   : > { %v1483_v5 = vpop.f32.mrb[0].mxu1 }
 0x27f   : > { %v1442_v21 = vpop.f32.mrb[0].mxu0  ;;  %v1484_v12 = vadd.f32 %v1483_v5, %v1396_v25  ;;  %v1485_v53 = vpop.f32.mrb[1].mxu1 }
 0x280   : > { %v1443_v55 = vadd.f32 %v1442_v21, %v1396_v25  ;;  %v1444_v30 = vpop.f32.mrb[1].mxu0  ;;  %v1486_v48 = vadd.f32 %v1485_v53, %v1396_v25  ;;  %v1487_v60 = vpop.f32.mrb[2].mxu1 }
 0x281   : > { %v1445_v23 = vadd.f32 %v1444_v30, %v1396_v25  ;;  %v1446_v56 = vpop.f32.mrb[2].mxu0  ;;  %1510 = vst [vmem:[%s285_s22 + $0x10] sm:$0xff] %v1484_v12  ;;  %v1488_v6 = vpop.f32.mrb[3].mxu1  ;;  %v1497_v20 = vmul.f32 %v1484_v12, %v1484_v12 }
 0x282   : > { %v1495_v62 = vmul.f32 %v1443_v55, %v1443_v55  ;;  %1508 = vst [vmem:[%s285_s22] sm:$0xff] %v1443_v55  ;;  %v1447_v15 = vpop.f32.mrb[3].mxu0  ;;  %1511 = vst [vmem:[%s285_s22 + $0x18] sm:$0xff] %v1486_v48  ;;  %v1498_v61 = vmul.f32 %v1486_v48, %v1486_v48 }
 0x283   : > { %v1490_v1 = vadd.f32 %v1445_v23, %v1443_v55  ;;  %v1496_v57 = vmul.f32 %v1445_v23, %v1445_v23  ;;  %1509 = vst [vmem:[%s285_s22 + $0x8] sm:$0xff] %v1445_v23 }
 0x285   : > { %v1491_v24 = vadd.f32 %v1490_v1, %v1484_v12  ;;  %v1499_v3 = vadd.f32 %v1496_v57, %v1495_v62 }
 0x287   : > { %v1492_v49 = vadd.f32 %v1491_v24, %v1486_v48  ;;  %v1500_v7 = vadd.f32 %v1499_v3, %v1497_v20 }
 0x289   : > { %1493 = vadd.xlane.f32.xlu0 %v1492_v49  ;;  %v1501_v43 = vadd.f32 %v1500_v7, %v1498_v61 }
 0x28b   : > { %1502 = vadd.xlane.f32.xlu1 %v1501_v43 }
 0x316   : > { %v1494_v26 = vpop.xlane.xlu0 %1493 }
 0x318   : > { %v1503_v42 = vpop.xlane.xlu1 %1502 }
 0x319   : > { %v1505_v18 = vsel %vm1504_vm8, %v1494_v26, %v1503_v42 }
 0x31a   : > { %1507 = vst.msk [vmem:[%s289_s27] sm:$0xff] %vm1506_vm15, %v1505_v18 }
 0x31b PF: > { %s18_s24 = sadd.s32 1, %s1990_s24  }
 0x31c   : > { %p15_p4 = scmp.ge.s32.totalorder %s18_s24, 4  }
 0x31e   :  { %17 = sbr.rel (!%p15_p4) target bundleno = 1 (0x1), region = 88 }

// kernel: voxres_module_forward.3
= control target key start
LH: loop header
LB: loop body
LE: loop exit
PB: predicated region body
PF: predicated region fallthrough
CT: control target
= control target key end

     0   :  { %s2038_s24 = smov 0   ;;  %s3788_s0 = inlined_call_operand.vmem [shape: f32[2,8,512], index: 0, kind: input, shape index: {}]   ;;  %s3789_s1 = inlined_call_operand.vmem [shape: f32[2,8,512], index: 1, kind: input, shape index: {}]   ;;  %s3790_s2 = inlined_call_operand.vmem [shape: f32[8,1], index: 2, kind: input, shape index: {}]   ;;  %s3791_s3 = inlined_call_operand.vmem [shape: f32[8,1], index: 3, kind: input, shape index: {}]   ;;  %s3792_s4 = inlined_call_operand.vmem [shape: bf16[8,224], index: 4, kind: input, shape index: {}]   ;;  %s3793_s5 = inlined_call_operand.vmem [shape: f32[8,1], index: 5, kind: input, shape index: {}]   ;;  %s3794_s6 = inlined_call_operand.vmem [shape: s32[3,512], index: 6, kind: input, shape index: {}]   ;;  %s3795_s7 = inlined_call_operand.vmem [shape: f32[2,8,512], index: 7, kind: output, shape index: {}]  }
   0x1 LB: > { %s1578_s25 = sadd.s32 4294967295, %s1976_s24   ;;  %p1582_p0 = scmp.ge.s32.totalorder %s1976_s24, 1  ;;  %s1976_s24 = sphi %s2038_s24, %s17_s24  }
   0x2   : > { %p247_p1 = scmp.lt.s32.totalorder %s1976_s24, 3 }
   0x4   : > { %p248_p2 = pnand %p1582_p0, %p247_p1 }
   0x6   : > { %251 = sbr.rel (%p248_p2) target bundleno = 652 (0x28c), region = 48 }
   0xd   : > { %v304_v0 = vld [vmem:[%s3790_s2] sm:$0xff]  ;;  %v3825_v1 = vmov 0   ;;  %p284_p3 = scmp.lt.s32.totalorder %s1578_s25, 1  ;;  %s1979_s11 = smov 72   ;;  %vm1413_vm0 = vcmask 785408   ;;  %v347_v28 = vlaneseq  ;;  %v3919_v48 = vmov 0 }
   0xe   : > { %1796 = vset.pattern.permute.xlu0 %v3825_v1  ;;  %v314_v2 = vld [vmem:[%s3791_s3] sm:$0xff]  ;;  %s1980_s12 = smov 73   ;;  %s1981_s13 = smov 71   ;;  %v4186_v49 = vmov 0 }
   0xf   : > { %307 = vperm.xlu0 %1796, %v304_v0   ;;  %s4390_s25 = smov (!%p284_p3, %s1578_s25), 1  ;;  %s1982_s14 = smov 65   ;;  %v1401_v23 = vld [vmem:[%s3793_s5] sm:$0xff]  ;;  %v358_v30 = vshrl.u32 %v347_v28, 7  ;;  %v2123_v37 = vand.u32 127, %v347_v28 }
  0x10   : > { %s2053_s30 = sshll.u32 %s4390_s25, 5  ;;  %s1983_s15 = smov 64   ;;  %v1344_v24 = vld [vmem:[%s3792_s4] sm:$0xff] }
  0x11   : > { %s288_s10 = scalar_lea.vmem %s3788_s0, %s2053_s30  ;;  %s1984_s16 = smov 63   ;;  %v1592_v25 = vcombine.high %v1344_v24, %v1344_v24  ;;  %v2088_v26 = vld [vmem:[%s3794_s6] ss:$4 sm:$0xf]  ;;  %v2110_v31 = vsub.s32 1, %v358_v30  ;;  %v2115_v33 = vsub.s32 0, %v358_v30 }
  0x12   : > { %v300_v3 = vld [vmem:[%s288_s10] sm:$0xff]  ;;  %v301_v5 = vld [vmem:[%s288_s10 + $0x8] sm:$0xff]  ;;  %v302_v6 = vld [vmem:[%s288_s10 + $0x10] sm:$0xff]  ;;  %s1985_s17 = smov 57   ;;  %s1986_s18 = smov 56   ;;  %vm333_vm1 = vcmp.ge.s32.totalorder %v2088_v26, 1 }
  0x13   : > { %317 = vperm.xlu0 %1796, %v314_v2   ;;  %v303_v7 = vld [vmem:[%s288_s10 + $0x18] sm:$0xff]  ;;  %s1987_s19 = smov 55   ;;  %s1988_s20 = smov 9   ;;  %1593 = vmatprep.mubr.msk.bf16.mxu0 %vm1413_vm0, %v1592_v25  ;;  %v2093_v27 = vld [vmem:[%s3794_s6 + $0x1] ss:$4 sm:$0xf] }
  0x14   : > { %s1989_s21 = smov 8   ;;  %s1990_s22 = smov 7   ;;  %1594 = vmatprep.mubr.msk.bf16.mxu1 %vm1413_vm0, %v1592_v25  ;;  %v2098_v29 = vld [vmem:[%s3794_s6 + $0x2] ss:$4 sm:$0xf]  ;;  %vm3796_vm2 = vcmp.ge.s32.totalorder %v2093_v27, 1 }
  0x15   : > { %s1991_s23 = smov 1   ;;  %s1992_s25 = smov 127   ;;  %vm3801_vm3 = vcmp.ge.s32.totalorder %v2098_v29, 1  ;;  %vm354_vm4 = vmand %vm333_vm1, %vm3796_vm2  ;;  %vm3797_vm5 = vcmp.lt.s32.totalorder %v2098_v29, 7  ;;  %v2117_v34 = vsub.s32 3, %v358_v30  ;;  %v2135_v44 = vsub.s32 2, %v358_v30 }
  0x16   : > { %s1993_s26 = smov 121   ;;  %s1994_s27 = smov 120   ;;  %vm355_vm6 = vmand %vm354_vm4, %vm3801_vm3  ;;  %v394_v35 = vsel %vm354_vm4, 1, %v3825_v1  ;;  %vm3798_vm9 = vcmp.lt.s32.totalorder %v2093_v27, 7  ;;  %vm3800_vm10 = vcmp.lt.s32.totalorder %v2123_v37, 73  ;;  %vm3799_vm12 = vcmp.lt.s32.totalorder %v2123_v37, 72 }
  0x17   : > { %s1995_s28 = smov 119   ;;  %vm440_vm7 = vmand %vm354_vm4, %vm3797_vm5  ;;  %v356_v32 = vsel %vm355_vm6, 1, %v3825_v1  ;;  %v402_v39 = vrot.slane %v394_v35, %v2110_v31  ;;  %v398_v41 = vrot.slane %v394_v35, %v2115_v33  ;;  %v410_v43 = vrot.slane %v394_v35, %v2117_v34 }
  0x18   : > { %v2121_v36 = vsel %vm440_vm7, 1, %v3825_v1  ;;  %v364_v38 = vrot.slane %v356_v32, %v2110_v31  ;;  %vm479_vm8 = vmand %vm333_vm1, %vm3801_vm3  ;;  %v360_v40 = vrot.slane %v356_v32, %v2115_v33  ;;  %v372_v42 = vrot.slane %v356_v32, %v2117_v34 }
  0x19   : > { %v449_v45 = vrot.slane %v2121_v36, %v2110_v31  ;;  %v480_v46 = vsel %vm479_vm8, 1, %v3825_v1  ;;  %vm2147_vm13 = vcmp.eq.s32.totalorder %v402_v39, 1  ;;  %vm2156_vm0 = vcmp.eq.s32.totalorder %v398_v41, 1  ;;  %vm564_vm7 = vmand %vm333_vm1, %vm3797_vm5 }
  0x1a   : > { %vm2142_vm11 = vcmp.eq.s32.totalorder %v364_v38, 1  ;;  %vm2152_vm15 = vcmp.eq.s32.totalorder %v360_v40, 1  ;;  %vm2160_vm4 = vcmp.eq.s32.totalorder %v372_v42, 1  ;;  %vm2164_vm6 = vcmp.eq.s32.totalorder %v410_v43, 1  ;;  %vm2203_vm5 = vmand %vm333_vm1, %vm3798_vm9 }
  0x1b   : > { %vm2177_vm2 = vcmp.eq.s32.totalorder %v449_v45, 1  ;;  %v488_v56 = vrot.slane %v480_v46, %v2110_v31  ;;  %v368_v57 = vrot.slane %v356_v32, %v2135_v44  ;;  %v406_v58 = vrot.slane %v394_v35, %v2135_v44  ;;  %vm2247_vm8 = vmand %vm2203_vm5, %vm3801_vm3 }
  0x1c   : > { %v445_v63 = vrot.slane %v2121_v36, %v2115_v33  ;;  %v484_v0 = vrot.slane %v480_v46, %v2115_v33  ;;  %v2194_v2 = vsel %vm333_vm1, 1, %v3825_v1  ;;  %v3907_v24 = vmov 0 }
  0x1d   : > { %vm2224_vm1 = vcmp.eq.s32.totalorder %v488_v56, 1  ;;  %vm2231_vm9 = vcmp.eq.s32.totalorder %v368_v57, 1  ;;  %v534_v25 = vrot.slane %v2194_v2, %v2110_v31  ;;  %v3913_v40 = vmov 0 }
  0x1e   : > { %vm2263_vm3 = vcmp.eq.s32.totalorder %v484_v0, 1  ;;  %v3917_v42 = vmov 0  ;;  %v530_v43 = vrot.slane %v2194_v2, %v2115_v33  ;;  %v542_v56 = vrot.slane %v2194_v2, %v2117_v34 }
  0x1f   : > { %v3914_v40 = vsel %vm2263_vm3, 4294967295, %v3913_v40 }
  0x20   : > { %vm2412_vm3 = vcmp.eq.s32.totalorder %v530_v43, 1  ;;  %v3955_v43 = vmov 0 }
  0x8e   : > { %v308_v4 = vpop.permute.xlu0 %307 }
  0x8f   : > { %v310_v8 = vmul.f32 %v308_v4, %v300_v3  ;;  %v311_v9 = vmul.f32 %v308_v4, %v301_v5  ;;  %v312_v10 = vmul.f32 %v308_v4, %v302_v6  ;;  %v313_v11 = vmul.f32 %v308_v4, %v303_v7 }
  0x90   : > { %v2197_v3 = vsel %vm564_vm7, 1, %v3825_v1  ;;  %vm1600_vm7 = vmpackc.low %vm2147_vm13, %vm2142_vm11  ;;  %v457_v7 = vrot.slane %v2121_v36, %v2117_v34  ;;  %vm2315_vm11 = vcmp.eq.s32.totalorder %v534_v25, 1 }
  0x91   : > { %v573_v28 = vrot.slane %v2197_v3, %v2110_v31  ;;  %v569_v45 = vrot.slane %v2197_v3, %v2115_v33  ;;  %v581_v57 = vrot.slane %v2197_v3, %v2117_v34 }
  0x92   : > { %v318_v12 = vpop.permute.xlu0 %317 }
  0x93   : > { %v2059_v13 = vadd.f32 %v318_v12, %v310_v8  ;;  %v2061_v14 = vadd.f32 %v318_v12, %v311_v9  ;;  %v2063_v15 = vadd.f32 %v318_v12, %v312_v10  ;;  %v2065_v16 = vadd.f32 %v318_v12, %v313_v11 }
  0x94   : > { %v496_v8 = vrot.slane %v480_v46, %v2117_v34  ;;  %v3953_v12 = vmov 0 }
  0x95   : > { %v3811_v17 = vmax.f32 %v2059_v13, 0.0  ;;  %v3812_v18 = vmax.f32 %v2061_v14, 0.0  ;;  %v3808_v19 = vmax.f32 %v2063_v15, 0.0  ;;  %v3809_v20 = vmax.f32 %v2065_v16, 0.0 }
  0x97   : > { %v1807_v21 = vpack.i.bf16 %v3812_v18, %v3811_v17  ;;  %v1802_v22 = vpack.i.bf16 %v3809_v20, %v3808_v19  ;;  %v3966_v18 = vmov 0 }
  0x99   : > { %1808 = vrot.lane.b32.xlu0 %v1807_v21, %s1979_s11  ;;  %1798 = vrot.lane.b32.xlu1 %v1807_v21, %s1980_s12 }
  0x9d   : > { %1818 = vrot.lane.b32.xlu0 %v1807_v21, %s1981_s13  ;;  %1803 = vrot.lane.b32.xlu1 %v1802_v22, %s1980_s12 }
  0xa1   : > { %1828 = vrot.lane.b32.xlu0 %v1807_v21, %s1982_s14  ;;  %1813 = vrot.lane.b32.xlu1 %v1802_v22, %s1979_s11 }
  0xa5   : > { %1838 = vrot.lane.b32.xlu0 %v1807_v21, %s1983_s15  ;;  %1823 = vrot.lane.b32.xlu1 %v1802_v22, %s1981_s13 }
  0xa9   : > { %1848 = vrot.lane.b32.xlu0 %v1807_v21, %s1984_s16  ;;  %1833 = vrot.lane.b32.xlu1 %v1802_v22, %s1982_s14 }
  0xad   : > { %1858 = vrot.lane.b32.xlu0 %v1807_v21, %s1985_s17  ;;  %1843 = vrot.lane.b32.xlu1 %v1802_v22, %s1983_s15 }
  0xb1   : > { %1868 = vrot.lane.b32.xlu0 %v1807_v21, %s1986_s18  ;;  %1853 = vrot.lane.b32.xlu1 %v1802_v22, %s1984_s16 }
  0xb5   : > { %1878 = vrot.lane.b32.xlu0 %v1807_v21, %s1987_s19  ;;  %1863 = vrot.lane.b32.xlu1 %v1802_v22, %s1985_s17 }
  0xb9   : > { %1888 = vrot.lane.b32.xlu0 %v1807_v21, %s1988_s20  ;;  %1873 = vrot.lane.b32.xlu1 %v1802_v22, %s1986_s18 }
  0xbd   : > { %1898 = vrot.lane.b32.xlu0 %v1807_v21, %s1989_s21  ;;  %1883 = vrot.lane.b32.xlu1 %v1802_v22, %s1987_s19 }
  0xc1   : > { %1908 = vrot.lane.b32.xlu0 %v1807_v21, %s1990_s22  ;;  %1893 = vrot.lane.b32.xlu1 %v1802_v22, %s1988_s20 }
  0xc5   : > { %1918 = vrot.lane.b32.xlu0 %v1807_v21, %s1991_s23  ;;  %1903 = vrot.lane.b32.xlu1 %v1802_v22, %s1989_s21  ;;  %s293_s21 = scalar_lea.vmem %s3789_s1, %s2053_s30 }
  0xc9   : > { %1928 = vrot.lane.b32.xlu0 %v1807_v21, %s1992_s25  ;;  %1913 = vrot.lane.b32.xlu1 %v1802_v22, %s1990_s22 }
  0xcd   : > { %1938 = vrot.lane.b32.xlu0 %v1807_v21, %s1993_s26  ;;  %1923 = vrot.lane.b32.xlu1 %v1802_v22, %s1991_s23 }
  0xd1   : > { %1948 = vrot.lane.b32.xlu0 %v1807_v21, %s1994_s27  ;;  %1933 = vrot.lane.b32.xlu1 %v1802_v22, %s1992_s25  ;;  %s298_s25 = scalar_lea.vmem %s3795_s7, %s2053_s30 }
  0xd5   : > { %1958 = vrot.lane.b32.xlu0 %v1807_v21, %s1995_s28  ;;  %1943 = vrot.lane.b32.xlu1 %v1802_v22, %s1993_s26  ;;  %v453_v21 = vrot.slane %v2121_v36, %v2135_v44 }
  0xd9   : > { %1404 = vperm.xlu0 %1796, %v1401_v23   ;;  %1953 = vrot.lane.b32.xlu1 %v1802_v22, %s1994_s27  ;;  %v3905_v23 = vmov 0 }
  0xda   : > { %v3906_v23 = vsel %vm2231_vm9, 4294967295, %v3905_v23  ;;  %vm2272_vm9 = vcmp.eq.s32.totalorder %v496_v8, 1  ;;  %v3923_v8 = vmov 0 }
  0xdb   : > { %v3918_v42 = vsel %vm2272_vm9, 4294967295, %v3917_v42  ;;  %v3924_v8 = vsel %vm2315_vm11, 4294967295, %v3923_v8 }
  0xdd   : > { %1963 = vrot.lane.b32.xlu1 %v1802_v22, %s1995_s28  ;;  %v492_v22 = vrot.slane %v480_v46, %v2135_v44 }
  0xdf   : > { %vm2291_vm14 = vcmp.eq.s32.totalorder %v492_v22, 1 }
 0x10b   : > { %v2172_v53 = vpop.permute.xlu0 %1808  ;;  %v2174_v54 = vpop.permute.xlu1 %1798 }
 0x10c   : > { %v1811_v59 = vunpack.i.h.bf16 %v2172_v53  ;;  %v1810_v60 = vunpack.i.l.bf16 %v2172_v53  ;;  %v1801_v61 = vunpack.i.h.bf16 %v2174_v54  ;;  %v1800_v62 = vunpack.i.l.bf16 %v2174_v54 }
 0x10d   : > { %v3921_v54 = vmov 0 }
 0x10e   : > { %v352_v5 = vsel %vm3800_vm10, %v1800_v62, %v1801_v61  ;;  %v392_v6 = vsel %vm3799_vm12, %v1810_v60, %v1811_v59  ;;  %vm2235_vm12 = vcmp.eq.s32.totalorder %v406_v58, 1  ;;  %vm2259_vm10 = vcmp.eq.s32.totalorder %v445_v63, 1 }
 0x10f   : > { %v2220_v9 = vpop.permute.xlu0 %1818  ;;  %v1804_v10 = vpop.permute.xlu1 %1803  ;;  %v2222_v11 = vpack.c.bf16 %v392_v6, %v352_v5  ;;  %v3908_v24 = vsel %vm2235_vm12, 4294967295, %v3907_v24  ;;  %vm2268_vm12 = vcmp.eq.s32.totalorder %v457_v7, 1  ;;  %v3922_v54 = vsel %vm2291_vm14, 4294967295, %v3921_v54 }
 0x110   : > { %v1821_v32 = vunpack.i.h.bf16 %v2220_v9  ;;  %v1820_v35 = vunpack.i.l.bf16 %v2220_v9  ;;  %v1806_v36 = vunpack.i.h.bf16 %v1804_v10  ;;  %v1805_v38 = vunpack.i.l.bf16 %v1804_v10 }
 0x111   : > { %1602 = vmatprep.subr.msk.bf16.mxu0 %vm1600_vm7, %v2222_v11  ;;  %vm2287_vm7 = vcmp.eq.s32.totalorder %v453_v21, 1  ;;  %v2302_v58 = vsel %vm2247_vm8, 1, %v3825_v1  ;;  %v2307_v63 = vsel %vm2203_vm5, 1, %v3825_v1  ;;  %vm2319_vm8 = vcmp.eq.s32.totalorder %v573_v28, 1 }
 0x112   : > { %v3920_v48 = vsel %vm2287_vm7, 4294967295, %v3919_v48  ;;  %v3925_v10 = vmov 0  ;;  %vm3927_vm14 = vcmp.lt.s32.totalorder %v2123_v37, 71  ;;  %vm3928_vm7 = vcmp.lt.s32.totalorder %v2123_v37, 73 }
 0x113   : > { %v2280_v46 = vpop.permute.xlu0 %1828  ;;  %v1814_v47 = vpop.permute.xlu1 %1813  ;;  %v3926_v10 = vsel %vm2319_vm8, 4294967295, %v3925_v10  ;;  %v438_v21 = vsel %vm3927_vm14, %v1820_v35, %v1821_v32  ;;  %v353_v22 = vsel %vm3928_vm7, %v1806_v36, %v1800_v62  ;;  %vm3929_vm13 = vmmov %vm3928_vm7  ;;  %vm3931_vm14 = vcmp.lt.s32.totalorder %v2123_v37, 65 }
 0x114   : > { %v1831_v0 = vunpack.i.h.bf16 %v2280_v46  ;;  %v1830_v5 = vunpack.i.l.bf16 %v2280_v46  ;;  %v1816_v6 = vunpack.i.h.bf16 %v1814_v47  ;;  %v1815_v7 = vunpack.i.l.bf16 %v1814_v47  ;;  %vm3930_vm8 = vmmov %vm3928_vm7 }
 0x115   : > { %v350_v25 = vsel %vm3929_vm13, %v1805_v38, %v1806_v36  ;;  %v351_v28 = vsel %vm3930_vm8, %v1801_v61, %v1805_v38  ;;  %vm3932_vm7 = vcmp.lt.s32.totalorder %v2123_v37, 72  ;;  %vm3935_vm8 = vnez %v3906_v23 }
 0x116   : > { %v477_v30 = vsel %vm3931_vm14, %v1830_v5, %v1831_v0  ;;  %v393_v62 = vsel %vm3932_vm7, %v1816_v6, %v1810_v60  ;;  %vm3933_vm13 = vmmov %vm3932_vm7  ;;  %vm3936_vm9 = vnez %v3908_v24  ;;  %vm3938_vm14 = vcmp.lt.s32.totalorder %v2098_v29, 7 }
 0x117   : > { %v390_v36 = vsel %vm3933_vm13, %v1815_v7, %v1816_v6  ;;  %vm3934_vm11 = vmmov %vm3932_vm7  ;;  %v2357_v61 = vpack.c.bf16 %v477_v30, %v438_v21  ;;  %v2359_v38 = vpop.permute.xlu0 %1838  ;;  %v1824_v19 = vpop.permute.xlu1 %1823  ;;  %v2361_v20 = vpack.c.bf16 %v393_v62, %v353_v22  ;;  %v538_v21 = vrot.slane %v2194_v2, %v2135_v44 }
 0x118   : > { %v391_v47 = vsel %vm3934_vm11, %v1811_v59, %v1815_v7  ;;  %v2363_v60 = vpack.c.bf16 %v390_v36, %v350_v25  ;;  %vm2371_vm11 = vmand %vm2203_vm5, %vm3938_vm14  ;;  %v621_v59 = vrot.slane %v2302_v58, %v2110_v31  ;;  %v659_v7 = vrot.slane %v2307_v63, %v2110_v31 }
 0x119   : > { %3937 = vst [vmem:[#allocation3_spill] sm:$0xff] %v2357_v61  ;;  %v2365_v6 = vpack.c.bf16 %v391_v47, %v351_v28  ;;  %v577_v22 = vrot.slane %v2197_v3, %v2135_v44  ;;  %vm3941_vm7 = vcmp.ge.s32.totalorder %v2098_v29, 1  ;;  %vm3942_vm13 = vcmp.ge.s32.totalorder %v2093_v27, 1  ;;  %vm3945_vm14 = vmpackc.low %vm2156_vm0, %vm2152_vm15 }
 0x11a   : > { %vm2387_vm5 = vmand %vm3942_vm13, %vm3941_vm7  ;;  %v3819_v25 = vunpack.i.h.bf16 %v2359_v38  ;;  %v1840_v28 = vunpack.i.l.bf16 %v2359_v38  ;;  %v1826_v30 = vunpack.i.h.bf16 %v1824_v19  ;;  %v1825_v62 = vunpack.i.l.bf16 %v1824_v19  ;;  %1605 = vmatpush1.bf16.msk.msra.mxu0 %vm3945_vm14, %v2361_v20 }
 0x11b   : > { %vm3946_vm7 = vmpackc.low %vm2164_vm6, %vm2160_vm4  ;;  %vm2416_vm15 = vcmp.eq.s32.totalorder %v569_v45, 1  ;;  %v617_v50 = vrot.slane %v2302_v58, %v2115_v33  ;;  %v655_v51 = vrot.slane %v2307_v63, %v2115_v33  ;;  %v629_v52 = vrot.slane %v2302_v58, %v2117_v34  ;;  %v2434_v2 = vpop.permute.xlu0 %1848  ;;  %v1834_v3 = vpop.permute.xlu1 %1833 }
 0x11c   : > { %1686 = vmatprep.subr.msk.bf16.mxu1 %vm3946_vm7, %v2363_v60  ;;  %vm3947_vm13 = vmpackc.low %vm2224_vm1, %vm2177_vm2  ;;  %v667_v55 = vrot.slane %v2307_v63, %v2117_v34  ;;  %vm2437_vm4 = vcmp.eq.s32.totalorder %v542_v56, 1  ;;  %vm2441_vm6 = vcmp.eq.s32.totalorder %v581_v57, 1  ;;  %v2448_v24 = vsel %vm2371_vm11, 1, %v3825_v1 }
 0x11d   : > { %1608 = vmatprep.subr.msk.bf16.mxu0 %vm3947_vm13, %v2357_v61  ;;  %vm3952_vm2 = vmpackc.low %vm3936_vm9, %vm3935_vm8  ;;  %v3954_v12 = vsel %vm2437_vm4, 4294967295, %v3953_v12  ;;  %v3956_v43 = vsel %vm2441_vm6, 4294967295, %v3955_v43  ;;  %v2453_v23 = vsel %vm2387_vm5, 1, %v3825_v1  ;;  %v625_v45 = vrot.slane %v2302_v58, %v2135_v44 }
 0x11e   : > { %1689 = vmatpush1.bf16.msk.msra.mxu1 %vm3952_vm2, %v2365_v6  ;;  %v663_v56 = vrot.slane %v2307_v63, %v2135_v44  ;;  %v3814_v57 = vunpack.i.h.bf16 %v2434_v2  ;;  %v3818_v36 = vunpack.i.l.bf16 %v2434_v2  ;;  %v1836_v47 = vunpack.i.h.bf16 %v1834_v3  ;;  %vm3962_vm7 = vmmov %vm2268_vm12 }
 0x11f   : > { %v1835_v17 = vunpack.i.l.bf16 %v1834_v3  ;;  %vm3957_vm9 = vnez %v3914_v40  ;;  %vm3958_vm8 = vcmp.lt.s32.totalorder %v2123_v37, 64  ;;  %vm3959_vm11 = vcmp.lt.s32.totalorder %v2123_v37, 71 }
 0x120   : > { %v524_v58 = vsel %vm3958_vm8, %v1840_v28, %v3819_v25  ;;  %v439_v63 = vsel %vm3959_vm11, %v1826_v30, %v1820_v35  ;;  %vm3960_vm5 = vmmov %vm3959_vm11  ;;  %vm3963_vm13 = vnez %v3918_v42  ;;  %vm2485_vm0 = vcmp.eq.s32.totalorder %v538_v21, 1 }
 0x121   : > { %v436_v53 = vsel %vm3960_vm5, %v1825_v62, %v1826_v30  ;;  %vm3961_vm14 = vmmov %vm3960_vm5  ;;  %v3964_v3 = vmov 0  ;;  %vm2489_vm8 = vcmp.eq.s32.totalorder %v577_v22, 1  ;;  %vm3968_vm11 = vcmp.lt.s32.totalorder %v2123_v37, 63 }
 0x122   : > { %v437_v4 = vsel %vm3961_vm14, %v1821_v32, %v1825_v62  ;;  %v3965_v3 = vsel %vm2485_vm0, 4294967295, %v3964_v3  ;;  %v3967_v18 = vsel %vm2489_vm8, 4294967295, %v3966_v18  ;;  %v562_v9 = vsel %vm3968_vm11, %v3818_v36, %v3814_v57  ;;  %v2521_v57 = vpop.permute.xlu0 %1858 }
 0x123   : > { %vm3969_vm5 = vcmp.lt.s32.totalorder %v2123_v37, 65  ;;  %vm3972_vm2 = vnez %v3920_v48  ;;  %vm3973_vm1 = vnez %v3922_v54  ;;  %v2513_v22 = vpack.c.bf16 %v562_v9, %v524_v58 }
 0x124   : > { %v478_v32 = vsel %vm3969_vm5, %v1836_v47, %v1830_v5  ;;  %vm3970_vm14 = vmmov %vm3969_vm5  ;;  %vm3976_vm11 = vnez %v3924_v8  ;;  %vm2531_vm8 = vcmp.eq.s32.totalorder %v659_v7, 1  ;;  %v745_v58 = vrot.slane %v2453_v23, %v2110_v31 }
 0x125   : > { %v475_v35 = vsel %vm3970_vm14, %v1835_v17, %v1836_v47  ;;  %vm3971_vm12 = vmmov %vm3969_vm5  ;;  %3974 = vst [vmem:[#allocation4_spill] sm:$0xff] %v2513_v22  ;;  %v2515_v30 = vpack.c.bf16 %v478_v32, %v439_v63  ;;  %v1844_v47 = vpop.permute.xlu1 %1843  ;;  %vm2527_vm14 = vcmp.eq.s32.totalorder %v621_v59, 1  ;;  %vm3982_vm0 = vcmp.lt.s32.totalorder %v2098_v29, 7 }
 0x126   : > { %v476_v21 = vsel %vm3971_vm12, %v1831_v0, %v1835_v17  ;;  %v2519_v5 = vpack.c.bf16 %v475_v35, %v436_v53  ;;  %vm3977_vm12 = vnez %v3926_v10  ;;  %v706_v0 = vrot.slane %v2448_v24, %v2110_v31 }
 0x127   : > { %v2517_v62 = vpack.c.bf16 %v476_v21, %v437_v4  ;;  %vm1612_vm5 = vmpackc.low %vm3977_vm12, %vm3976_vm11  ;;  %vm3983_vm6 = vcmp.ge.s32.totalorder %v2093_v27, 1  ;;  %v3820_v10 = vunpack.i.h.bf16 %v2521_v57  ;;  %v3822_v59 = vunpack.i.l.bf16 %v2521_v57 }
 0x128   : > { %3975 = vst [vmem:[#allocation5_spill] sm:$0xff] %v2519_v5  ;;  %vm2543_vm4 = vmand %vm3983_vm6, %vm3982_vm0  ;;  %v1846_v7 = vunpack.i.h.bf16 %v1844_v47  ;;  %v1845_v63 = vunpack.i.l.bf16 %v1844_v47  ;;  %vm2561_vm6 = vcmp.eq.s32.totalorder %v617_v50, 1  ;;  %vm2565_vm12 = vcmp.eq.s32.totalorder %v655_v51, 1  ;;  %v2591_v51 = vpop.permute.xlu0 %1868 }
 0x129   : > { %vm3986_vm11 = vmpackc.low %vm3957_vm9, %vm2259_vm10  ;;  %vm2571_vm9 = vcmp.eq.s32.totalorder %v629_v52, 1  ;;  %v702_v41 = vrot.slane %v2448_v24, %v2115_v33  ;;  %v741_v42 = vrot.slane %v2453_v23, %v2115_v33  ;;  %v714_v50 = vrot.slane %v2448_v24, %v2117_v34  ;;  %v1854_v52 = vpop.permute.xlu1 %1853 }
 0x12a   : > { %1611 = vmatpush1.bf16.msk.msra.mxu0 %vm3986_vm11, %v2515_v30  ;;  %vm3987_vm0 = vmpackc.low %vm3963_vm13, %vm3962_vm7  ;;  %vm2575_vm11 = vcmp.eq.s32.totalorder %v667_v55, 1  ;;  %v3997_v55 = vmov 0  ;;  %v3999_v9 = vmov 0  ;;  %v753_v54 = vrot.slane %v2453_v23, %v2117_v34 }
 0x12b   : > { %1692 = vmatprep.subr.msk.bf16.mxu1 %vm3987_vm0, %v2519_v5  ;;  %1614 = vmatprep.subr.msk.bf16.mxu0 %vm1612_vm5, %v2513_v22  ;;  %vm3996_vm7 = vmpackc.low %vm3973_vm1, %vm3972_vm2  ;;  %vm2594_vm5 = vcmp.eq.s32.totalorder %v625_v45, 1  ;;  %vm2598_vm0 = vcmp.eq.s32.totalorder %v663_v56, 1  ;;  %vm4001_vm1 = vcmp.ge.s32.totalorder %v2093_v27, 1  ;;  %v2612_v32 = vsel %vm2543_vm4, 1, %v3825_v1 }
 0x12c   : > { %1695 = vmatpush1.bf16.msk.msra.mxu1 %vm3996_vm7, %v2517_v62  ;;  %v3998_v55 = vsel %vm2594_vm5, 4294967295, %v3997_v55  ;;  %v4000_v9 = vsel %vm2598_vm0, 4294967295, %v3999_v9  ;;  %v2607_v48 = vsel %vm4001_vm1, 1, %v3825_v1  ;;  %v3823_v56 = vunpack.i.h.bf16 %v2591_v51  ;;  %v2674_v1 = vpop.permute.xlu0 %1878 }
 0x12d   : > { %v3824_v35 = vunpack.i.l.bf16 %v2591_v51  ;;  %v1856_v21 = vunpack.i.h.bf16 %v1854_v52  ;;  %v1855_v47 = vunpack.i.l.bf16 %v1854_v52  ;;  %vm2618_vm2 = vcmp.eq.s32.totalorder %v706_v0, 1 }
 0x12e   : > { %v4002_v36 = vmov 0  ;;  %vm2622_vm7 = vcmp.eq.s32.totalorder %v745_v58, 1  ;;  %v4004_v25 = vmov 0  ;;  %vm4006_vm4 = vcmp.lt.s32.totalorder %v2123_v37, 57 }
 0x12f   : > { %v4003_v36 = vsel %vm2618_vm2, 4294967295, %v4002_v36  ;;  %v4005_v25 = vsel %vm2622_vm7, 4294967295, %v4004_v25  ;;  %v609_v8 = vsel %vm4006_vm4, %v3822_v59, %v3820_v10  ;;  %vm4007_vm1 = vcmp.lt.s32.totalorder %v2123_v37, 64 }
 0x130   : > { %v525_v52 = vsel %vm4007_vm1, %v1846_v7, %v1840_v28  ;;  %vm4008_vm13 = vmmov %vm4007_vm1  ;;  %v4009_v58 = vunpack.i.h.bf16 %v2359_v38  ;;  %vm4011_vm4 = vcmp.lt.s32.totalorder %v2123_v37, 56  ;;  %v4012_v10 = vunpack.i.l.bf16 %v2434_v2 }
 0x131   : > { %v522_v0 = vsel %vm4008_vm13, %v1845_v63, %v1846_v7  ;;  %vm4010_vm10 = vmmov %vm4007_vm1  ;;  %v649_v28 = vsel %vm4011_vm4, %v3824_v35, %v3823_v56  ;;  %vm4013_vm13 = vcmp.lt.s32.totalorder %v2123_v37, 63  ;;  %vm4017_vm7 = vnez %v3954_v12 }
 0x132   : > { %v523_v45 = vsel %vm4010_vm10, %v4009_v58, %v1845_v63  ;;  %v563_v38 = vsel %vm4013_vm13, %v1856_v21, %v4012_v10  ;;  %vm4014_vm1 = vmmov %vm4013_vm13  ;;  %v4015_v63 = vunpack.i.h.bf16 %v2434_v2  ;;  %vm4018_vm2 = vnez %v3956_v43 }
 0x133   : > { %v560_v7 = vsel %vm4014_vm1, %v1855_v47, %v1856_v21  ;;  %vm4016_vm10 = vmmov %vm4014_vm1  ;;  %v2666_v59 = vpack.c.bf16 %v649_v28, %v609_v8  ;;  %v2668_v56 = vpack.c.bf16 %v563_v38, %v525_v52  ;;  %v1864_v21 = vpop.permute.xlu1 %1863  ;;  %vm4023_vm13 = vnez %v3965_v3 }
 0x134   : > { %v561_v58 = vsel %vm4016_vm10, %v4015_v63, %v1855_v47  ;;  %v2672_v10 = vpack.c.bf16 %v560_v7, %v522_v0  ;;  %vm1618_vm4 = vmpackc.low %vm2531_vm8, %vm2527_vm14  ;;  %vm4024_vm1 = vnez %v3967_v18  ;;  %v791_v2 = vrot.slane %v2607_v48, %v2110_v31 }
 0x135   : > { %4019 = vst [vmem:[#allocation6_spill] sm:$0xff] %v2666_v59  ;;  %4020 = vst [vmem:[#allocation7_spill] sm:$0xff] %v2668_v56  ;;  %v2670_v35 = vpack.c.bf16 %v561_v58, %v523_v45  ;;  %v830_v45 = vrot.slane %v2612_v32, %v2110_v31  ;;  %v749_v47 = vrot.slane %v2453_v23, %v2135_v44  ;;  %v4025_v8 = vmov 0  }
 0x136   : > { %4022 = vst [vmem:[#allocation9_spill] sm:$0xff] %v2672_v10  ;;  %vm4026_vm0 = vcmp.ge.s32.totalorder %v2098_v29, 1  ;;  %v1866_v0 = vunpack.i.h.bf16 %v1864_v21  ;;  %v1865_v28 = vunpack.i.l.bf16 %v1864_v21  ;;  %vm4027_vm8 = vmpackc.low %vm2416_vm15, %vm2412_vm3  ;;  %vm2715_vm5 = vcmp.eq.s32.totalorder %v741_v42, 1 }
 0x137   : > { %4021 = vst [vmem:[#allocation8_spill] sm:$0xff] %v2670_v35  ;;  %v2693_v17 = vsel %vm4026_vm0, 1, %v4025_v8  ;;  %1617 = vmatpush1.bf16.msk.msra.mxu0 %vm4027_vm8, %v2668_v56  ;;  %vm4028_vm14 = vmpackc.low %vm4018_vm2, %vm4017_vm7  ;;  %vm2709_vm0 = vcmp.eq.s32.totalorder %v702_v41, 1  ;;  %v787_v19 = vrot.slane %v2607_v48, %v2115_v33  ;;  %v826_v12 = vrot.slane %v2612_v32, %v2115_v33  ;;  %v2731_v41 = vpop.permute.xlu0 %1888  ;;  %v1874_v42 = vpop.permute.xlu1 %1873 }
 0x138   : > { %1698 = vmatprep.subr.msk.bf16.mxu1 %vm4028_vm14, %v2672_v10  ;;  %1620 = vmatprep.subr.msk.bf16.mxu0 %vm1618_vm4, %v2666_v59  ;;  %v799_v43 = vrot.slane %v2607_v48, %v2117_v34  ;;  %vm4033_vm3 = vmpackc.low %vm4024_vm1, %vm4023_vm13  ;;  %vm2734_vm2 = vcmp.eq.s32.totalorder %v714_v50, 1  ;;  %vm2738_vm7 = vcmp.eq.s32.totalorder %v753_v54, 1  ;;  %v4036_v7 = vmov 0 }
 0x139   : > { %1701 = vmatpush1.bf16.msk.msra.mxu1 %vm4033_vm3, %v2670_v35  ;;  %v4037_v7 = vsel %vm2738_vm7, 4294967295, %v4036_v7  ;;  %v838_v18 = vrot.slane %v2612_v32, %v2117_v34  ;;  %v876_v3 = vrot.slane %v2693_v17, %v2110_v31  ;;  %v795_v63 = vrot.slane %v2607_v48, %v2135_v44 }
 0x13a   : > { %v834_v58 = vrot.slane %v2612_v32, %v2135_v44  ;;  %v1876_v54 = vunpack.i.h.bf16 %v1874_v42  ;;  %v1875_v52 = vunpack.i.l.bf16 %v1874_v42  ;;  %vm2756_vm13 = vcmp.eq.s32.totalorder %v791_v2, 1 }
 0x13b   : > { %v4038_v46 = vmov 0  ;;  %vm2760_vm1 = vcmp.eq.s32.totalorder %v830_v45, 1  ;;  %v4040_v48 = vmov 0  ;;  %v4042_v32 = vunpack.i.h.bf16 %v2674_v1  ;;  %v2825_v35 = vpop.permute.xlu0 %1898 }
 0x13c   : > { %v4039_v46 = vsel %vm2756_vm13, 4294967295, %v4038_v46  ;;  %v4041_v48 = vsel %vm2760_vm1, 4294967295, %v4040_v48  ;;  %v4043_v50 = vunpack.i.l.bf16 %v2674_v1  ;;  %vm4044_vm8 = vcmp.lt.s32.totalorder %v2123_v37, 55 }
 0x13d   : > { %v4046_v21 = vunpack.i.l.bf16 %v2521_v57  ;;  %vm4047_vm14 = vcmp.lt.s32.totalorder %v2123_v37, 57  ;;  %v4049_v45 = vunpack.i.h.bf16 %v2521_v57  ;;  %v4056_v57 = vunpack.i.h.bf16 %v2731_v41 }
 0x13e   : > { %v2770_v42 = vsel %vm4044_vm8, %v4043_v50, %v4042_v32  ;;  %vm4048_vm3 = vmmov %vm4047_vm14  ;;  %v4051_v50 = vrot.slane %v2448_v24, %v2135_v44  ;;  %v4052_v32 = vmov 0  ;;  %vm4060_vm10 = vcmp.lt.s32.totalorder %v2123_v37, 56 }
 0x13f   : > { %4045 = vst [vmem:[#allocation10_spill] sm:$0xff] %v2770_v42  ;;  %v610_v2 = vsel %vm4047_vm14, %v1866_v0, %v4046_v21  ;;  %v607_v59 = vsel %vm4048_vm3, %v1865_v28, %v1866_v0  ;;  %vm4050_vm15 = vmmov %vm4048_vm3  ;;  %vm2793_vm14 = vcmp.eq.s32.totalorder %v749_v47, 1  ;;  %v4054_v21 = vmov 0  ;;  %v2895_v39 = vpop.permute.xlu0 %1908 }
 0x140   : > { %v608_v10 = vsel %vm4050_vm15, %v4049_v45, %v1865_v28  ;;  %vm2789_vm8 = vcmp.eq.s32.totalorder %v4051_v50, 1  ;;  %v4055_v21 = vsel %vm2793_vm14, 4294967295, %v4054_v21  ;;  %v4057_v0 = vunpack.i.l.bf16 %v2731_v41  ;;  %vm4061_vm4 = vmmov %vm4060_vm10 }
 0x141   : > { %v4053_v32 = vsel %vm2789_vm8, 4294967295, %v4052_v32  ;;  %vm4058_vm15 = vcmp.lt.s32.totalorder %v2123_v37, 9  ;;  %v4059_v45 = vunpack.i.l.bf16 %v2591_v51  ;;  %v647_v47 = vsel %vm4061_vm4, %v1875_v52, %v1876_v54  ;;  %vm4063_vm14 = vmmov %vm4061_vm4 }
 0x142   : > { %v734_v28 = vsel %vm4058_vm15, %v4057_v0, %v4056_v57  ;;  %v4062_v50 = vunpack.i.h.bf16 %v2591_v51  ;;  %vm4064_vm3 = vnez %v3998_v55  ;;  %vm4065_vm8 = vnez %v4000_v9 }
 0x143   : > { %v650_v24 = vsel %vm4060_vm10, %v1876_v54, %v4059_v45  ;;  %v1625_v57 = vpack.c.bf16 %v734_v28, %v2770_v42  ;;  %v2823_v45 = vpack.c.bf16 %v647_v47, %v607_v59  ;;  %v1884_v54 = vpop.permute.xlu1 %1883  ;;  %vm4069_vm10 = vnez %v4003_v36 }
 0x144   : > { %v648_v22 = vsel %vm4063_vm14, %v4062_v50, %v1875_v52  ;;  %v2819_v0 = vpack.c.bf16 %v650_v24, %v610_v2  ;;  %vm4070_vm4 = vnez %v4005_v25  ;;  %vm2831_vm15 = vcmp.eq.s32.totalorder %v787_v19, 1 }
 0x145   : > { %v2821_v56 = vpack.c.bf16 %v648_v22, %v608_v10  ;;  %4068 = vst [vmem:[#allocation13_spill] sm:$0xff] %v2823_v45  ;;  %vm1624_vm14 = vmpackc.low %vm4070_vm4, %vm4069_vm10  ;;  %v4071_v51 = vmov 0  ;;  %vm2835_vm1 = vcmp.eq.s32.totalorder %v826_v12, 1  ;;  %v4073_v52 = vmov 0 }
 0x146   : > { %4066 = vst [vmem:[#allocation11_spill] sm:$0xff] %v2819_v0  ;;  %v4072_v51 = vsel %vm2831_vm15, 4294967295, %v4071_v51  ;;  %v4074_v52 = vsel %vm2835_vm1, 4294967295, %v4073_v52  ;;  %vm2839_vm13 = vcmp.eq.s32.totalorder %v799_v43, 1  ;;  %v4075_v22 = vmov 0 }
 0x147   : > { %4067 = vst [vmem:[#allocation12_spill] sm:$0xff] %v2821_v56  ;;  %v4076_v22 = vsel %vm2839_vm13, 4294967295, %v4075_v22  ;;  %vm2843_vm7 = vcmp.eq.s32.totalorder %v838_v18, 1  ;;  %v4077_v59 = vmov 0  ;;  %v872_v25 = vrot.slane %v2693_v17, %v2115_v33 }
 0x148   : > { %v4078_v59 = vsel %vm2843_vm7, 4294967295, %v4077_v59  ;;  %vm4079_vm10 = vcmp.lt.s32.totalorder %v2098_v29, 7  ;;  %vm4080_vm4 = vcmp.ge.s32.totalorder %v2098_v29, 1  ;;  %vm4081_vm1 = vcmp.lt.s32.totalorder %v2093_v27, 7 }
 0x149   : > { %v2852_v36 = vsel %vm4079_vm10, 1, %v4025_v8  ;;  %vm2858_vm15 = vmand %vm4081_vm1, %vm4080_vm4  ;;  %v3842_v19 = vunpack.i.h.bf16 %v2825_v35  ;;  %v3843_v12 = vunpack.i.l.bf16 %v2825_v35  ;;  %v1886_v43 = vunpack.i.h.bf16 %v1884_v54 }
 0x14a   : > { %v1885_v18 = vunpack.i.l.bf16 %v1884_v54  ;;  %vm4084_vm10 = vmpackc.low %vm2565_vm12, %vm2561_vm6  ;;  %vm2877_vm7 = vcmp.eq.s32.totalorder %v795_v63, 1  ;;  %vm2881_vm13 = vcmp.eq.s32.totalorder %v834_v58, 1  ;;  %v884_v53 = vrot.slane %v2693_v17, %v2117_v34  ;;  %v1894_v63 = vpop.permute.xlu1 %1893 }
 0x14b   : > { %1623 = vmatpush1.bf16.msk.msra.mxu0 %vm4084_vm10, %v2819_v0  ;;  %vm4085_vm1 = vmpackc.low %vm2575_vm11, %vm2571_vm9  ;;  %v880_v40 = vrot.slane %v2693_v17, %v2135_v44  ;;  %vm2897_vm12 = vcmp.eq.s32.totalorder %v876_v3, 1  ;;  %v4091_v58 = vmov 0  ;;  %v922_v28 = vrot.slane %v2852_v36, %v2110_v31  ;;  %v2978_v0 = vpop.permute.xlu0 %1918 }
 0x14c   : > { %1704 = vmatprep.subr.msk.bf16.mxu1 %vm4085_vm1, %v2823_v45  ;;  %1626 = vmatprep.subr.msk.bf16.mxu0 %vm1624_vm14, %v1625_v57  ;;  %vm4090_vm6 = vmpackc.low %vm4065_vm8, %vm4064_vm3  ;;  %v4092_v58 = vsel %vm2897_vm12, 4294967295, %v4091_v58  ;;  %v2906_v17 = vsel %vm2858_vm15, 1, %v4025_v8  ;;  %vm4093_vm9 = vcmp.lt.s32.totalorder %v2093_v27, 7  ;;  %v3846_v3 = vunpack.i.h.bf16 %v2895_v39 }
 0x14d   : > { %1707 = vmatpush1.bf16.msk.msra.mxu1 %vm4090_vm6, %v2821_v56  ;;  %v2913_v9 = vsel %vm4093_vm9, 1, %v4025_v8  ;;  %v1896_v47 = vunpack.i.h.bf16 %v1894_v63  ;;  %v1895_v50 = vunpack.i.l.bf16 %v1894_v63  ;;  %vm2921_vm8 = vcmp.eq.s32.totalorder %v872_v25, 1  ;;  %vm4106_vm6 = vmmov %vm4093_vm9 }
 0x14e   : > { %v4094_v57 = vmov 0  ;;  %vm4096_vm3 = vcmp.lt.s32.totalorder %v2123_v37, 8  ;;  %v4097_v10 = vunpack.i.l.bf16 %v2674_v1  ;;  %vm4098_vm14 = vcmp.lt.s32.totalorder %v2123_v37, 55  ;;  %vm4123_vm11 = vmpackc.low %vm2715_vm5, %vm2709_vm0 }
 0x14f   : > { %v4095_v57 = vsel %vm2921_vm8, 4294967295, %v4094_v57  ;;  %v781_v54 = vsel %vm4096_vm3, %v3843_v12, %v3842_v19  ;;  %vm4100_vm15 = vmmov %vm4098_vm14  ;;  %v4102_v25 = vunpack.i.h.bf16 %v2674_v1  ;;  %vm4105_vm1 = vcmp.lt.s32.totalorder %v2098_v29, 7 }
 0x150   : > { %v2935_v63 = vsel %vm4098_vm14, %v1886_v43, %v4097_v10  ;;  %v2939_v55 = vsel %vm4100_vm15, %v1885_v18, %v1886_v43  ;;  %vm4103_vm10 = vmmov %vm4098_vm14  ;;  %v4109_v10 = vunpack.i.l.bf16 %v2895_v39  ;;  %vm4110_vm3 = vcmp.lt.s32.totalorder %v2123_v37, 7 }
 0x151   : > { %4099 = vst [vmem:[#allocation14_spill] sm:$0xff] %v2935_v63  ;;  %4101 = vst [vmem:[#allocation15_spill] sm:$0xff] %v2939_v55  ;;  %v2945_v24 = vsel %vm4103_vm10, %v4102_v25, %v1885_v18  ;;  %v4111_v1 = vunpack.i.l.bf16 %v2731_v41  ;;  %vm4112_vm14 = vcmp.lt.s32.totalorder %v2123_v37, 9  ;;  %v4114_v12 = vunpack.i.h.bf16 %v2731_v41 }
 0x152   : > { %4104 = vst [vmem:[#allocation16_spill] sm:$0xff] %v2945_v24  ;;  %vm2951_vm9 = vmand %vm4106_vm6, %vm4105_vm1  ;;  %v819_v43 = vsel %vm4110_vm3, %v4109_v10, %v3846_v3  ;;  %vm4116_vm1 = vnez %v4037_v7  ;;  %vm4117_vm3 = vnez %v4039_v46  ;;  %v4119_v41 = vmov 0  ;;  %v3049_v46 = vpop.permute.xlu0 %1928 }
 0x153   : > { %v735_v18 = vsel %vm4112_vm14, %v1896_v47, %v4111_v1  ;;  %vm4113_vm15 = vmmov %vm4112_vm14  ;;  %v1631_v45 = vpack.c.bf16 %v819_v43, %v781_v54  ;;  %vm4121_vm4 = vnez %v4053_v32  ;;  %vm4122_vm6 = vnez %v4055_v21 }
 0x154   : > { %v732_v25 = vsel %vm4113_vm15, %v1895_v50, %v1896_v47  ;;  %vm4115_vm10 = vmmov %vm4112_vm14  ;;  %v1628_v10 = vpack.c.bf16 %v735_v18, %v2935_v63  ;;  %v1904_v47 = vpop.permute.xlu1 %1903  ;;  %vm4118_vm14 = vnez %v4041_v48  ;;  %v4125_v19 = vmov 0 }
 0x155   : > { %v733_v42 = vsel %vm4115_vm10, %v4114_v12, %v1895_v50  ;;  %v1709_v3 = vpack.c.bf16 %v732_v25, %v2939_v55  ;;  %vm2984_vm10 = vcmp.eq.s32.totalorder %v884_v53, 1  ;;  %v969_v12 = vrot.slane %v2906_v17, %v2117_v34  ;;  %vm4124_vm15 = vmpackc.low %vm4116_vm1, %vm2734_vm2 }
 0x156   : > { %v1712_v1 = vpack.c.bf16 %v733_v42, %v2945_v24  ;;  %v4120_v41 = vsel %vm2984_vm10, 4294967295, %v4119_v41  ;;  %v961_v42 = vrot.slane %v2906_v17, %v2110_v31  ;;  %v918_v50 = vrot.slane %v2852_v36, %v2115_v33  ;;  %1629 = vmatpush1.bf16.msk.msra.mxu0 %vm4123_vm11, %v1628_v10  ;;  %vm4131_vm5 = vmpackc.low %vm4118_vm14, %vm4117_vm3 }
 0x157   : > { %v3001_v53 = vsel %vm2951_vm9, 1, %v4025_v8  ;;  %v1906_v18 = vunpack.i.h.bf16 %v1904_v47  ;;  %v1905_v25 = vunpack.i.l.bf16 %v1904_v47  ;;  %1710 = vmatprep.subr.msk.bf16.mxu1 %vm4124_vm15, %v1709_v3  ;;  %vm3015_vm9 = vcmp.eq.s32.totalorder %v880_v40, 1  ;;  %1632 = vmatprep.subr.msk.bf16.mxu0 %vm4131_vm5, %v1631_v45 }
 0x158   : > { %v4126_v19 = vsel %vm3015_vm9, 4294967295, %v4125_v19  ;;  %vm4127_vm10 = vcmp.ge.s32.totalorder %v2093_v27, 1  ;;  %vm4128_vm8 = vcmp.lt.s32.totalorder %v2088_v26, 7  ;;  %vm4132_vm0 = vnez %v4072_v51  ;;  %v1914_v45 = vpop.permute.xlu1 %1913 }
 0x159   : > { %vm3023_vm12 = vmand %vm4128_vm8, %vm4127_vm10  ;;  %vm4133_vm2 = vnez %v4074_v52  ;;  %v957_v23 = vrot.slane %v2906_v17, %v2115_v33  ;;  %v926_v38 = vrot.slane %v2852_v36, %v2135_v44  ;;  %v965_v7 = vrot.slane %v2906_v17, %v2135_v44 }
 0x15a   : > { %v1007_v48 = vrot.slane %v2913_v9, %v2110_v31  ;;  %vm4134_vm8 = vmpackc.low %vm4122_vm6, %vm4121_vm4  ;;  %vm4135_vm1 = vnez %v4076_v22  ;;  %vm4136_vm3 = vnez %v4078_v59  ;;  %v1046_v40 = vrot.slane %v3001_v53, %v2110_v31 }
 0x15b   : > { %1713 = vmatpush1.bf16.msk.msra.mxu1 %vm4134_vm8, %v1712_v1  ;;  %v1015_v17 = vrot.slane %v2913_v9, %v2117_v34  ;;  %v1003_v21 = vrot.slane %v2913_v9, %v2115_v33  ;;  %v1916_v3 = vunpack.i.h.bf16 %v1914_v45  ;;  %v1915_v10 = vunpack.i.l.bf16 %v1914_v45 }
 0x15c   : > { %vm3063_vm4 = vcmp.eq.s32.totalorder %v922_v28, 1  ;;  %v4137_v1 = vmov 0  ;;  %vm3067_vm6 = vcmp.eq.s32.totalorder %v961_v42, 1  ;;  %v4139_v47 = vmov 0 }
 0x15d   : > { %v4138_v1 = vsel %vm3063_vm4, 4294967295, %v4137_v1  ;;  %v4140_v47 = vsel %vm3067_vm6, 4294967295, %v4139_v47  ;;  %v1054_v43 = vrot.slane %v3001_v53, %v2117_v34  ;;  %vm4141_vm15 = vcmp.ge.s32.totalorder %v2098_v29, 1 }
 0x15e   : > { %vm3079_vm10 = vmand %vm3023_vm12, %vm4141_vm15  ;;  %v4144_v28 = vunpack.i.h.bf16 %v2978_v0  ;;  %v4145_v42 = vunpack.i.l.bf16 %v2978_v0  ;;  %vm4146_vm5 = vcmp.lt.s32.totalorder %v2123_v37, 1  ;;  %v4147_v55 = vunpack.i.l.bf16 %v2825_v35 }
 0x15f   : > { %vm4148_vm8 = vcmp.lt.s32.totalorder %v2123_v37, 8  ;;  %v4150_v63 = vrot.slane %v2852_v36, %v2117_v34  ;;  %v4151_v56 = vmov 0  ;;  %v4157_v36 = vunpack.i.l.bf16 %v2895_v39 }
 0x160   : > { %v866_v32 = vsel %vm4146_vm5, %v4145_v42, %v4144_v28  ;;  %v782_v54 = vsel %vm4148_vm8, %v1906_v18, %v4147_v55  ;;  %vm4149_vm14 = vmmov %vm4148_vm8  ;;  %vm3106_vm5 = vcmp.eq.s32.totalorder %v969_v12, 1  ;;  %v4153_v28 = vmov 0 }
 0x161   : > { %v779_v24 = vsel %vm4149_vm14, %v1905_v25, %v1906_v18  ;;  %vm3102_vm11 = vcmp.eq.s32.totalorder %v4150_v63, 1  ;;  %v4154_v28 = vsel %vm3106_vm5, 4294967295, %v4153_v28  ;;  %v3113_v55 = vsel %vm3023_vm12, 1, %v4025_v8  ;;  %vm4156_vm14 = vmmov %vm4148_vm8 }
 0x162   : > { %v4152_v56 = vsel %vm3102_vm11, 4294967295, %v4151_v56  ;;  %v4155_v18 = vunpack.i.h.bf16 %v2825_v35  ;;  %vm4158_vm8 = vcmp.lt.s32.totalorder %v2123_v37, 7  ;;  %v4160_v5 = vunpack.i.h.bf16 %v2895_v39 }
 0x163   : > { %v820_v63 = vsel %vm4158_vm8, %v1916_v3, %v4157_v36  ;;  %vm4159_vm15 = vmmov %vm4158_vm8  ;;  %vm3858_vm6 = vmmov 1   ;;  %vm4162_vm4 = vnez %v4092_v58  ;;  %vm3137_vm9 = vcmp.eq.s32.totalorder %v918_v50, 1  ;;  %v1924_v36 = vpop.permute.xlu1 %1923 }
 0x164   : > { %v780_v42 = vsel %vm4156_vm14, %v4155_v18, %v1905_v25  ;;  %v817_v12 = vsel %vm4159_vm15, %v1915_v10, %v1916_v3  ;;  %vm4161_vm5 = vmmov %vm4158_vm8  ;;  %v4165_v25 = vmov 0  ;;  %vm3141_vm15 = vcmp.eq.s32.totalorder %v957_v23, 1  ;;  %v3145_v18 = vpop.permute.xlu0 %1938 }
 0x165   : > { %v818_v61 = vsel %vm4161_vm5, %v4160_v5, %v1915_v10  ;;  %vm3133_vm14 = vmpackc.low %vm3858_vm6, %vm4162_vm4  ;;  %v4166_v25 = vsel %vm3137_vm9, 4294967295, %v4165_v25  ;;  %v1634_v39 = vpack.c.bf16 %v820_v63, %v782_v54  ;;  %v1715_v5 = vpack.c.bf16 %v817_v12, %v779_v24 }
 0x166   : > { %v1718_v10 = vpack.c.bf16 %v818_v61, %v780_v42  ;;  %vm4169_vm5 = vnez %v4095_v57  ;;  %vm3154_vm8 = vcmp.eq.s32.totalorder %v926_v38, 1  ;;  %v4172_v50 = vmov 0 }
 0x167   : > { %vm3150_vm4 = vmpackc.low %vm3858_vm6, %vm4169_vm5  ;;  %v4173_v50 = vsel %vm3154_vm8, 4294967295, %v4172_v50  ;;  %vm3158_vm11 = vcmp.eq.s32.totalorder %v965_v7, 1  ;;  %v4174_v23 = vmov 0  ;;  %v3165_v61 = vsel %vm3079_vm10, 1, %v4025_v8 }
 0x168   : > { %v4175_v23 = vsel %vm3158_vm11, 4294967295, %v4174_v23  ;;  %v4176_v24 = vmax.f32 %v2061_v14, 0.0  ;;  %v1926_v54 = vunpack.i.h.bf16 %v1924_v36  ;;  %v1925_v42 = vunpack.i.l.bf16 %v1924_v36  ;;  %vm4182_vm5 = vmpackc.low %vm4133_vm2, %vm4132_vm0 }
 0x169   : > { %vm3170_vm6 = vcmp.eq.s32.totalorder %v1007_v48, 1  ;;  %v4177_v38 = vmov 0  ;;  %v1050_v7 = vrot.slane %v3001_v53, %v2135_v44  ;;  %vm4179_vm11 = vcmp.lt.s32.totalorder %v2098_v29, 7  ;;  %1635 = vmatpush1.bf16.msk.msra.mxu0 %vm4182_vm5, %v1634_v39 }
 0x16a   : > { %v1637_v57 = vpack.c.bf16 %v4176_v24, %v866_v32  ;;  %v4178_v38 = vsel %vm3170_vm6, 4294967295, %v4177_v38  ;;  %vm3180_vm10 = vmand %vm3023_vm12, %vm4179_vm11  ;;  %vm3194_vm8 = vcmp.eq.s32.totalorder %v1046_v40, 1  ;;  %vm3198_vm12 = vcmp.eq.s32.totalorder %v1015_v17, 1 }
 0x16b   : > { %vm4183_vm6 = vmpackc.low %vm4136_vm3, %vm4135_vm1  ;;  %v4187_v49 = vsel %vm3198_vm12, 4294967295, %v4186_v49  ;;  %vm3202_vm11 = vcmp.eq.s32.totalorder %v1054_v43, 1  ;;  %v4188_v52 = vmov 0  ;;  %v1106_v51 = vrot.slane %v3113_v55, %v2110_v31 }
 0x16c   : > { %1716 = vmatprep.subr.msk.bf16.mxu1 %vm4183_vm6, %v1715_v5  ;;  %v4189_v52 = vsel %vm3202_vm11, 4294967295, %v4188_v52  ;;  %v1114_v22 = vrot.slane %v3113_v55, %v2117_v34  ;;  %vm4190_vm0 = vcmp.ge.s32.totalorder %v2098_v29, 1  ;;  %vm4191_vm2 = vcmp.lt.s32.totalorder %v2088_v26, 7  ;;  %1638 = vmatprep.subr.msk.bf16.mxu0 %vm3133_vm14, %v1637_v57  ;;  %vm4208_vm14 = vmpackc.low %vm2881_vm13, %vm2877_vm7 }
 0x16d   : > { %vm3214_vm1 = vmand %vm4191_vm2, %vm4190_vm0  ;;  %v4194_v48 = vunpack.i.l.bf16 %v2978_v0  ;;  %vm4195_vm3 = vcmp.lt.s32.totalorder %v2123_v37, 1  ;;  %v4197_v17 = vunpack.i.h.bf16 %v2978_v0  ;;  %vm4199_vm0 = vnez %v4120_v41  ;;  %1719 = vmatpush1.bf16.msk.msra.mxu1 %vm4208_vm14, %v1718_v10 }
 0x16e   : > { %vm4196_vm6 = vmmov %vm4195_vm3  ;;  %vm4200_vm2 = vmmov 1   ;;  %vm3237_vm12 = vcmp.eq.s32.totalorder %v1003_v21, 1  ;;  %v1081_v0 = vrot.slane %v3165_v61, %v2110_v31  ;;  %v4205_v39 = vmax.f32 %v2059_v13, 0.0  ;;  %v1934_v21 = vpop.permute.xlu1 %1933 }
 0x16f   : > { %v867_v43 = vsel %vm4195_vm3, %v1926_v54, %v4194_v48  ;;  %v864_v40 = vsel %vm4196_vm6, %v1925_v42, %v1926_v54  ;;  %vm4198_vm5 = vmmov %vm4195_vm3  ;;  %v4206_v35 = vmax.f32 %v2065_v16, 0.0  ;;  %v4207_v41 = vmax.f32 %v2063_v15, 0.0  ;;  %v3256_v54 = vpop.permute.xlu0 %1948 }
 0x170   : > { %v865_v32 = vsel %vm4198_vm5, %v4197_v17, %v1925_v42  ;;  %vm3233_vm11 = vmpackc.low %vm4200_vm2, %vm4199_vm0  ;;  %v1640_v5 = vpack.c.bf16 %v4205_v39, %v867_v43  ;;  %v1089_v57 = vrot.slane %v3165_v61, %v2117_v34  ;;  %vm4209_vm3 = vnez %v4126_v19 }
 0x171   : > { %v1721_v36 = vpack.c.bf16 %v4206_v35, %v864_v40  ;;  %v1724_v24 = vpack.c.bf16 %v4207_v41, %v865_v32  ;;  %vm3261_vm6 = vmpackc.low %vm4200_vm2, %vm4209_vm3  ;;  %v1077_v15 = vrot.slane %v3165_v61, %v2115_v33  ;;  %v1102_v16 = vrot.slane %v3113_v55, %v2115_v33 }
 0x172   : > { %v3272_v2 = vsel %vm3180_vm10, 1, %v4025_v8  ;;  %v3277_v4 = vsel %vm3214_vm1, 1, %v4025_v8  ;;  %v1941_v19 = vunpack.i.h.bf16 %v3145_v18  ;;  %v1940_v10 = vunpack.i.l.bf16 %v3145_v18  ;;  %1641 = vmatpush1.bf16.msk.msra.mxu0 %vm3150_vm4, %v1640_v5 }
 0x173   : > { %v1936_v42 = vunpack.i.h.bf16 %v1934_v21  ;;  %v1935_v48 = vunpack.i.l.bf16 %v1934_v21  ;;  %1722 = vmatprep.subr.msk.bf16.mxu1 %vm3233_vm11, %v1721_v36  ;;  %v4212_v45 = vrot.slane %v2913_v9, %v2135_v44  ;;  %v4213_v43 = vmov 0 }
 0x174   : > { %v4215_v18 = vrot.slane %v3001_v53, %v2115_v33  ;;  %vm3300_vm4 = vcmp.eq.s32.totalorder %v1050_v7, 1  ;;  %v4218_v58 = vmov 0  ;;  %vm3304_vm11 = vcmp.eq.s32.totalorder %v1106_v51, 1  ;;  %1725 = vmatpush1.bf16.msk.msra.mxu1 %vm3261_vm6, %v1724_v24  ;;  %v1944_v53 = vpop.permute.xlu1 %1943 }
 0x175   : > { %vm3288_vm7 = vcmp.eq.s32.totalorder %v4212_v45, 1  ;;  %v4219_v58 = vsel %vm3300_vm4, 4294967295, %v4218_v58  ;;  %v4220_v40 = vmov 0  ;;  %v1085_v9 = vrot.slane %v3165_v61, %v2135_v44 }
 0x176   : > { %v4214_v43 = vsel %vm3288_vm7, 4294967295, %v4213_v43  ;;  %vm3296_vm10 = vcmp.eq.s32.totalorder %v4215_v18, 1  ;;  %v4221_v40 = vsel %vm3304_vm11, 4294967295, %v4220_v40  ;;  %v1931_v17 = vunpack.i.h.bf16 %v3049_v46 }
 0x177   : > { %v1930_v32 = vunpack.i.l.bf16 %v3049_v46  ;;  %vm4222_vm1 = vnez %v4138_v1  ;;  %vm4223_vm5 = vnez %v4140_v47  ;;  %vm3318_vm14 = vcmp.eq.s32.totalorder %v1081_v0, 1 }
 0x178   : > { %v4224_v7 = vmov 0  ;;  %v1110_v61 = vrot.slane %v3113_v55, %v2135_v44  ;;  %v1946_v51 = vunpack.i.h.bf16 %v1944_v53  ;;  %v1945_v46 = vunpack.i.l.bf16 %v1944_v53  ;;  %v1954_v53 = vpop.permute.xlu1 %1953 }
 0x179   : > { %v4225_v7 = vsel %vm3318_vm14, 4294967295, %v4224_v7  ;;  %vm4226_vm13 = vnez %v4152_v56  ;;  %vm4227_vm6 = vnez %v4154_v28  ;;  %vm3329_vm11 = vcmp.eq.s32.totalorder %v1089_v57, 1  ;;  %v1959_v57 = vpop.permute.xlu0 %1958 }
 0x17a   : > { %v4228_v63 = vmov 0  ;;  %vm3333_vm0 = vcmp.eq.s32.totalorder %v1114_v22, 1  ;;  %v4230_v0 = vmov 0  ;;  %v1140_v55 = vrot.slane %v3272_v2, %v2110_v31 }
 0x17b   : > { %v4229_v63 = vsel %vm3329_vm11, 4294967295, %v4228_v63  ;;  %v4231_v0 = vsel %vm3333_vm0, 4294967295, %v4230_v0  ;;  %v1166_v39 = vrot.slane %v3277_v4, %v2110_v31  ;;  %vm4232_vm3 = vcmp.lt.s32.totalorder %v2123_v37, 121 }
 0x17c   : > { %v950_v5 = vsel %vm4232_vm3, %v1940_v10, %v1941_v19  ;;  %vm4233_vm14 = vcmp.lt.s32.totalorder %v2123_v37, 127  ;;  %vm3351_vm11 = vcmp.eq.s32.totalorder %v1077_v15, 1  ;;  %v4235_v22 = vmov 0 }
 0x17d   : > { %v913_v35 = vsel %vm4233_vm14, %v1936_v42, %v1930_v32  ;;  %vm4234_vm2 = vmmov %vm4233_vm14  ;;  %v4236_v22 = vsel %vm3351_vm11, 4294967295, %v4235_v22  ;;  %vm3355_vm4 = vcmp.eq.s32.totalorder %v1102_v16, 1  ;;  %v4237_v41 = vmov 0 }
 0x17e   : > { %v910_v36 = vsel %vm4234_vm2, %v1935_v48, %v1936_v42  ;;  %v4238_v41 = vsel %vm3355_vm4, 4294967295, %v4237_v41  ;;  %v1148_v24 = vrot.slane %v3272_v2, %v2117_v34  ;;  %vm4239_vm14 = vmmov %vm4234_vm2  ;;  %vm3373_vm9 = vcmp.eq.s32.totalorder %v1085_v9, 1 }
 0x17f   : > { %v911_v21 = vsel %vm4239_vm14, %v1931_v17, %v1935_v48  ;;  %vm4240_vm2 = vmmov %vm4232_vm3  ;;  %v4245_v16 = vmov 0  ;;  %v912_v48 = vsel %vm4239_vm14, %v1930_v32, %v1931_v17  ;;  %vm4249_vm7 = vnez %v4189_v52 }
 0x180   : > { %v951_v13 = vsel %vm4240_vm2, %v1946_v51, %v1940_v10  ;;  %vm4241_vm3 = vmmov %vm4240_vm2  ;;  %v4246_v16 = vsel %vm3373_vm9, 4294967295, %v4245_v16  ;;  %vm3387_vm4 = vcmp.eq.s32.totalorder %v1110_v61, 1  ;;  %v4250_v9 = vmov 0 }
 0x181   : > { %v948_v15 = vsel %vm4241_vm3, %v1945_v46, %v1946_v51  ;;  %vm4242_vm0 = vmmov %vm4240_vm2  ;;  %v1727_v10 = vpack.c.bf16 %v951_v13, %v913_v35  ;;  %vm4247_vm2 = vnez %v4178_v38  ;;  %v4251_v9 = vsel %vm3387_vm4, 4294967295, %v4250_v9 }
 0x182   : > { %v949_v42 = vsel %vm4242_vm0, %v1941_v19, %v1945_v46  ;;  %v1730_v18 = vpack.c.bf16 %v948_v15, %v910_v36  ;;  %v1646_v19 = vpack.c.bf16 %v950_v5, %v912_v48  ;;  %v1174_v17 = vrot.slane %v3277_v4, %v2117_v34  ;;  %vm4253_vm11 = vmpackc.low %vm4223_vm5, %vm4222_vm1  ;;  %v4386_v48 = vld [vmem:[#allocation13_spill] sm:$0xff] }
 0x183   : > { %v1643_v45 = vpack.c.bf16 %v949_v42, %v911_v21  ;;  %vm4252_vm14 = vcmp.lt.s32.totalorder %v2088_v26, 7  ;;  %v1961_v51 = vunpack.i.h.bf16 %v1959_v57  ;;  %v1960_v46 = vunpack.i.l.bf16 %v1959_v57  ;;  %vm4254_vm0 = vmpackc.low %vm4227_vm6, %vm4226_vm13 }
 0x184   : > { %v3396_v32 = vsel %vm4252_vm14, 1, %v4025_v8  ;;  %v1956_v5 = vunpack.i.h.bf16 %v1954_v53  ;;  %v1955_v35 = vunpack.i.l.bf16 %v1954_v53  ;;  %1728 = vmatprep.subr.msk.bf16.mxu1 %vm4254_vm0, %v1727_v10  ;;  %vm4255_vm4 = vnez %v4166_v25 }
 0x185   : > { %1644 = vmatprep.subr.msk.bf16.mxu0 %vm4253_vm11, %v1643_v45  ;;  %vm4256_vm9 = vmpackc.low %vm3141_vm15, %vm4255_vm4  ;;  %vm4257_vm1 = vnez %v4175_v23  ;;  %vm4258_vm11 = vnez %v4173_v50  ;;  %vm3422_vm3 = vcmp.eq.s32.totalorder %v1140_v55, 1  ;;  %v4260_v56 = vmov 0  ;;  %v1964_v23 = vpop.permute.xlu1 %1963 }
 0x186   : > { %1647 = vmatpush1.bf16.msk.msra.mxu0 %vm4256_vm9, %v1646_v19  ;;  %vm4259_vm5 = vmpackc.low %vm4257_vm1, %vm4258_vm11  ;;  %v4261_v56 = vsel %vm3422_vm3, 4294967295, %v4260_v56  ;;  %v1136_v1 = vrot.slane %v3272_v2, %v2115_v33  ;;  %v1162_v47 = vrot.slane %v3277_v4, %v2115_v33  ;;  %v1144_v28 = vrot.slane %v3272_v2, %v2135_v44  ;;  %v4368_v2 = vld [vmem:[#allocation7_spill] sm:$0xff] }
 0x187   : > { %1731 = vmatpush1.bf16.msk.msra.mxu1 %vm4259_vm5, %v1730_v18  ;;  %vm4262_vm9 = vcmp.lt.s32.totalorder %v2098_v29, 7  ;;  %vm4263_vm15 = vmmov %vm4252_vm14  ;;  %v1951_v3 = vunpack.i.h.bf16 %v3256_v54  ;;  %v1950_v50 = vunpack.i.l.bf16 %v3256_v54  ;;  %vm3442_vm4 = vcmp.eq.s32.totalorder %v1166_v39, 1 }
 0x188   : > { %vm3436_vm13 = vmand %vm4263_vm15, %vm4262_vm9  ;;  %v4266_v61 = vmov 0  ;;  %vm3446_vm6 = vcmp.eq.s32.totalorder %v1148_v24, 1  ;;  %v4268_v55 = vmov 0  ;;  %vm4270_vm0 = vcmp.lt.s32.totalorder %v2093_v27, 7 }
 0x189   : > { %v4267_v61 = vsel %vm3442_vm4, 4294967295, %v4266_v61  ;;  %v4269_v55 = vsel %vm3446_vm6, 4294967295, %v4268_v55  ;;  %vm4271_vm1 = vmmov %vm4252_vm14  ;;  %v1966_v36 = vunpack.i.h.bf16 %v1964_v23  ;;  %v1965_v21 = vunpack.i.l.bf16 %v1964_v23  ;;  %v4356_v23 = vld [vmem:[#allocation3_spill] sm:$0xff] }
 0x18a   : > { %vm3454_vm11 = vmand %vm4271_vm1, %vm4270_vm0  ;;  %vm4275_vm9 = vnez %v4219_v58  ;;  %v1170_v54 = vrot.slane %v3277_v4, %v2135_v44  ;;  %v1199_v39 = vrot.slane %v3396_v32, %v2110_v31  ;;  %vm4276_vm14 = vcmp.lt.s32.totalorder %v2123_v37, 119 }
 0x18b   : > { %v1035_v26 = vsel %vm4276_vm14, %v1960_v46, %v1961_v51  ;;  %vm4277_vm0 = vcmp.lt.s32.totalorder %v2123_v37, 120  ;;  %v1217_v4 = vsel %vm3436_vm13, 1, %v4025_v8  ;;  %v1036_v13 = vsel %vm4276_vm14, %v1966_v36, %v1960_v46 }
 0x18c   : > { %v998_v27 = vsel %vm4277_vm0, %v1956_v5, %v1950_v50  ;;  %vm4278_vm1 = vmmov %vm4277_vm0  ;;  %vm4284_vm5 = vcmp.ge.s32.totalorder %v2098_v29, 1  ;;  %vm3505_vm4 = vcmp.eq.s32.totalorder %v1174_v17, 1  ;;  %v1225_v37 = vrot.slane %v1217_v4, %v2110_v31 }
 0x18d   : > { %v995_v24 = vsel %vm4278_vm1, %v1955_v35, %v1956_v5  ;;  %vm4281_vm3 = vmmov %vm4277_vm0  ;;  %v1733_v18 = vpack.c.bf16 %v1036_v13, %v998_v27  ;;  %v1207_v46 = vrot.slane %v3396_v32, %v2117_v34  ;;  %vm4298_vm6 = vnez %v4251_v9  ;;  %v4381_v27 = vld [vmem:[#allocation11_spill] sm:$0xff]  ;;  %v4384_v13 = vld [vmem:[#allocation16_spill] sm:$0xff] }
 0x18e   : > { %v996_v57 = vsel %vm4281_vm3, %v1951_v3, %v1955_v35  ;;  %vm4282_vm0 = vmmov %vm4276_vm14  ;;  %vm4289_vm14 = vnez %v4231_v0  ;;  %v4299_v17 = vmov 0  ;;  %v1233_v14 = vrot.slane %v1217_v4, %v2117_v34 }
 0x18f   : > { %v1033_v15 = vsel %vm4282_vm0, %v1965_v21, %v1966_v36  ;;  %vm4283_vm1 = vmmov %vm4282_vm0  ;;  %vm4295_vm0 = vnez %v4187_v49  ;;  %v1277_v49 = vsel %vm3454_vm11, 1, %v4025_v8  ;;  %v4306_v5 = vmov 0 }
 0x190   : > { %v1034_v42 = vsel %vm4283_vm1, %v1961_v51, %v1965_v21  ;;  %vm3491_vm15 = vmand %vm3454_vm11, %vm4284_vm5  ;;  %v1736_v53 = vpack.c.bf16 %v1033_v15, %v995_v24  ;;  %v4292_v51 = vmov 0  ;;  %vm4297_vm1 = vnez %v4246_v16 }
 0x191   : > { %vm4287_vm13 = vmmov %vm4281_vm3  ;;  %v1649_v10 = vpack.c.bf16 %v1034_v42, %v996_v57  ;;  %v4293_v51 = vsel %vm3505_vm4, 4294967295, %v4292_v51  ;;  %vm3526_vm3 = vcmp.eq.s32.totalorder %v1136_v1, 1  ;;  %v1252_v38 = vsel %vm3491_vm15, 1, %v4025_v8  ;;  %v4385_v42 = vld [vmem:[#allocation6_spill] sm:$0xff] }
 0x192   : > { %v997_v45 = vsel %vm4287_vm13, %v1950_v50, %v1951_v3  ;;  %vm4294_vm13 = vmpackc.low %vm3194_vm8, %vm4247_vm2  ;;  %v4300_v17 = vsel %vm3526_vm3, 4294967295, %v4299_v17  ;;  %vm3551_vm15 = vcmp.eq.s32.totalorder %v1144_v28, 1  ;;  %v1195_v59 = vrot.slane %v3396_v32, %v2115_v33 }
 0x193   : > { %v1652_v19 = vpack.c.bf16 %v1035_v26, %v997_v45  ;;  %1650 = vmatprep.subr.msk.bf16.mxu0 %vm4294_vm13, %v1649_v10  ;;  %vm4296_vm5 = vmpackc.low %vm4249_vm7, %vm4295_vm0  ;;  %vm4302_vm7 = vnez %v4214_v43  ;;  %vm3547_vm0 = vcmp.eq.s32.totalorder %v1162_v47, 1  ;;  %v4307_v5 = vsel %vm3551_vm15, 4294967295, %v4306_v5  ;;  %v4375_v26 = vld [vmem:[#allocation4_spill] sm:$0xff]  ;;  %v4387_v45 = vld [vmem:[#allocation10_spill] sm:$0xff] }
 0x194   : > { %1734 = vmatprep.subr.msk.bf16.mxu1 %vm4296_vm5, %v1733_v18  ;;  %vm4301_vm8 = vmpackc.low %vm3296_vm10, %vm3237_vm12  ;;  %v1221_v12 = vrot.slane %v1217_v4, %v2115_v33  ;;  %vm4308_vm12 = vcmp.lt.s32.totalorder %v2098_v29, 7  ;;  %vm4312_vm5 = vnez %v4225_v7  ;;  %vm3582_vm4 = vcmp.eq.s32.totalorder %v1170_v54, 1  ;;  %v4388_v18 = vld [vmem:[#allocation15_spill] sm:$0xff]  ;;  %v1502_v43 = vld [vmem:[%s293_s21 + $0x18] sm:$0xff] }
 0x195   : > { %1653 = vmatpush1.bf16.msk.msra.mxu0 %vm4301_vm8, %v1652_v19  ;;  %vm4303_vm2 = vmpackc.low %vm4275_vm9, %vm4302_vm7  ;;  %vm4311_vm9 = vnez %v4221_v40  ;;  %vm4314_vm8 = vnez %v4229_v63  ;;  %vm3586_vm15 = vcmp.eq.s32.totalorder %v1199_v39, 1  ;;  %v1229_v40 = vrot.slane %v1217_v4, %v2135_v44  ;;  %v4383_v4 = vld [vmem:[#allocation14_spill] sm:$0xff]  ;;  %v1969_v19 = vld [vmem:[%s3792_s4] sm:$0xff] }
 0x196   : > { %1737 = vmatpush1.bf16.msk.msra.mxu1 %vm4303_vm2, %v1736_v53  ;;  %vm3562_vm10 = vmand %vm3454_vm11, %vm4308_vm12  ;;  %vm4316_vm2 = vnez %v4261_v56  ;;  %vm4317_vm11 = vnez %v4267_v61  ;;  %v4326_v7 = vmov 0  ;;  %v1260_v63 = vrot.slane %v1252_v38, %v2110_v31 }
 0x197   : > { %vm4313_vm13 = vmpackc.low %vm4311_vm9, %vm4312_vm5  ;;  %vm4323_vm9 = vnez %v4293_v51  ;;  %v1285_v0 = vrot.slane %v1277_v49, %v2110_v31  ;;  %vm3611_vm12 = vcmp.eq.s32.totalorder %v1233_v14, 1  ;;  %v1268_v35 = vrot.slane %v1252_v38, %v2117_v34 }
 0x198   : > { %1656 = vmatprep.subr.msk.bf16.mxu0 %vm4313_vm13, %v2365_v6  ;;  %vm4315_vm7 = vmpackc.low %vm4289_vm14, %vm4314_vm8  ;;  %v1203_v6 = vrot.slane %v3396_v32, %v2135_v44  ;;  %vm4322_vm14 = vnez %v4269_v55  ;;  %vm3597_vm13 = vcmp.eq.s32.totalorder %v1225_v37, 1  ;;  %vm3601_vm8 = vcmp.eq.s32.totalorder %v1207_v46, 1  ;;  %v4366_v55 = vld [vmem:[#allocation8_spill] sm:$0xff]  ;;  %v1405_v37 = vpop.permute.xlu0 %1404 }
 0x199   : > { %1740 = vmatprep.subr.msk.bf16.mxu1 %vm4315_vm7, %v2361_v20  ;;  %v4324_v20 = vmov 0  ;;  %v4327_v7 = vsel %vm3601_vm8, 4294967295, %v4326_v7  ;;  %v4328_v32 = vmov 0  ;;  %v1293_v1 = vrot.slane %v1277_v49, %v2117_v34  ;;  %vm4333_vm7 = vmpackc.low %vm4298_vm6, %vm4297_vm1 }
 0x19a   : > { %v4325_v20 = vsel %vm3597_vm13, 4294967295, %v4324_v20  ;;  %v4329_v32 = vsel %vm3611_vm12, 4294967295, %v4328_v32  ;;  %v1311_v47 = vsel %vm3562_vm10, 1, %v4025_v8  ;;  %vm4330_vm5 = vnez %v4238_v41  ;;  %1743 = vmatpush1.bf16.msk.msra.mxu1 %vm4333_vm7, %v2363_v60  ;;  %vm4339_vm6 = vmpackc.low %vm4317_vm11, %vm4316_vm2 }
 0x19b   : > { %vm4331_vm8 = vnez %v4236_v22  ;;  %vm4334_vm3 = vnez %v4307_v5  ;;  %vm3636_vm10 = vcmp.eq.s32.totalorder %v1195_v59, 1  ;;  %v4335_v8 = vmov 0  ;;  %vm4340_vm1 = vmpackc.low %vm4323_vm9, %vm4322_vm14  ;;  %v1500_v59 = vld [vmem:[%s293_s21 + $0x8] sm:$0xff] }
 0x19c   : > { %vm4332_vm13 = vmpackc.low %vm4330_vm5, %vm4331_vm8  ;;  %v4336_v8 = vsel %vm3636_vm10, 4294967295, %v4335_v8  ;;  %vm3640_vm12 = vcmp.eq.s32.totalorder %v1221_v12, 1  ;;  %v4337_v22 = vmov 0  ;;  %v1281_v41 = vrot.slane %v1277_v49, %v2115_v33  ;;  %1746 = vmatprep.subr.msk.bf16.mxu1 %vm4340_vm1, %v2515_v30 }
 0x19d   : > { %1659 = vmatpush1.bf16.msk.msra.mxu0 %vm4332_vm13, %v2222_v11  ;;  %v4338_v22 = vsel %vm3640_vm12, 4294967295, %v4337_v22  ;;  %v1256_v11 = vrot.slane %v1252_v38, %v2115_v33  ;;  %vm4341_vm5 = vnez %v4325_v20  ;;  %vm3662_vm8 = vcmp.eq.s32.totalorder %v1203_v6, 1  ;;  %vm4361_vm1 = vmpackc.low %vm3582_vm4, %vm4334_vm3 }
 0x19e   : > { %1662 = vmatprep.subr.msk.bf16.mxu0 %vm4339_vm6, %v2517_v62  ;;  %vm3666_vm7 = vcmp.eq.s32.totalorder %v1229_v40, 1  ;;  %v1264_v62 = vrot.slane %v1252_v38, %v2135_v44  ;;  %v1289_v9 = vrot.slane %v1277_v49, %v2135_v44  ;;  %vm4346_vm2 = vnez %v4327_v7  ;;  %vm4367_vm4 = vmpackc.low %vm4341_vm5, %vm3586_vm15  ;;  %v1501_v38 = vld [vmem:[%s293_s21 + $0x10] sm:$0xff] }
 0x19f   : > { %vm4347_vm11 = vnez %v4329_v32  ;;  %vm3676_vm9 = vcmp.eq.s32.totalorder %v1260_v63, 1  ;;  %vm3680_vm6 = vcmp.eq.s32.totalorder %v1285_v0, 1  ;;  %v4350_v56 = vmov 0  ;;  %vm1753_vm10 = vmpackc.low %vm3666_vm7, %vm3662_vm8 }
 0x1a0   : > { %vm1750_vm14 = vmpackc.low %vm4347_vm11, %vm4346_vm2  ;;  %v4351_v56 = vsel %vm3680_vm6, 4294967295, %v4350_v56  ;;  %v1319_v28 = vrot.slane %v1311_v47, %v2110_v31  ;;  %vm3689_vm13 = vcmp.eq.s32.totalorder %v1268_v35, 1  ;;  %vm3693_vm2 = vcmp.eq.s32.totalorder %v1293_v1, 1  ;;  %v4360_v31 = vld [vmem:[#allocation5_spill] sm:$0xff] }
 0x1a1   : > { %v4354_v3 = vmov 0  ;;  %v1327_v50 = vrot.slane %v1311_v47, %v2117_v34  ;;  %vm4357_vm11 = vmmov %vm3547_vm0  ;;  %vm4358_vm0 = vnez %v4300_v17  ;;  %1749 = vmatpush1.bf16.msk.msra.mxu1 %vm4361_vm1, %v4360_v31  ;;  %vm3714_vm12 = vcmp.eq.s32.totalorder %v1256_v11, 1  ;;  %v1499_v17 = vld [vmem:[%s293_s21] sm:$0xff] }
 0x1a2   : > { %v4355_v3 = vsel %vm3693_vm2, 4294967295, %v4354_v3  ;;  %vm4359_vm6 = vmpackc.low %vm4357_vm11, %vm4358_vm0  ;;  %vm3718_vm2 = vcmp.eq.s32.totalorder %v1281_v41, 1  ;;  %1752 = vmatprep.subr.msk.bf16.mxu1 %vm1750_vm14, %v4368_v2  ;;  %vm4369_vm3 = vnez %v4351_v56  ;;  %vm3733_vm8 = vcmp.eq.s32.totalorder %v1264_v62, 1 }
 0x1a3   : > { %1665 = vmatpush1.bf16.msk.msra.mxu0 %vm4359_vm6, %v4356_v23  ;;  %vm1672_vm0 = vmpackc.low %vm4369_vm3, %vm3676_vm9  ;;  %vm3737_vm7 = vcmp.eq.s32.totalorder %v1289_v9, 1  ;;  %v1315_v54 = vrot.slane %v1311_v47, %v2115_v33  ;;  %vm4374_vm15 = vnez %v4355_v3  ;;  %vm1329_vm14 = vcmp.eq.s32.totalorder %v1319_v28, 1  ;;  %v4379_v33 = vld [vmem:[#allocation9_spill] sm:$0xff] }
 0x1a4   : > { %1668 = vmatprep.subr.msk.bf16.mxu0 %vm4367_vm4, %v4366_v55  ;;  %vm1756_vm5 = vmpackc.low %vm4374_vm15, %vm3689_vm13  ;;  %v1323_v39 = vrot.slane %v1311_v47, %v2135_v44  ;;  %vm1331_vm6 = vcmp.eq.s32.totalorder %v1327_v50, 1  ;;  %vm4376_vm1 = vnez %v4338_v22  ;;  %vm4377_vm11 = vnez %v4336_v8  ;;  %v4380_v44 = vld [vmem:[#allocation12_spill] sm:$0xff] }
 0x1a5   : > { %vm1675_vm9 = vmpackc.low %vm3718_vm2, %vm3714_vm12  ;;  %1755 = vmatpush1.bf16.msk.msra.mxu1 %vm1753_vm10, %v4379_v33  ;;  %vm4382_vm12 = vmmov 1   ;;  %vm1328_vm3 = vcmp.eq.s32.totalorder %v1315_v54, 1  ;;  %v1997_v24 = vmov 0.0   ;;  %v1591_v51 = vcombine.low %v1969_v19, %v1969_v19 }
 0x1a6   : > { %vm4378_vm4 = vmpackc.low %vm4376_vm1, %vm4377_vm11  ;;  %1758 = vmatprep.subr.msk.bf16.mxu1 %vm1756_vm5, %v4381_v27  ;;  %vm1330_vm1 = vcmp.eq.s32.totalorder %v1323_v39, 1  ;;  %v1763_v57 = vpack.c.bf16 %v1997_v24, %v4383_v4  ;;  %v1679_v15 = vpack.c.bf16 %v1997_v24, %v4384_v13  ;;  %v1682_v10 = vpack.c.bf16 %v1997_v24, %v4387_v45 }
 0x1a7   : > { %1671 = vmatpush1.bf16.msk.msra.mxu0 %vm4378_vm4, %v4375_v26  ;;  %vm1759_vm13 = vmpackc.low %vm3737_vm7, %vm3733_vm8  ;;  %v1766_v53 = vpack.c.bf16 %v1997_v24, %v4388_v18 }
 0x1a8   : > { %1674 = vmatprep.subr.msk.bf16.mxu0 %vm1672_vm0, %v4380_v44  ;;  %vm1678_vm2 = vmpackc.low %vm4382_vm12, %vm1329_vm14 }
 0x1a9   : > { %vm1762_vm15 = vmpackc.low %vm4382_vm12, %vm1331_vm6  ;;  %1761 = vmatpush1.bf16.msk.msra.mxu1 %vm1759_vm13, %v4386_v48 }
 0x1aa   : > { %vm1681_vm10 = vmpackc.low %vm4382_vm12, %vm1328_vm3  ;;  %1764 = vmatprep.subr.msk.bf16.mxu1 %vm1762_vm15, %v1763_v57 }
 0x1ab   : > { %1677 = vmatpush1.bf16.msk.msra.mxu0 %vm1675_vm9, %v4385_v42  ;;  %vm1765_vm0 = vmpackc.low %vm4382_vm12, %vm1330_vm1 }
 0x1ac   : > { %1680 = vmatprep.subr.msk.bf16.mxu0 %vm1678_vm2, %v1679_v15 }
 0x1ad   : > { %1767 = vmatpush1.bf16.msk.msra.mxu1 %vm1765_vm0, %v1766_v53 }
 0x1af   : > { %1683 = vmatpush1.bf16.msk.msra.mxu0 %vm1681_vm10, %v1682_v10 }
 0x1b0   : > { %1491 = vmatmul.mubr.bf16.vlgmr.msra.gmra.mrb[0].mxu1 %v1591_v51 }
 0x1b2   : > { %1450 = vmatmul.mubr.bf16.vlgmr.msra.gmra.mrb[0].mxu0 %v1591_v51 }
 0x283   : > { %v1492_v14 = vpop.f32.mrb[0].mxu1 }
 0x284   : > { %v1493_v52 = vadd.f32 %v1492_v14, %v1405_v37  ;;  %v1494_v12 = vpop.f32.mrb[1].mxu1 }
 0x285   : > { %v1451_v46 = vpop.f32.mrb[0].mxu0  ;;  %v1495_v58 = vadd.f32 %v1494_v12, %v1405_v37  ;;  %v1496_v40 = vpop.f32.mrb[2].mxu1 }
 0x286   : > { %v1452_v49 = vadd.f32 %v1451_v46, %v1405_v37  ;;  %v1453_v5 = vpop.f32.mrb[1].mxu0  ;;  %v1505_v7 = vadd.f32 %v1501_v38, %v1493_v52  ;;  %v1497_v0 = vpop.f32.mrb[3].mxu1 }
 0x287   : > { %v1454_v29 = vadd.f32 %v1453_v5, %v1405_v37  ;;  %v1455_v6 = vpop.f32.mrb[2].mxu0  ;;  %v1506_v35 = vadd.f32 %v1502_v43, %v1495_v58 }
 0x288   : > { %v1503_v20 = vadd.f32 %v1499_v17, %v1452_v49  ;;  %v1456_v63 = vpop.f32.mrb[3].mxu0  ;;  %1509 = vst [vmem:[%s298_s25 + $0x10] sm:$0xff] %v1505_v7 }
 0x289   : > { %v1504_v32 = vadd.f32 %v1500_v59, %v1454_v29  ;;  %1510 = vst [vmem:[%s298_s25 + $0x18] sm:$0xff] %v1506_v35 }
 0x28a   : > { %1507 = vst [vmem:[%s298_s25] sm:$0xff] %v1503_v20 }
 0x28b   : > { %1508 = vst [vmem:[%s298_s25 + $0x8] sm:$0xff] %v1504_v32 }
 0x28c PF: > { %s17_s24 = sadd.s32 1, %s1976_s24  }
 0x28d   : > { %p14_p4 = scmp.ge.s32.totalorder %s17_s24, 4  }
 0x28f   :  { %16 = sbr.rel (!%p14_p4) target bundleno = 1 (0x1), region = 83 }

</bundles_post_ra>
